<compile_context>
chip_gen: v6e
topology: v6e:2x2x1
jax: 0.10.0
libtpu: 0.0.40
codegen_flags: <defaults>
</compile_context>

<pallas_src>
import jax
import jax.numpy as jnp
import numpy as np
from jax import lax
from jax.experimental import pallas as pl
from jax.experimental.pallas import tpu as pltpu

BN_EPS = 1e-5
LANE = 128


def _bottleneck_kernel(x_ref, w1_ref, s1_ref, b1_ref,
                       w2_ref, s2_ref, b2_ref,
                       w3_ref, s3_ref, b3_ref,
                       out_ref):
    _, H, W, Ci = x_ref.shape
    P = w1_ref.shape[1]
    Co = w3_ref.shape[1]
    HW = H * W

    # Residual path stays in f32.
    x = x_ref[...].reshape(HW, Ci)

    # ---- conv1 (1x1, no bias) + bn1 + relu : one MXU matmul (bf16 in, f32 acc)
    y = jnp.dot(x.astype(jnp.bfloat16), w1_ref[...],
                preferred_element_type=jnp.float32)
    y = jnp.maximum(y * s1_ref[...] + b1_ref[...], 0.0)          # (HW, P) f32

    # ---- conv2 (3x3, stride=1, pad=1, no bias) as ONE im2col matmul.
    # Shifted taps via pltpu.roll on the flattened HW axis; the implicit zero
    # padding is applied with iota-based edge masks.
    hh = lax.broadcasted_iota(jnp.int32, (H, W, 1), 0).reshape(HW, 1)
    ww = lax.broadcasted_iota(jnp.int32, (H, W, 1), 1).reshape(HW, 1)

    taps = []
    for dy in range(3):
        for dx in range(3):
            off = (dy - 1) * W + (dx - 1)          # flat offset of source pixel
            if off == 0:
                t = y
            else:
                t = pltpu.roll(y, shift=(-off) % HW, axis=0)
            valid = None
            if dy == 0:
                valid = hh >= 1
            elif dy == 2:
                valid = hh <= H - 2
            if dx == 0:
                c = ww >= 1
                valid = c if valid is None else (valid & c)
            elif dx == 2:
                c = ww <= W - 2
                valid = c if valid is None else (valid & c)
            if valid is not None:
                t = jnp.where(valid, t, 0.0)
            taps.append(t)

    patches = jnp.concatenate(taps, axis=-1)                     # (HW, 9*P)
    y = jnp.dot(patches.astype(jnp.bfloat16), w2_ref[...],
                preferred_element_type=jnp.float32)
    y = jnp.maximum(y * s2_ref[...] + b2_ref[...], 0.0)          # (HW, P)

    # ---- conv3 (1x1, no bias) + bn3
    y = jnp.dot(y.astype(jnp.bfloat16), w3_ref[...],
                preferred_element_type=jnp.float32)
    y = y * s3_ref[...] + b3_ref[...]                            # (HW, Co)

    # ---- identity shortcut + relu (f32)
    y = jnp.maximum(y + x, 0.0)
    out_ref[...] = y.reshape(1, H, W, Co).astype(out_ref.dtype)


def _round_up(x, m):
    return (x + m - 1) // m * m


def bottleneck_pallas(x_nhwc, kernel_params):
    """Primary entry point. x_nhwc: (N, H, W, Cin) float32, channels-last."""
    w1, s1, b1, w2, s2, b2, w3, s3, b3 = kernel_params
    N, H, W, Cin = x_nhwc.shape
    P = w1.shape[1]
    Cout = w3.shape[1]
    assert Cin == Cout, "identity shortcut requires inplanes == planes * expansion"

    # Lane-dense I/O: pad the HBM-facing channel dims to a multiple of 128 so
    # the kernel's loads/stores are full-lane (unmasked).  Padded channels are
    # zero everywhere and cropped after the call.
    Ci_p = _round_up(Cin, LANE)
    Co_p = _round_up(Cout, LANE)
    if Ci_p != Cin:
        x_nhwc = jnp.pad(x_nhwc, ((0, 0), (0, 0), (0, 0), (0, Ci_p - Cin)))
        w1 = jnp.pad(w1, ((0, Ci_p - Cin), (0, 0)))
    if Co_p != Cout:
        w3 = jnp.pad(w3, ((0, 0), (0, Co_p - Cout)))
        s3 = jnp.pad(s3, ((0, 0), (0, Co_p - Cout)))
        b3 = jnp.pad(b3, ((0, 0), (0, Co_p - Cout)))

    # bf16 weights for the MXU; BN scale/bias stay f32.
    w1 = w1.astype(jnp.bfloat16)
    w2 = w2.astype(jnp.bfloat16)
    w3 = w3.astype(jnp.bfloat16)

    def full_spec(arr):
        rank = arr.ndim
        return pl.BlockSpec(arr.shape, lambda n: (0,) * rank)

    # Rough VMEM footprint: double-buffered I/O blocks + weights + f32
    # temporaries (x, patches, y), with 2x headroom.
    io_bytes = 2 * H * W * (Ci_p + Co_p) * 4
    tmp_bytes = H * W * (Ci_p + Co_p + 12 * P) * 4
    w_bytes = (Ci_p * P + 9 * P * P + P * Co_p) * 2 + 2 * (P + Co_p) * 4 * 2
    vmem_limit = int(min(max(2 * (io_bytes + tmp_bytes + w_bytes),
                             32 * 1024 * 1024),
                         64 * 1024 * 1024))

    out = pl.pallas_call(
        _bottleneck_kernel,
        out_shape=jax.ShapeDtypeStruct((N, H, W, Co_p), x_nhwc.dtype),
        grid=(N,),
        in_specs=[
            pl.BlockSpec((1, H, W, Ci_p), lambda n: (n, 0, 0, 0)),
            full_spec(w1), full_spec(s1), full_spec(b1),
            full_spec(w2), full_spec(s2), full_spec(b2),
            full_spec(w3), full_spec(s3), full_spec(b3),
        ],
        out_specs=pl.BlockSpec((1, H, W, Co_p), lambda n: (n, 0, 0, 0)),
        compiler_params=pltpu.CompilerParams(
            dimension_semantics=("parallel",),
            vmem_limit_bytes=vmem_limit),
    )(x_nhwc, w1, s1, b1, w2, s2, b2, w3, s3, b3)

    if Co_p != Cout:
        out = out[..., :Cout]
    return out


def bottleneck_pallas_nchw(x_nchw, kernel_params):
    """Compatibility wrapper for PyTorch NCHW layout (adds two HBM transposes;
    prefer bottleneck_pallas with an NHWC-native model)."""
    x_nhwc = jnp.transpose(x_nchw, (0, 2, 3, 1))
    out = bottleneck_pallas(x_nhwc, kernel_params)
    return jnp.transpose(out, (0, 3, 1, 2))


def make_params(key, inplanes, planes, expansion=4):
    """Deterministic synthetic parameters (PyTorch shapes) + kernel-layout copies."""
    P, Cout = planes, planes * expansion
    ks = jax.random.split(key, 15)

    # PyTorch OIHW conv weights (bias=False)
    w1_oihw = jax.random.normal(ks[0], (P, inplanes, 1, 1), jnp.float32) * 0.2
    w2_oihw = jax.random.normal(ks[1], (P, P, 3, 3), jnp.float32) * 0.2
    w3_oihw = jax.random.normal(ks[2], (Cout, P, 1, 1), jnp.float32) * 0.2

    def bn(kg, kb, km, kv, c):
        gamma = jax.random.uniform(kg, (c,), jnp.float32, 0.5, 1.5)
        beta = jax.random.normal(kb, (c,), jnp.float32) * 0.1
        mean = jax.random.normal(km, (c,), jnp.float32) * 0.1
        var = jax.random.uniform(kv, (c,), jnp.float32, 0.5, 1.5)
        return gamma, beta, mean, var

    g1, be1, m1, v1 = bn(ks[3], ks[4], ks[5], ks[6], P)
    g2, be2, m2, v2 = bn(ks[7], ks[8], ks[9], ks[10], P)
    g3, be3, m3, v3 = bn(ks[11], ks[12], ks[13], ks[14], Cout)

    torch_params = (w1_oihw, g1, be1, m1, v1,
                    w2_oihw, g2, be2, m2, v2,
                    w3_oihw, g3, be3, m3, v3)

    def fold(g, b, m, v):
        scale = g / jnp.sqrt(v + BN_EPS)
        bias = b - m * scale
        return scale.reshape(1, -1), bias.reshape(1, -1)

    s1, b1 = fold(g1, be1, m1, v1)
    s2, b2 = fold(g2, be2, m2, v2)
    s3, b3 = fold(g3, be3, m3, v3)

    w1_k = w1_oihw[:, :, 0, 0].T                                      # (Cin, P)
    # im2col layout: row = (ky*3 + kx)*P + c_in, col = c_out
    w2_k = jnp.transpose(w2_oihw, (2, 3, 1, 0)).reshape(9 * P, P)     # (9P, P)
    w3_k = w3_oihw[:, :, 0, 0].T                                      # (P, Cout)

    kernel_params = (w1_k, s1, b1, w2_k, s2, b2, w3_k, s3, b3)
    return torch_params, kernel_params


def bottleneck_ref_nhwc(x_nhwc, torch_params, matmul_dtype=jnp.float32):
    """Pure-JAX NHWC reference (PyTorch eval-mode semantics).  When
    matmul_dtype=bfloat16 it mirrors the kernel's MXU operand precision
    (f32 accumulation, f32 BN / residual)."""
    (w1, g1, be1, m1, v1,
     w2, g2, be2, m2, v2,
     w3, g3, be3, m3, v3) = torch_params

    def conv(x, w_oihw, pad):
        w_hwio = jnp.transpose(w_oihw, (2, 3, 1, 0)).astype(matmul_dtype)
        return lax.conv_general_dilated(
            x.astype(matmul_dtype), w_hwio, window_strides=(1, 1),
            padding=[(pad, pad), (pad, pad)],
            dimension_numbers=('NHWC', 'HWIO', 'NHWC'),
            preferred_element_type=jnp.float32)

    def bn(x, g, b, m, v):
        return (x - m) / jnp.sqrt(v + BN_EPS) * g + b

    y = jax.nn.relu(bn(conv(x_nhwc, w1, 0), g1, be1, m1, v1))
    y = jax.nn.relu(bn(conv(y, w2, 1), g2, be2, m2, v2))
    y = bn(conv(y, w3, 0), g3, be3, m3, v3)
    return jax.nn.relu(y + x_nhwc)


if __name__ == "__main__":
    key = jax.random.PRNGKey(0)
    kx, kp = jax.random.split(key)

    # inplanes must equal planes * expansion (identity shortcut, downsample=None)
    N, inplanes, planes, H, W = 2, 16, 4, 16, 16
    x_nhwc = jax.random.normal(kx, (N, H, W, inplanes), jnp.float32)

    torch_params, kernel_params = make_params(kp, inplanes, planes)

    out = bottleneck_pallas(x_nhwc, kernel_params)
    out = jax.block_until_ready(out)

    # Tight check against a reference using the same bf16 MXU operand precision.
    ref_bf16 = bottleneck_ref_nhwc(x_nhwc, torch_params,
                                   matmul_dtype=jnp.bfloat16)
    np.testing.assert_allclose(np.asarray(out), np.asarray(ref_bf16),
                               rtol=2e-2, atol=2e-2)

    # Loose sanity check against the pure-f32 reference (bf16-operand error).
    ref_f32 = bottleneck_ref_nhwc(x_nhwc, torch_params)
    np.testing.assert_allclose(np.asarray(out), np.asarray(ref_f32),
                               rtol=1.5e-1, atol=1.5e-1)

    print("KERNEL_OK")
</pallas_src>

<mosaic_0001>
module attributes {stable_mosaic.version = 11 : i64} {
  func.func @_bottleneck_kernel(%arg0: i32, %arg1: memref<1x16x16x128xf32, #tpu.memory_space<vmem>>, %arg2: memref<128x4xbf16, #tpu.memory_space<vmem>>, %arg3: memref<1x4xf32, #tpu.memory_space<vmem>>, %arg4: memref<1x4xf32, #tpu.memory_space<vmem>>, %arg5: memref<36x4xbf16, #tpu.memory_space<vmem>>, %arg6: memref<1x4xf32, #tpu.memory_space<vmem>>, %arg7: memref<1x4xf32, #tpu.memory_space<vmem>>, %arg8: memref<4x128xbf16, #tpu.memory_space<vmem>>, %arg9: memref<1x128xf32, #tpu.memory_space<vmem>>, %arg10: memref<1x128xf32, #tpu.memory_space<vmem>>, %arg11: memref<1x16x16x128xf32, #tpu.memory_space<vmem>>) attributes {dimension_semantics = [#tpu.dimension_semantics<parallel>], iteration_bounds = array<i64: 2>, scalar_prefetch = 0 : i64, scratch_operands = 0 : i64, tpu.core_type = #tpu.core_type<tc>, window_params = [{transform_indices = @transform_0, window_bounds = array<i64: 1, 16, 16, 128>}, {pipeline_mode = #tpu.pipeline_mode<synchronous>, transform_indices = @transform_1, window_bounds = array<i64: 128, 4>}, {pipeline_mode = #tpu.pipeline_mode<synchronous>, transform_indices = @transform_2, window_bounds = array<i64: 1, 4>}, {pipeline_mode = #tpu.pipeline_mode<synchronous>, transform_indices = @transform_3, window_bounds = array<i64: 1, 4>}, {pipeline_mode = #tpu.pipeline_mode<synchronous>, transform_indices = @transform_4, window_bounds = array<i64: 36, 4>}, {pipeline_mode = #tpu.pipeline_mode<synchronous>, transform_indices = @transform_5, window_bounds = array<i64: 1, 4>}, {pipeline_mode = #tpu.pipeline_mode<synchronous>, transform_indices = @transform_6, window_bounds = array<i64: 1, 4>}, {pipeline_mode = #tpu.pipeline_mode<synchronous>, transform_indices = @transform_7, window_bounds = array<i64: 4, 128>}, {pipeline_mode = #tpu.pipeline_mode<synchronous>, transform_indices = @transform_8, window_bounds = array<i64: 1, 128>}, {pipeline_mode = #tpu.pipeline_mode<synchronous>, transform_indices = @transform_9, window_bounds = array<i64: 1, 128>}, {transform_indices = @transform_10, window_bounds = array<i64: 1, 16, 16, 128>}]} {
    %c0 = arith.constant 0 : index
    %c0_0 = arith.constant 0 : index
    %c0_1 = arith.constant 0 : index
    %c0_2 = arith.constant 0 : index
    %0 = vector.load %arg1[%c0, %c0_0, %c0_1, %c0_2] : memref<1x16x16x128xf32, #tpu.memory_space<vmem>>, vector<1x16x16x128xf32>
    %1 = vector.shape_cast %0 : vector<1x16x16x128xf32> to vector<256x128xf32>
    %2 = arith.truncf %1 : vector<256x128xf32> to vector<256x128xbf16>
    %c0_3 = arith.constant 0 : index
    %c0_4 = arith.constant 0 : index
    %3 = vector.load %arg2[%c0_3, %c0_4] : memref<128x4xbf16, #tpu.memory_space<vmem>>, vector<128x4xbf16>
    %cst = arith.constant dense<0.000000e+00> : vector<256x4xf32>
    %4 = tpu.matmul %2, %3, %cst {dimension_numbers = #tpu.dot_dimension_numbers<[1], [0], [0], [1], [0, 0, 1, 1], [], []>} : vector<256x128xbf16>, vector<128x4xbf16>, vector<256x4xf32> -> vector<256x4xf32>
    %c0_5 = arith.constant 0 : index
    %c0_6 = arith.constant 0 : index
    %5 = vector.load %arg3[%c0_5, %c0_6] : memref<1x4xf32, #tpu.memory_space<vmem>>, vector<1x4xf32>
    %6 = vector.broadcast %5 : vector<1x4xf32> to vector<256x4xf32>
    %7 = arith.mulf %4, %6 : vector<256x4xf32>
    %c0_7 = arith.constant 0 : index
    %c0_8 = arith.constant 0 : index
    %8 = vector.load %arg4[%c0_7, %c0_8] : memref<1x4xf32, #tpu.memory_space<vmem>>, vector<1x4xf32>
    %9 = vector.broadcast %8 : vector<1x4xf32> to vector<256x4xf32>
    %10 = arith.addf %7, %9 : vector<256x4xf32>
    %cst_9 = arith.constant 0.000000e+00 : f32
    %11 = vector.broadcast %cst_9 : f32 to vector<256x4xf32>
    %12 = arith.maximumf %10, %11 : vector<256x4xf32>
    %13 = tpu.iota {dimensions = array<i32: 0>} : vector<16x16x1xi32>
    %14 = vector.shape_cast %13 : vector<16x16x1xi32> to vector<256x1xi32>
    %15 = tpu.iota {dimensions = array<i32: 1>} : vector<16x16x1xi32>
    %16 = vector.shape_cast %15 : vector<16x16x1xi32> to vector<256x1xi32>
    %c17_i32 = arith.constant 17 : i32
    %17 = tpu.dynamic_rotate %12 by %c17_i32 dim 0 : vector<256x4xf32>, i32 -> vector<256x4xf32>
    %c1_i32 = arith.constant 1 : i32
    %18 = vector.broadcast %c1_i32 : i32 to vector<256x1xi32>
    %19 = arith.cmpi sge, %14, %18 : vector<256x1xi32>
    %c1_i32_10 = arith.constant 1 : i32
    %20 = vector.broadcast %c1_i32_10 : i32 to vector<256x1xi32>
    %21 = arith.cmpi sge, %16, %20 : vector<256x1xi32>
    %22 = arith.andi %19, %21 : vector<256x1xi1>
    %cst_11 = arith.constant 0.000000e+00 : f32
    %23 = vector.shape_cast %22 : vector<256x1xi1> to vector<256x1xi1>
    %24 = vector.broadcast %23 : vector<256x1xi1> to vector<256x4xi1>
    %25 = vector.broadcast %cst_11 : f32 to vector<256x4xf32>
    %26 = arith.select %24, %17, %25 : vector<256x4xi1>, vector<256x4xf32>
    %c16_i32 = arith.constant 16 : i32
    %27 = tpu.dynamic_rotate %12 by %c16_i32 dim 0 : vector<256x4xf32>, i32 -> vector<256x4xf32>
    %c1_i32_12 = arith.constant 1 : i32
    %28 = vector.broadcast %c1_i32_12 : i32 to vector<256x1xi32>
    %29 = arith.cmpi sge, %14, %28 : vector<256x1xi32>
    %cst_13 = arith.constant 0.000000e+00 : f32
    %30 = vector.shape_cast %29 : vector<256x1xi1> to vector<256x1xi1>
    %31 = vector.broadcast %30 : vector<256x1xi1> to vector<256x4xi1>
    %32 = vector.broadcast %cst_13 : f32 to vector<256x4xf32>
    %33 = arith.select %31, %27, %32 : vector<256x4xi1>, vector<256x4xf32>
    %c15_i32 = arith.constant 15 : i32
    %34 = tpu.dynamic_rotate %12 by %c15_i32 dim 0 : vector<256x4xf32>, i32 -> vector<256x4xf32>
    %c1_i32_14 = arith.constant 1 : i32
    %35 = vector.broadcast %c1_i32_14 : i32 to vector<256x1xi32>
    %36 = arith.cmpi sge, %14, %35 : vector<256x1xi32>
    %c14_i32 = arith.constant 14 : i32
    %37 = vector.broadcast %c14_i32 : i32 to vector<256x1xi32>
    %38 = arith.cmpi sle, %16, %37 : vector<256x1xi32>
    %39 = arith.andi %36, %38 : vector<256x1xi1>
    %cst_15 = arith.constant 0.000000e+00 : f32
    %40 = vector.shape_cast %39 : vector<256x1xi1> to vector<256x1xi1>
    %41 = vector.broadcast %40 : vector<256x1xi1> to vector<256x4xi1>
    %42 = vector.broadcast %cst_15 : f32 to vector<256x4xf32>
    %43 = arith.select %41, %34, %42 : vector<256x4xi1>, vector<256x4xf32>
    %c1_i32_16 = arith.constant 1 : i32
    %44 = tpu.dynamic_rotate %12 by %c1_i32_16 dim 0 : vector<256x4xf32>, i32 -> vector<256x4xf32>
    %c1_i32_17 = arith.constant 1 : i32
    %45 = vector.broadcast %c1_i32_17 : i32 to vector<256x1xi32>
    %46 = arith.cmpi sge, %16, %45 : vector<256x1xi32>
    %cst_18 = arith.constant 0.000000e+00 : f32
    %47 = vector.shape_cast %46 : vector<256x1xi1> to vector<256x1xi1>
    %48 = vector.broadcast %47 : vector<256x1xi1> to vector<256x4xi1>
    %49 = vector.broadcast %cst_18 : f32 to vector<256x4xf32>
    %50 = arith.select %48, %44, %49 : vector<256x4xi1>, vector<256x4xf32>
    %c255_i32 = arith.constant 255 : i32
    %51 = tpu.dynamic_rotate %12 by %c255_i32 dim 0 : vector<256x4xf32>, i32 -> vector<256x4xf32>
    %c14_i32_19 = arith.constant 14 : i32
    %52 = vector.broadcast %c14_i32_19 : i32 to vector<256x1xi32>
    %53 = arith.cmpi sle, %16, %52 : vector<256x1xi32>
    %cst_20 = arith.constant 0.000000e+00 : f32
    %54 = vector.shape_cast %53 : vector<256x1xi1> to vector<256x1xi1>
    %55 = vector.broadcast %54 : vector<256x1xi1> to vector<256x4xi1>
    %56 = vector.broadcast %cst_20 : f32 to vector<256x4xf32>
    %57 = arith.select %55, %51, %56 : vector<256x4xi1>, vector<256x4xf32>
    %c241_i32 = arith.constant 241 : i32
    %58 = tpu.dynamic_rotate %12 by %c241_i32 dim 0 : vector<256x4xf32>, i32 -> vector<256x4xf32>
    %c14_i32_21 = arith.constant 14 : i32
    %59 = vector.broadcast %c14_i32_21 : i32 to vector<256x1xi32>
    %60 = arith.cmpi sle, %14, %59 : vector<256x1xi32>
    %c1_i32_22 = arith.constant 1 : i32
    %61 = vector.broadcast %c1_i32_22 : i32 to vector<256x1xi32>
    %62 = arith.cmpi sge, %16, %61 : vector<256x1xi32>
    %63 = arith.andi %60, %62 : vector<256x1xi1>
    %cst_23 = arith.constant 0.000000e+00 : f32
    %64 = vector.shape_cast %63 : vector<256x1xi1> to vector<256x1xi1>
    %65 = vector.broadcast %64 : vector<256x1xi1> to vector<256x4xi1>
    %66 = vector.broadcast %cst_23 : f32 to vector<256x4xf32>
    %67 = arith.select %65, %58, %66 : vector<256x4xi1>, vector<256x4xf32>
    %c240_i32 = arith.constant 240 : i32
    %68 = tpu.dynamic_rotate %12 by %c240_i32 dim 0 : vector<256x4xf32>, i32 -> vector<256x4xf32>
    %c14_i32_24 = arith.constant 14 : i32
    %69 = vector.broadcast %c14_i32_24 : i32 to vector<256x1xi32>
    %70 = arith.cmpi sle, %14, %69 : vector<256x1xi32>
    %cst_25 = arith.constant 0.000000e+00 : f32
    %71 = vector.shape_cast %70 : vector<256x1xi1> to vector<256x1xi1>
    %72 = vector.broadcast %71 : vector<256x1xi1> to vector<256x4xi1>
    %73 = vector.broadcast %cst_25 : f32 to vector<256x4xf32>
    %74 = arith.select %72, %68, %73 : vector<256x4xi1>, vector<256x4xf32>
    %c239_i32 = arith.constant 239 : i32
    %75 = tpu.dynamic_rotate %12 by %c239_i32 dim 0 : vector<256x4xf32>, i32 -> vector<256x4xf32>
    %c14_i32_26 = arith.constant 14 : i32
    %76 = vector.broadcast %c14_i32_26 : i32 to vector<256x1xi32>
    %77 = arith.cmpi sle, %14, %76 : vector<256x1xi32>
    %c14_i32_27 = arith.constant 14 : i32
    %78 = vector.broadcast %c14_i32_27 : i32 to vector<256x1xi32>
    %79 = arith.cmpi sle, %16, %78 : vector<256x1xi32>
    %80 = arith.andi %77, %79 : vector<256x1xi1>
    %cst_28 = arith.constant 0.000000e+00 : f32
    %81 = vector.shape_cast %80 : vector<256x1xi1> to vector<256x1xi1>
    %82 = vector.broadcast %81 : vector<256x1xi1> to vector<256x4xi1>
    %83 = vector.broadcast %cst_28 : f32 to vector<256x4xf32>
    %84 = arith.select %82, %75, %83 : vector<256x4xi1>, vector<256x4xf32>
    %85 = tpu.concatenate %26, %33, %43, %50, %12, %57, %67, %74, %84 in 1 : vector<256x4xf32>, vector<256x4xf32>, vector<256x4xf32>, vector<256x4xf32>, vector<256x4xf32>, vector<256x4xf32>, vector<256x4xf32>, vector<256x4xf32>, vector<256x4xf32> -> vector<256x36xf32>
    %86 = arith.truncf %85 : vector<256x36xf32> to vector<256x36xbf16>
    %c0_29 = arith.constant 0 : index
    %c0_30 = arith.constant 0 : index
    %87 = vector.load %arg5[%c0_29, %c0_30] : memref<36x4xbf16, #tpu.memory_space<vmem>>, vector<36x4xbf16>
    %cst_31 = arith.constant dense<0.000000e+00> : vector<256x4xf32>
    %88 = tpu.matmul %86, %87, %cst_31 {dimension_numbers = #tpu.dot_dimension_numbers<[1], [0], [0], [1], [0, 0, 1, 1], [], []>} : vector<256x36xbf16>, vector<36x4xbf16>, vector<256x4xf32> -> vector<256x4xf32>
    %c0_32 = arith.constant 0 : index
    %c0_33 = arith.constant 0 : index
    %89 = vector.load %arg6[%c0_32, %c0_33] : memref<1x4xf32, #tpu.memory_space<vmem>>, vector<1x4xf32>
    %90 = vector.broadcast %89 : vector<1x4xf32> to vector<256x4xf32>
    %91 = arith.mulf %88, %90 : vector<256x4xf32>
    %c0_34 = arith.constant 0 : index
    %c0_35 = arith.constant 0 : index
    %92 = vector.load %arg7[%c0_34, %c0_35] : memref<1x4xf32, #tpu.memory_space<vmem>>, vector<1x4xf32>
    %93 = vector.broadcast %92 : vector<1x4xf32> to vector<256x4xf32>
    %94 = arith.addf %91, %93 : vector<256x4xf32>
    %cst_36 = arith.constant 0.000000e+00 : f32
    %95 = vector.broadcast %cst_36 : f32 to vector<256x4xf32>
    %96 = arith.maximumf %94, %95 : vector<256x4xf32>
    %97 = arith.truncf %96 : vector<256x4xf32> to vector<256x4xbf16>
    %c0_37 = arith.constant 0 : index
    %c0_38 = arith.constant 0 : index
    %98 = vector.load %arg8[%c0_37, %c0_38] : memref<4x128xbf16, #tpu.memory_space<vmem>>, vector<4x128xbf16>
    %cst_39 = arith.constant dense<0.000000e+00> : vector<256x128xf32>
    %99 = tpu.matmul %97, %98, %cst_39 {dimension_numbers = #tpu.dot_dimension_numbers<[1], [0], [0], [1], [0, 0, 1, 1], [], []>} : vector<256x4xbf16>, vector<4x128xbf16>, vector<256x128xf32> -> vector<256x128xf32>
    %c0_40 = arith.constant 0 : index
    %c0_41 = arith.constant 0 : index
    %100 = vector.load %arg9[%c0_40, %c0_41] : memref<1x128xf32, #tpu.memory_space<vmem>>, vector<1x128xf32>
    %101 = vector.broadcast %100 : vector<1x128xf32> to vector<256x128xf32>
    %102 = arith.mulf %99, %101 : vector<256x128xf32>
    %c0_42 = arith.constant 0 : index
    %c0_43 = arith.constant 0 : index
    %103 = vector.load %arg10[%c0_42, %c0_43] : memref<1x128xf32, #tpu.memory_space<vmem>>, vector<1x128xf32>
    %104 = vector.broadcast %103 : vector<1x128xf32> to vector<256x128xf32>
    %105 = arith.addf %102, %104 : vector<256x128xf32>
    %106 = arith.addf %105, %1 : vector<256x128xf32>
    %cst_44 = arith.constant 0.000000e+00 : f32
    %107 = vector.broadcast %cst_44 : f32 to vector<256x128xf32>
    %108 = arith.maximumf %106, %107 : vector<256x128xf32>
    %109 = vector.shape_cast %108 : vector<256x128xf32> to vector<1x16x16x128xf32>
    %c0_45 = arith.constant 0 : index
    %c0_46 = arith.constant 0 : index
    %c0_47 = arith.constant 0 : index
    %c0_48 = arith.constant 0 : index
    %110 = vector.load %arg11[%c0_45, %c0_46, %c0_47, %c0_48] : memref<1x16x16x128xf32, #tpu.memory_space<vmem>>, vector<1x16x16x128xf32>
    tpu.vector_store %arg11[%c0_45, %c0_46, %c0_47, %c0_48], %109 {strides = array<i32>} : memref<1x16x16x128xf32, #tpu.memory_space<vmem>>, vector<1x16x16x128xf32>,
    return
  }
  func.func @transform_0(%arg0: i32) -> (i32, i32, i32, i32) {
    %c0_i32 = arith.constant 0 : i32
    %c0_i32_0 = arith.constant 0 : i32
    %c0_i32_1 = arith.constant 0 : i32
    %c0_i32_2 = arith.constant 0 : i32
    return %arg0, %c0_i32, %c0_i32_0, %c0_i32_1 : i32, i32, i32, i32
  }
  func.func @transform_1(%arg0: i32) -> (i32, i32) {
    %c0_i32 = arith.constant 0 : i32
    %c0_i32_0 = arith.constant 0 : i32
    %c0_i32_1 = arith.constant 0 : i32
    return %c0_i32, %c0_i32_0 : i32, i32
  }
  func.func @transform_2(%arg0: i32) -> (i32, i32) {
    %c0_i32 = arith.constant 0 : i32
    %c0_i32_0 = arith.constant 0 : i32
    %c0_i32_1 = arith.constant 0 : i32
    return %c0_i32, %c0_i32_0 : i32, i32
  }
  func.func @transform_3(%arg0: i32) -> (i32, i32) {
    %c0_i32 = arith.constant 0 : i32
    %c0_i32_0 = arith.constant 0 : i32
    %c0_i32_1 = arith.constant 0 : i32
    return %c0_i32, %c0_i32_0 : i32, i32
  }
  func.func @transform_4(%arg0: i32) -> (i32, i32) {
    %c0_i32 = arith.constant 0 : i32
    %c0_i32_0 = arith.constant 0 : i32
    %c0_i32_1 = arith.constant 0 : i32
    return %c0_i32, %c0_i32_0 : i32, i32
  }
  func.func @transform_5(%arg0: i32) -> (i32, i32) {
    %c0_i32 = arith.constant 0 : i32
    %c0_i32_0 = arith.constant 0 : i32
    %c0_i32_1 = arith.constant 0 : i32
    return %c0_i32, %c0_i32_0 : i32, i32
  }
  func.func @transform_6(%arg0: i32) -> (i32, i32) {
    %c0_i32 = arith.constant 0 : i32
    %c0_i32_0 = arith.constant 0 : i32
    %c0_i32_1 = arith.constant 0 : i32
    return %c0_i32, %c0_i32_0 : i32, i32
  }
  func.func @transform_7(%arg0: i32) -> (i32, i32) {
    %c0_i32 = arith.constant 0 : i32
    %c0_i32_0 = arith.constant 0 : i32
    %c0_i32_1 = arith.constant 0 : i32
    return %c0_i32, %c0_i32_0 : i32, i32
  }
  func.func @transform_8(%arg0: i32) -> (i32, i32) {
    %c0_i32 = arith.constant 0 : i32
    %c0_i32_0 = arith.constant 0 : i32
    %c0_i32_1 = arith.constant 0 : i32
    return %c0_i32, %c0_i32_0 : i32, i32
  }
  func.func @transform_9(%arg0: i32) -> (i32, i32) {
    %c0_i32 = arith.constant 0 : i32
    %c0_i32_0 = arith.constant 0 : i32
    %c0_i32_1 = arith.constant 0 : i32
    return %c0_i32, %c0_i32_0 : i32, i32
  }
  func.func @transform_10(%arg0: i32) -> (i32, i32, i32, i32) {
    %c0_i32 = arith.constant 0 : i32
    %c0_i32_0 = arith.constant 0 : i32
    %c0_i32_1 = arith.constant 0 : i32
    %c0_i32_2 = arith.constant 0 : i32
    return %arg0, %c0_i32, %c0_i32_0, %c0_i32_1 : i32, i32, i32, i32
  }
}

</mosaic_0001>

<bundles_post_ra>
// kernel: tpu_custom_call.1
= control target key start
LH: loop header
LB: loop body
LE: loop exit
PB: predicated region body
PF: predicated region fallthrough
CT: control target
= control target key end

     0   :  { %15 = vsyncpa [#allocation3], 0  ;;  %s5913_s0 = inlined_call_operand.hbm [shape: f32[2,16,16,128], index: 0, kind: input, shape index: {}]   ;;  %s5914_s1 = inlined_call_operand.vmem [shape: bf16[128,4], index: 1, kind: input, shape index: {}]   ;;  %s5915_s2 = inlined_call_operand.vmem [shape: f32[1,4], index: 2, kind: input, shape index: {}]   ;;  %s5916_s3 = inlined_call_operand.vmem [shape: f32[1,4], index: 3, kind: input, shape index: {}]   ;;  %s5917_s4 = inlined_call_operand.vmem [shape: bf16[36,4], index: 4, kind: input, shape index: {}]   ;;  %s5918_s5 = inlined_call_operand.vmem [shape: f32[1,4], index: 5, kind: input, shape index: {}]   ;;  %s5919_s6 = inlined_call_operand.vmem [shape: f32[1,4], index: 6, kind: input, shape index: {}]   ;;  %s5920_s7 = inlined_call_operand.vmem [shape: bf16[4,128], index: 7, kind: input, shape index: {}]   ;;  %s5921_s8 = inlined_call_operand.vmem [shape: f32[1,128], index: 8, kind: input, shape index: {}]   ;;  %s5922_s9 = inlined_call_operand.vmem [shape: f32[1,128], index: 9, kind: input, shape index: {}]   ;;  %s5923_s10 = inlined_call_operand.hbm [shape: f32[2,16,16,128], index: 10, kind: output, shape index: {}]  }
   0x1   :  { %17 = vsyncpa [#allocation3 + $0x1], 0 }
   0x2   :  { %18 = vsyncpa [#allocation4], 0 }
   0x3   :  { %20 = vsyncpa [#allocation4 + $0x1], 0  ;;  %s4068_s13 = smov 0   ;;  %s4070_s14 = smov 0  }
   0x4   :  { %s4072_s15 = smov 0   ;;  %s4074_s16 = smov 0  }
   0x5 LB: > { %5958 = sst [smem:[#allocation8_spill]] %s3993_s15  ;;  %s4089_s17 = sadd.s32 4294967295, %s3997_s16   ;;  %s3997_s16 = sphi %s4074_s16, %s6033_s16   ;;  %s3993_s15 = sphi %s4072_s15, %s6035_s15   ;;  %s3989_s14 = sphi %s4070_s14, %s6037_s14   ;;  %s3985_s13 = sphi %s4068_s13, %s6036_s13  }
   0x6   : > { %s2933_s18 = sadd.s32 4294967294, %s3997_s16   ;;  %s4093_s19 = sadd.s32 1, %s3997_s16  }
   0x7   : > { %5959 = sst [smem:[#allocation9_spill]] %s4093_s19  ;;  %s33_s20 = sadd.s32 1, %s3993_s15 }
   0x8   : > { %s30_s21 = ssub.s32 %s3997_s16, %s4093_s19  ;;  %p40_p0 = scmp.ne.s32.totalorder %s3993_s15, %s3989_s14 }
   0x9   : > { %p31_p1 = scmp.eq.s32.totalorder %s30_s21, 0  ;;  %p41_p2 = scmp.eq.s32.totalorder %s3997_s16, 0 }
   0xa   : > { %p46_p3 = scmp.ne.s32.totalorder %s3989_s14, %s3985_s13  ;;  %p47_p4 = scmp.eq.s32.totalorder %s4089_s17, 0 }
   0xb   : > { %s4105_s22 = scalar_select %p31_p1, %s3993_s15, %s33_s20  }
   0xc   : > { %p4107_p5 = por %p41_p2, %p40_p0  ;;  %p4111_p6 = por %p47_p4, %p46_p3 }
   0xd   : > { %5960 = sst [smem:[#allocation10_spill]] %s4105_s22  ;;  %p259_p7 = scmp.eq.s32.totalorder %s4089_s17, 1 }
   0xe   : > { %s5962_s24 = scalar_select %p4111_p6, 1, 0 }
   0xf   : > { %p265_p8 = scmp.eq.s32.totalorder %s2933_s18, 1  ;;  %p3199_p10 = scmp.lt.s32.totalorder %s3997_s16, 2 }
  0x10   : > { %p4118_p11 = por %p259_p7, %p40_p0  ;;  %s312_s27 = sand.u32 1, %s3993_s15  }
  0x11   : > { %p4122_p12 = por %p265_p8, %p46_p3  ;;  %s2996_s28 = sshll.u32 %s3997_s16, 12 }
  0x12   : > { %s5963_s25 = scalar_select %p4118_p11, 1, 0 }
  0x13   : > { %s5964_s26 = scalar_select %p4122_p12, 1, 0 }
  0x14   : > { %s2936_s29 = sshll.u32 %s312_s27, 8  ;;  %s4131_s12 = scalar_lea.hbm %s5913_s0, %s2996_s28 }
  0x15   : > { %s316_s18 = scalar_lea.vmem [#allocation2], %s2936_s29  ;;  %p4135_p13 = pnand %p3199_p10, %p4107_p5 }
  0x16   : > { %s323_s20 = sshll.u32 %s316_s18, 4  ;;  %s4141_s22 = scalar_lea.sflag [#allocation3], %s312_s27  ;;  %s4139_s20 = int_to_ptr.vmem [resolvable:$true] %s323_s20 }
  0x17   : > { %s3905_s15 = scalar_lea.hbm %s4131_s12, 4096  ;;  %p3907_p1 = pneg %p4135_p13 }
  0x18   : > { %p3906_p0 = scmp.ne.s32.totalorder %s4131_s12, %s3905_s15  ;;  %s3910_s29 = scalar_lea.hbm %s5913_s0, 8192 }
  0x19   : > { %p3911_p4 = scmp.lt.s32.totalorder %s4131_s12, %s5913_s0  ;;  %p3912_p5 = scmp.lt.s32.totalorder %s3910_s29, %s3905_s15 }
  0x1a   : > { %p3908_p2 = pnand %p3907_p1, %p3906_p0 }
  0x1b   : > { %p3913_p7 = por %p3912_p5, %p3911_p4 }
  0x1c   : > { %p3909_p3 = pneg %p3908_p2 }
  0x1e   : > { %p3914_p8 = pnand %p3913_p7, %p3909_p3 }
  0x20   : > { %3917 = shalt.err (!%p3914_p8)
}
  0x21   : > { %s3918_s27 = scalar_lea.vmem %s4139_s20, 4096  ;;  %s3999_s18 = smov [#allocation2]  }
  0x22   : > { %p3919_p10 = scmp.ne.s32.totalorder %s4139_s20, %s3918_s27  ;;  %s3923_s19 = sshll.u32 %s3999_s18, 4  ;;  %s3924_s19 = int_to_ptr.vmem [resolvable:$false] %s3923_s19 }
  0x23   : > { %s3925_s28 = scalar_lea.vmem %s3924_s19, 8192  ;;  %p3926_p2 = scmp.lt.s32.totalorder %s4139_s20, %s3924_s19 }
  0x24   : > { %p3921_p9 = pnand %p3919_p10, %p3907_p1  ;;  %p3927_p12 = scmp.lt.s32.totalorder %s3925_s28, %s3918_s27 }
  0x26   : > { %p3922_p0 = pneg %p3921_p9  ;;  %p3928_p11 = por %p3927_p12, %p3926_p2 }
  0x28   : > { %p3929_p6 = pnand %p3928_p11, %p3922_p0 }
  0x2a   : > { %3932 = shalt.err (!%p3929_p6)
}
  0x2b   : > { %s4000_s15 = smov 128   ;;  %s4001_s30 = smov 8  }
  0x2c   : > { %3194 = dma.hbm_to_vmem [thread:$0]  (!%p4135_p13), %s4131_s12, 4096, %s4139_s20, %s4141_s22, %s4000_s15, %s4000_s15, %s4001_s30  }
  0x2d   : > { %p2939_p9 = scmp.ge.s32.totalorder %s3997_s16, 1  ;;  %p331_p1 = scmp.lt.s32.totalorder %s3997_s16, 3 }
  0x2f   : > { %p332_p3 = pnand %p2939_p9, %p331_p1 }
  0x31   : > { %335 = sbr.rel (%p332_p3) target bundleno = 1096 (0x448), region = 60 }
  0x36   : > { %s4165_s19 = sand.u32 1, %s3989_s14   ;;  %p5966_p6 = scmp.ne.s32.totalorder %s5962_s24, 0 }
  0x37   : > { %s2940_s29 = sshll.u32 %s4165_s19, 8  ;;  %s338_s23 = scalar_lea.sflag [#allocation3], %s4165_s19 }
  0x38   : > { %s4171_s11 = scalar_lea.vmem [#allocation2], %s2940_s29 }
  0x39   : > { %3976 = dma.done.wait (%p5966_p6), %s338_s23, 4096  }
  0x3a   : > { %3978 = vsyncadd (%p5966_p6), %s338_s23, 4294963200  ;;  %v3860_v0 = vld [vmem:[%s5914_s1 + $0x38] sm:$0xff]   ;;  %v3861_v1 = vld [vmem:[%s5914_s1 + $0x30] sm:$0xff]   ;;  %v762_v62 = vlaneseq  ;;  %s4003_s30 = smov 4   ;;  %s4004_s23 = smov 16   ;;  %vm2168_vm4 = vcmask 1041408  }
  0x3b   : > { %3058 = vmatprep.subr.bf16.mxu0 %v3860_v0  ;;  %v3862_v2 = vld [vmem:[%s5914_s1 + $0x28] sm:$0xff]   ;;  %v3863_v3 = vld [vmem:[%s5914_s1 + $0x20] sm:$0xff]   ;;  %v3864_v7 = vld [vmem:[%s5914_s1 + $0x18] sm:$0xff]   ;;  %s4005_s22 = smov 28   ;;  %s4006_s12 = smov 8   ;;  %vm1821_vm5 = vcmask 31744  }
  0x3c   : > { %3059 = vmatpush3.bf16.msra.mxu0 %v3860_v0  ;;  %v379_v4 = vld [vmem:[%s4171_s11] sm:$0xff]  ;;  %v380_v5 = vld [vmem:[%s4171_s11 + $0x8] sm:$0xff]  ;;  %v3865_v8 = vld [vmem:[%s5914_s1 + $0x10] sm:$0xff]   ;;  %s4007_s20 = smov 12   ;;  %s4008_s21 = smov 20   ;;  %vm1853_vm6 = vcmask 64512  }
  0x3d   : > { %3060 = vmatprep.subr.bf16.mxu0 %v3861_v1  ;;  %v411_v6 = vpack.c.bf16 %v380_v5, %v379_v4  ;;  %v3866_v9 = vld [vmem:[%s5914_s1 + $0x8] sm:$0xff]   ;;  %v3867_v10 = vld [vmem:[%s5914_s1] sm:$0xff]   ;;  %v381_v11 = vld [vmem:[%s4171_s11 + $0x10] sm:$0xff]  ;;  %s4009_s27 = smov 24   ;;  %s4010_s18 = smov 32   ;;  %vm1885_vm7 = vcmask 97280  }
  0x3e   : > { %v382_v12 = vld [vmem:[%s4171_s11 + $0x18] sm:$0xff]  ;;  %v383_v13 = vld [vmem:[%s4171_s11 + $0x20] sm:$0xff]  ;;  %v384_v14 = vld [vmem:[%s4171_s11 + $0x28] sm:$0xff]  ;;  %vm1918_vm8 = vcmask 130048   ;;  %vm1951_vm9 = vcmask 162816   ;;  %vm1984_vm10 = vcmask 195584  }
  0x3f   : > { %3074 = vmatprep.mubr.bf16.mxu0 %v411_v6  ;;  %v412_v15 = vpack.c.bf16 %v382_v12, %v381_v11  ;;  %v413_v16 = vpack.c.bf16 %v384_v14, %v383_v13  ;;  %v385_v17 = vld [vmem:[%s4171_s11 + $0x30] sm:$0xff]  ;;  %v386_v18 = vld [vmem:[%s4171_s11 + $0x38] sm:$0xff]  ;;  %v387_v19 = vld [vmem:[%s4171_s11 + $0x40] sm:$0xff]  ;;  %v5929_v12 = vmov 0.0   ;;  %vm2017_vm11 = vcmask 228352   ;;  %p6030_p12 = scmp.ne.s32.totalorder %s5963_s25, 0 }
  0x40   : > { %3061 = vmatpush3.bf16.msra.mxu0 %v3861_v1  ;;  %v388_v20 = vld [vmem:[%s4171_s11 + $0x48] sm:$0xff]  ;;  %v414_v21 = vpack.c.bf16 %v386_v18, %v385_v17  ;;  %v389_v23 = vld [vmem:[%s4171_s11 + $0x50] sm:$0xff]  ;;  %v390_v24 = vld [vmem:[%s4171_s11 + $0x58] sm:$0xff]  ;;  %vm2050_vm12 = vcmask 261120   ;;  %vm2119_vm13 = vcmask 293888  }
  0x41   : > { %3062 = vmatprep.subr.bf16.mxu0 %v3862_v2  ;;  %v415_v22 = vpack.c.bf16 %v388_v20, %v387_v19  ;;  %v391_v25 = vld [vmem:[%s4171_s11 + $0x60] sm:$0xff]  ;;  %v392_v26 = vld [vmem:[%s4171_s11 + $0x68] sm:$0xff]  ;;  %v416_v27 = vpack.c.bf16 %v390_v24, %v389_v23  ;;  %v393_v29 = vld [vmem:[%s4171_s11 + $0x70] sm:$0xff] }
  0x42   : > { %v417_v28 = vpack.c.bf16 %v392_v26, %v391_v25  ;;  %v394_v30 = vld [vmem:[%s4171_s11 + $0x78] sm:$0xff]  ;;  %v395_v31 = vld [vmem:[%s4171_s11 + $0x80] sm:$0xff]  ;;  %v396_v32 = vld [vmem:[%s4171_s11 + $0x88] sm:$0xff] }
  0x43   : > { %v418_v33 = vpack.c.bf16 %v394_v30, %v393_v29  ;;  %v419_v34 = vpack.c.bf16 %v396_v32, %v395_v31  ;;  %v397_v35 = vld [vmem:[%s4171_s11 + $0x90] sm:$0xff]  ;;  %v398_v36 = vld [vmem:[%s4171_s11 + $0x98] sm:$0xff]  ;;  %v399_v37 = vld [vmem:[%s4171_s11 + $0xa0] sm:$0xff] }
  0x44   : > { %3063 = vmatpush3.bf16.msra.mxu0 %v3862_v2  ;;  %v400_v38 = vld [vmem:[%s4171_s11 + $0xa8] sm:$0xff]  ;;  %v420_v39 = vpack.c.bf16 %v398_v36, %v397_v35  ;;  %v401_v41 = vld [vmem:[%s4171_s11 + $0xb0] sm:$0xff]  ;;  %v402_v42 = vld [vmem:[%s4171_s11 + $0xb8] sm:$0xff] }
  0x45   : > { %3064 = vmatprep.subr.bf16.mxu0 %v3863_v3  ;;  %v421_v40 = vpack.c.bf16 %v400_v38, %v399_v37  ;;  %v403_v43 = vld [vmem:[%s4171_s11 + $0xc0] sm:$0xff]  ;;  %v404_v44 = vld [vmem:[%s4171_s11 + $0xc8] sm:$0xff]  ;;  %v422_v45 = vpack.c.bf16 %v402_v42, %v401_v41  ;;  %v405_v47 = vld [vmem:[%s4171_s11 + $0xd0] sm:$0xff] }
  0x46   : > { %v423_v46 = vpack.c.bf16 %v404_v44, %v403_v43  ;;  %v406_v48 = vld [vmem:[%s4171_s11 + $0xd8] sm:$0xff]  ;;  %v407_v49 = vld [vmem:[%s4171_s11 + $0xe0] sm:$0xff]  ;;  %v408_v50 = vld [vmem:[%s4171_s11 + $0xe8] sm:$0xff] }
  0x47   : > { %v424_v51 = vpack.c.bf16 %v406_v48, %v405_v47  ;;  %v425_v52 = vpack.c.bf16 %v408_v50, %v407_v49  ;;  %v409_v53 = vld [vmem:[%s4171_s11 + $0xf0] sm:$0xff]  ;;  %v410_v54 = vld [vmem:[%s4171_s11 + $0xf8] sm:$0xff]  ;;  %v4236_v56 = vld [vmem:[%s5915_s2] ss:$0 sm:$0xff] }
  0x48   : > { %3065 = vmatpush3.bf16.msra.mxu0 %v3863_v3  ;;  %v426_v55 = vpack.c.bf16 %v410_v54, %v409_v53  ;;  %v4242_v59 = vld [vmem:[%s5916_s3] ss:$0 sm:$0xff] }
  0x49   : > { %3066 = vmatprep.subr.bf16.mxu0 %v3864_v7 }
  0x4c   : > { %3067 = vmatpush3.bf16.msra.mxu0 %v3864_v7  ;;  %v4252_v7 = vshrl.u32 %v762_v62, 7 }
  0x4d   : > { %3068 = vmatprep.subr.bf16.mxu0 %v3865_v8 }
  0x4e   : > { %vm894_vm0 = vcmp.lt.s32.totalorder %v4252_v7, 7  ;;  %vm796_vm2 = vcmp.lt.s32.totalorder %v4252_v7, 1  ;;  %vm827_vm3 = vcmp.ge.s32.totalorder %v4252_v7, 1 }
  0x50   : > { %3069 = vmatpush3.bf16.msra.mxu0 %v3865_v8 }
  0x51   : > { %3070 = vmatprep.subr.bf16.mxu0 %v3866_v9 }
  0x54   : > { %3071 = vmatpush3.bf16.msra.mxu0 %v3866_v9 }
  0x55   : > { %3072 = vmatprep.subr.bf16.mxu0 %v3867_v10 }
  0x58   : > { %3073 = vmatpush3.bf16.msra.mxu0 %v3867_v10 }
  0x5b   : > { %3075 = vmatmul.mubr.bf16.vlgmr.msra.gmra.mxu0 %v412_v15 }
  0x5c   : > { %3078 = vmatprep.mubr.bf16.mxu0 %v413_v16  ;;  %v4264_v16 = vadd.s32 8, %v4252_v7 }
  0x5e   : > { %vm926_vm1 = vcmp.le.s32.totalorder %v4264_v16, 14 }
  0x63   : > { %3079 = vmatmul.mubr.bf16.gmra.mxu0 %v414_v21 }
  0x64   : > { %3082 = vmatprep.mubr.bf16.mxu0 %v415_v22 }
  0x6b   : > { %3083 = vmatmul.mubr.bf16.gmra.mxu0 %v416_v27 }
  0x6c   : > { %3086 = vmatprep.mubr.bf16.mxu0 %v417_v28 }
  0x73   : > { %3087 = vmatmul.mubr.bf16.gmra.mxu0 %v418_v33 }
  0x74   : > { %3090 = vmatprep.mubr.bf16.mxu0 %v419_v34 }
  0x7b   : > { %3091 = vmatmul.mubr.bf16.gmra.mxu0 %v420_v39 }
  0x7c   : > { %3094 = vmatprep.mubr.bf16.mxu0 %v421_v40 }
  0x83   : > { %3095 = vmatmul.mubr.bf16.gmra.mxu0 %v422_v45 }
  0x84   : > { %3098 = vmatprep.mubr.bf16.mxu0 %v423_v46 }
  0x8b   : > { %3099 = vmatmul.mubr.bf16.gmra.mxu0 %v424_v51 }
  0x8c   : > { %3102 = vmatprep.mubr.bf16.mxu0 %v425_v52 }
  0x93   : > { %3103 = vmatmul.mubr.bf16.gmra.mxu0 %v426_v55 }
 0x11b   : > { %v3076_v57 = vpop.f32.mrf.mxu0 }
 0x11c   : > { %v661_v58 = vmul.f32 %v3076_v57, %v4236_v56 }
 0x11d   : > { %v525_v60 = vpop.f32.mrf.mxu0 }
 0x11e   : > { %v659_v61 = vmul.f32 %v4236_v56, %v525_v60  ;;  %v700_v0 = vadd.f32 %v4242_v59, %v661_v58 }
 0x11f   : > { %v3077_v63 = vpop.f32.mrf.mxu0 }
 0x120   : > { %v698_v1 = vadd.f32 %v4242_v59, %v659_v61  ;;  %v662_v2 = vmul.f32 %v3077_v63, %v4236_v56  ;;  %v732_v9 = vmax.f32 %v700_v0, 0.0 }
 0x121   : > { %v528_v3 = vpop.f32.mrf.mxu0 }
 0x122   : > { %v4248_v4 = vmax.f32 %v698_v1, 0.0  ;;  %v701_v5 = vadd.f32 %v4242_v59, %v662_v2  ;;  %v660_v6 = vmul.f32 %v4236_v56, %v528_v3  ;;  %v865_v20 = vrot.slane %v732_v9, 1 }
 0x123   : > { %v3080_v8 = vpop.f32.mrf.mxu0  ;;  %v767_v28 = vrot.slane %v732_v9, 7 }
 0x124   : > { %v4254_v10 = vmax.f32 %v701_v5, 0.0  ;;  %v699_v11 = vadd.f32 %v4242_v59, %v660_v6  ;;  %v3245_v13 = vpack.i.bf16 %v4248_v4, %v5929_v12  ;;  %v5931_v18 = vrot.slane %v4248_v4, 1 }
 0x125   : > { %v541_v17 = vpop.f32.mrf.mxu0  ;;  %v665_v35 = vmul.f32 %v3080_v8, %v4236_v56 }
 0x126   : > { %v4259_v14 = vmax.f32 %v699_v11, 0.0  ;;  %3246 = vrot.lane.b32.xlu0 %v3245_v13, %s4003_s30  ;;  %v3250_v15 = vpack.i.bf16 %v4254_v10, %v732_v9  ;;  %v663_v22 = vmul.f32 %v4236_v56, %v541_v17  ;;  %v866_v24 = vrot.slane %v4254_v10, 1 }
 0x127   : > { %v3081_v31 = vpop.f32.mrf.mxu0  ;;  %v768_v34 = vrot.slane %v4254_v10, 7  ;;  %v704_v43 = vadd.f32 %v4242_v59, %v665_v35 }
 0x128   : > { %3251 = vrot.lane.b32.xlu1 %v3250_v15, %s4004_s23  ;;  %v864_v19 = vrot.slane %v4259_v14, 1  ;;  %v5933_v21 = vrot.slane %v4259_v14, 7  ;;  %v3260_v27 = vpack.i.bf16 %v732_v9, %v4259_v14  ;;  %v702_v30 = vadd.f32 %v4242_v59, %v663_v22 }
 0x129   : > { %v922_v33 = vsel %vm894_vm0, %v865_v20, %v866_v24  ;;  %v666_v36 = vmul.f32 %v3081_v31, %v4236_v56  ;;  %v3265_v38 = vpack.i.bf16 %v4259_v14, %v4248_v4  ;;  %v544_v41 = vpop.f32.mrf.mxu0  ;;  %v4309_v42 = vsel %vm796_vm2, %v767_v28, %v768_v34 }
 0x12a   : > { %3256 = vrot.lane.b32.xlu0 %v3250_v15, %s4005_s22  ;;  %v924_v23 = vsel %vm894_vm0, %v5931_v18, %v864_v19  ;;  %v923_v25 = vsel %vm894_vm0, %v864_v19, %v865_v20  ;;  %v824_v32 = vsel %vm796_vm2, %v5933_v21, %v767_v28  ;;  %v734_v40 = vmax.f32 %v702_v30, 0.0  ;;  %5967 = vst [vmem:[#allocation11_spill] sm:$0xff] %v4309_v42 }
 0x12b   : > { %v3270_v26 = vpack.i.bf16 %v924_v23, %v5929_v12  ;;  %v932_v29 = vsel %vm926_vm1, %v923_v25, 0.0  ;;  %v4303_v39 = vsel %vm827_vm3, %v824_v32, 0.0  ;;  %v705_v44 = vadd.f32 %v4242_v59, %v666_v36  ;;  %v3084_v61 = vpop.f32.mrf.mxu0 }
 0x12c   : > { %v3275_v37 = vpack.i.bf16 %v922_v33, %v932_v29  ;;  %v3280_v45 = vpack.i.bf16 %v4309_v42, %v4303_v39  ;;  %v3285_v46 = vpack.i.bf16 %v932_v29, %v924_v23  ;;  %v664_v47 = vmul.f32 %v4236_v56, %v544_v41 }
 0x12d   : > { %3271 = vrot.lane.b32.xlu1 %v3270_v26, %s4006_s12  ;;  %v867_v48 = vrot.slane %v734_v40, 1  ;;  %v736_v49 = vmax.f32 %v704_v43, 0.0  ;;  %v4318_v50 = vmax.f32 %v705_v44, 0.0  ;;  %v3295_v51 = vpack.i.bf16 %v734_v40, %v4254_v10  ;;  %v557_v3 = vpop.f32.mrf.mxu0 }
 0x12e   : > { %3261 = vrot.lane.b32.xlu0 %v3260_v27, %s4003_s30  ;;  %v703_v52 = vadd.f32 %v4242_v59, %v664_v47  ;;  %v769_v63 = vrot.slane %v734_v40, 7  ;;  %v667_v11 = vmul.f32 %v4236_v56, %v557_v3  ;;  %v669_v27 = vmul.f32 %v3084_v61, %v4236_v56 }
 0x12f   : > { %v921_v53 = vsel %vm894_vm0, %v866_v24, %v867_v48  ;;  %v3300_v54 = vpack.i.bf16 %v4318_v50, %v736_v49  ;;  %v869_v2 = vrot.slane %v736_v49, 1  ;;  %v870_v10 = vrot.slane %v4318_v50, 1  ;;  %v3085_v25 = vpop.f32.mrf.mxu0 }
 0x130   : > { %v735_v55 = vmax.f32 %v703_v52, 0.0  ;;  %v934_v57 = vsel %vm926_vm1, %v921_v53, 0.0  ;;  %v822_v8 = vsel %vm796_vm2, %v768_v34, %v769_v63  ;;  %v771_v15 = vrot.slane %v736_v49, 7 }
 0x131   : > { %3276 = vrot.lane.b32.xlu1 %v3275_v37, %s4006_s12  ;;  %v3310_v58 = vpack.i.bf16 %v934_v57, %v922_v33  ;;  %v4351_v17 = vsel %vm827_vm3, %v822_v8, 0.0  ;;  %v918_v20 = vsel %vm894_vm0, %v869_v2, %v870_v10  ;;  %v772_v23 = vrot.slane %v4318_v50, 7  ;;  %v560_v34 = vpop.f32.mrf.mxu0 }
 0x132   : > { %3266 = vrot.lane.b32.xlu0 %v3265_v38, %s4004_s23  ;;  %v868_v60 = vrot.slane %v735_v55, 1  ;;  %v3315_v62 = vpack.i.bf16 %v735_v55, %v734_v40  ;;  %v770_v1 = vrot.slane %v735_v55, 7  ;;  %v3325_v5 = vpack.i.bf16 %v736_v49, %v735_v55 }
 0x133   : > { %v706_v24 = vadd.f32 %v4242_v59, %v667_v11  ;;  %v670_v28 = vmul.f32 %v3085_v25, %v4236_v56  ;;  %v4369_v31 = vsel %vm796_vm2, %v771_v15, %v772_v23  ;;  %v708_v35 = vadd.f32 %v4242_v59, %v669_v27  ;;  %v3088_v49 = vpop.f32.mrf.mxu0 }
 0x134   : > { %v920_v0 = vsel %vm894_vm0, %v867_v48, %v868_v60  ;;  %v4341_v9 = vsel %vm796_vm2, %v769_v63, %v770_v1  ;;  %v919_v13 = vsel %vm894_vm0, %v868_v60, %v869_v2  ;;  %v820_v26 = vsel %vm796_vm2, %v770_v1, %v771_v15 }
 0x135   : > { %3281 = vrot.lane.b32.xlu1 %v3280_v45, %s4007_s20  ;;  %v3340_v6 = vpack.i.bf16 %v920_v0, %v934_v57  ;;  %v3335_v19 = vpack.i.bf16 %v4341_v9, %v4351_v17  ;;  %v936_v22 = vsel %vm926_vm1, %v919_v13, 0.0  ;;  %v4373_v32 = vsel %vm827_vm3, %v820_v26, 0.0  ;;  %v573_v52 = vpop.f32.mrf.mxu0 }
 0x136   : > { %3286 = vrot.lane.b32.xlu0 %v3285_v46, %s4008_s21  ;;  %v3355_v29 = vpack.i.bf16 %v918_v20, %v936_v22  ;;  %v3350_v30 = vpack.i.bf16 %v936_v22, %v920_v0  ;;  %v738_v33 = vmax.f32 %v706_v24, 0.0  ;;  %v709_v36 = vadd.f32 %v4242_v59, %v670_v28 }
 0x137   : > { %v3360_v37 = vpack.i.bf16 %v4369_v31, %v4373_v32  ;;  %v668_v38 = vmul.f32 %v4236_v56, %v560_v34  ;;  %v740_v41 = vmax.f32 %v708_v35, 0.0  ;;  %v3089_v57 = vpop.f32.mrf.mxu0  ;;  %v673_v24 = vmul.f32 %v3088_v49, %v4236_v56 }
 0x138   : > { %v871_v40 = vrot.slane %v738_v33, 1  ;;  %v4384_v43 = vmax.f32 %v709_v36, 0.0  ;;  %v3375_v44 = vpack.i.bf16 %v738_v33, %v4318_v50  ;;  %v773_v55 = vrot.slane %v738_v33, 7 }
 0x139   : > { %3296 = vrot.lane.b32.xlu1 %v3295_v51, %s4003_s30  ;;  %v873_v61 = vrot.slane %v740_v41, 1  ;;  %v576_v1 = vpop.f32.mrf.mxu0  ;;  %v775_v8 = vrot.slane %v740_v41, 7  ;;  %v674_v25 = vmul.f32 %v3089_v57, %v4236_v56  ;;  %v712_v34 = vadd.f32 %v4242_v59, %v673_v24 }
 0x13a   : > { %3291 = vrot.lane.b32.xlu0 %v3280_v45, %s4009_s27  ;;  %v707_v45 = vadd.f32 %v4242_v59, %v668_v38  ;;  %v917_v46 = vsel %vm894_vm0, %v870_v10, %v871_v40  ;;  %v3380_v47 = vpack.i.bf16 %v4384_v43, %v740_v41  ;;  %v818_v0 = vsel %vm796_vm2, %v772_v23, %v773_v55 }
 0x13b   : > { %v938_v51 = vsel %vm926_vm1, %v917_v46, 0.0  ;;  %v874_v3 = vrot.slane %v4384_v43, 1  ;;  %v4417_v10 = vsel %vm827_vm3, %v818_v0, 0.0  ;;  %v4421_v13 = vpop.f32.mrf.mxu0  ;;  %v713_v35 = vadd.f32 %v4242_v59, %v674_v25 }
 0x13c   : > { %v739_v48 = vmax.f32 %v707_v45, 0.0  ;;  %v3390_v50 = vpack.i.bf16 %v938_v51, %v918_v20  ;;  %v776_v20 = vrot.slane %v4384_v43, 7 }
 0x13d   : > { %3301 = vrot.lane.b32.xlu1 %v3300_v54, %s4004_s23  ;;  %v914_v15 = vsel %vm894_vm0, %v873_v61, %v874_v3  ;;  %v589_v28 = vpop.f32.mrf.mxu0 }
 0x13e   : > { %3306 = vrot.lane.b32.xlu0 %v3300_v54, %s4005_s22  ;;  %v872_v53 = vrot.slane %v739_v48, 1  ;;  %v3395_v54 = vpack.i.bf16 %v739_v48, %v738_v33  ;;  %v774_v60 = vrot.slane %v739_v48, 7 }
 0x13f   : > { %v4450_v38 = vpop.f32.mrf.mxu0 }
 0x140   : > { %v4407_v2 = vsel %vm796_vm2, %v773_v55, %v774_v60  ;;  %v816_v23 = vsel %vm796_vm2, %v774_v60, %v775_v8  ;;  %v3869_v60 = vld [vmem:[%s5917_s4 + $0x8] sm:$0xff]  }
 0x141   : > { %3311 = vrot.lane.b32.xlu1 %v3310_v58, %s4008_s21  ;;  %v3415_v11 = vpack.i.bf16 %v4407_v2, %v4417_v10 }
 0x142   : > { %3321 = vrot.lane.b32.xlu0 %v3310_v58, %s4010_s18  ;;  %v916_v58 = vsel %vm894_vm0, %v871_v40, %v872_v53 }
 0x143   : > { %v3420_v63 = vpack.i.bf16 %v916_v58, %v938_v51 }
 0x145   : > { %3316 = vrot.lane.b32.xlu1 %v3315_v62, %s4005_s22 }
 0x146   : > { %3331 = vrot.lane.b32.xlu0 %v3315_v62, %s4004_s23  ;;  %v3405_v62 = vpack.i.bf16 %v740_v41, %v739_v48  ;;  %v4454_v41 = vmax.f32 %v712_v34, 0.0 }
 0x148   : > { %v779_v24 = vrot.slane %v4454_v41, 7 }
 0x149   : > { %3326 = vrot.lane.b32.xlu1 %v3325_v5, %s4003_s30  ;;  %v671_v5 = vmul.f32 %v4236_v56, %v573_v52  ;;  %v3868_v52 = vld [vmem:[%s5917_s4 + $0x10] ss:$0 sps:$4 sm:$0x33]  }
 0x14a   : > { %3341 = vrot.lane.b32.xlu0 %v3340_v6, %s4006_s12  ;;  %v915_v6 = vsel %vm894_vm0, %v872_v53, %v873_v61  ;;  %3185 = vmatprep.subr.msk.bf16.mxu1 %vm2168_vm4, %v3868_v52  ;;  %v2170_v57 = vsel %vm2168_vm4, %v3868_v52, 0 }
 0x14b   : > { %v710_v22 = vadd.f32 %v4242_v59, %v671_v5  ;;  %3184 = vmatprep.subr.msk.bf16.mxu0 %vm2168_vm4, %v3868_v52  ;;  %3181 = vmatpush3.bf16.msra.mxu1 %v2170_v57 }
 0x14c   : > { %3107 = vmatpush3.bf16.msra.mxu0 %v2170_v57  ;;  %3179 = vmatprep.subr.bf16.mxu1 %v3869_v60 }
 0x14d   : > { %3336 = vrot.lane.b32.xlu1 %v3335_v19, %s4009_s27  ;;  %v742_v33 = vmax.f32 %v710_v22, 0.0  ;;  %3108 = vmatprep.subr.bf16.mxu0 %v3869_v60  ;;  %v675_v22 = vmul.f32 %v4236_v56, %v589_v28 }
 0x14e   : > { %3346 = vrot.lane.b32.xlu0 %v3335_v19, %s4007_s20  ;;  %v940_v19 = vsel %vm926_vm1, %v915_v6, 0.0 }
 0x14f   : > { %v3435_v26 = vpack.i.bf16 %v914_v15, %v940_v19  ;;  %v3430_v27 = vpack.i.bf16 %v940_v19, %v916_v58  ;;  %v875_v40 = vrot.slane %v742_v33, 1  ;;  %v3455_v45 = vpack.i.bf16 %v742_v33, %v4384_v43  ;;  %3182 = vmatpush3.bf16.msra.mxu1 %v3869_v60 }
 0x150   : > { %v777_v58 = vrot.slane %v742_v33, 7  ;;  %3109 = vmatpush3.bf16.msra.mxu0 %v3869_v60  ;;  %v714_v34 = vadd.f32 %v4242_v59, %v675_v22 }
 0x151   : > { %3356 = vrot.lane.b32.xlu1 %v3355_v29, %s4006_s12  ;;  %v4437_v29 = vsel %vm796_vm2, %v775_v8, %v776_v20  ;;  %v913_v48 = vsel %vm894_vm0, %v874_v3, %v875_v40  ;;  %v877_v3 = vrot.slane %v4454_v41, 1  ;;  %v3870_v8 = vld [vmem:[%s5917_s4] sm:$0xff]  }
 0x152   : > { %3351 = vrot.lane.b32.xlu0 %v3350_v30, %s4010_s18  ;;  %v942_v43 = vsel %vm926_vm1, %v913_v48, 0.0  ;;  %3180 = vmatprep.subr.bf16.mxu1 %v3870_v8 }
 0x153   : > { %v3470_v53 = vpack.i.bf16 %v942_v43, %v914_v15  ;;  %3110 = vmatprep.subr.bf16.mxu0 %v3870_v8  ;;  %3183 = vmatpush3.bf16.msra.mxu1 %v3870_v8 }
 0x154   : > { %3111 = vmatpush3.bf16.msra.mxu0 %v3870_v8 }
 0x155   : > { %3361 = vrot.lane.b32.xlu1 %v3360_v37, %s4007_s20 }
 0x156   : > { %3366 = vrot.lane.b32.xlu0 %v3350_v30, %s4008_s21  ;;  %v4441_v30 = vsel %vm827_vm3, %v816_v23, 0.0 }
 0x157   : > { %v3440_v36 = vpack.i.bf16 %v4437_v29, %v4441_v30 }
 0x159   : > { %3376 = vrot.lane.b32.xlu1 %v3375_v44, %s4003_s30  ;;  %v4456_v44 = vmax.f32 %v713_v35, 0.0 }
 0x15a   : > { %3371 = vrot.lane.b32.xlu0 %v3360_v37, %s4009_s27  ;;  %v672_v37 = vmul.f32 %v4236_v56, %v576_v1  ;;  %v814_v1 = vsel %vm796_vm2, %v776_v20, %v777_v58 }
 0x15b   : > { %v3460_v49 = vpack.i.bf16 %v4456_v44, %v4454_v41  ;;  %v4508_v19 = vsel %vm827_vm3, %v814_v1, 0.0  ;;  %v878_v20 = vrot.slane %v4456_v44, 1 }
 0x15c   : > { %v711_v46 = vadd.f32 %v4242_v59, %v672_v37  ;;  %v678_v37 = vmul.f32 %v4450_v38, %v4236_v56 }
 0x15d   : > { %3381 = vrot.lane.b32.xlu1 %v3380_v47, %s4004_s23 }
 0x15e   : > { %3386 = vrot.lane.b32.xlu0 %v3380_v47, %s4005_s22  ;;  %v4460_v47 = vpop.f32.mrf.mxu0  ;;  %v743_v51 = vmax.f32 %v711_v46, 0.0  ;;  %v717_v38 = vadd.f32 %v4242_v59, %v678_v37 }
 0x160   : > { %v876_v55 = vrot.slane %v743_v51, 1  ;;  %v3475_v61 = vpack.i.bf16 %v743_v51, %v742_v33  ;;  %v778_v0 = vrot.slane %v743_v51, 7  ;;  %v3485_v5 = vpack.i.bf16 %v4454_v41, %v743_v51 }
 0x161   : > { %3391 = vrot.lane.b32.xlu1 %v3390_v50, %s4008_s21  ;;  %v780_v33 = vrot.slane %v4456_v44, 7  ;;  %v4559_v57 = vmax.f32 %v717_v38, 0.0 }
 0x162   : > { %3401 = vrot.lane.b32.xlu0 %v3390_v50, %s4010_s18  ;;  %v4468_v50 = vpop.f32.mrf.mxu0  ;;  %v4504_v15 = vsel %vm796_vm2, %v777_v58, %v778_v0  ;;  %v911_v23 = vsel %vm894_vm0, %v876_v55, %v877_v3  ;;  %v812_v35 = vsel %vm796_vm2, %v778_v0, %v779_v24 }
 0x163   : > { %v3495_v25 = vpack.i.bf16 %v4504_v15, %v4508_v19  ;;  %v944_v28 = vsel %vm926_vm1, %v911_v23, 0.0  ;;  %v4539_v46 = vsel %vm796_vm2, %v779_v24, %v780_v33  ;;  %v4543_v48 = vsel %vm827_vm3, %v812_v35, 0.0 }
 0x164   : > { %v3520_v51 = vpack.i.bf16 %v4539_v46, %v4543_v48 }
 0x165   : > { %3396 = vrot.lane.b32.xlu1 %v3395_v54, %s4005_s22 }
 0x166   : > { %3411 = vrot.lane.b32.xlu0 %v3395_v54, %s4004_s23  ;;  %v4477_v54 = vpop.f32.mrf.mxu0 }
 0x169   : > { %3406 = vrot.lane.b32.xlu1 %v3405_v62, %s4003_s30  ;;  %v4487_v62 = vpop.f32.mrf.mxu0 }
 0x16a   : > { %3421 = vrot.lane.b32.xlu0 %v3420_v63, %s4006_s12  ;;  %v912_v63 = vsel %vm894_vm0, %v875_v40, %v876_v55 }
 0x16b   : > { %v3500_v6 = vpack.i.bf16 %v912_v63, %v942_v43  ;;  %v3510_v41 = vpack.i.bf16 %v944_v28, %v912_v63  ;;  %v676_v43 = vmul.f32 %v4236_v56, %v4460_v47 }
 0x16d   : > { %3416 = vrot.lane.b32.xlu1 %v3415_v11, %s4009_s27 }
 0x16e   : > { %3426 = vrot.lane.b32.xlu0 %v3415_v11, %s4007_s20  ;;  %v4500_v11 = vpop.f32.mrf.mxu0 }
 0x171   : > { %3436 = vrot.lane.b32.xlu1 %v3435_v26, %s4006_s12  ;;  %v4519_v26 = vpop.f32.mrf.mxu0 }
 0x172   : > { %3431 = vrot.lane.b32.xlu0 %v3430_v27, %s4010_s18 }
 0x175   : > { %3441 = vrot.lane.b32.xlu1 %v3440_v36, %s4007_s20 }
 0x176   : > { %3446 = vrot.lane.b32.xlu0 %v3430_v27, %s4008_s21  ;;  %v910_v27 = vsel %vm894_vm0, %v877_v3, %v878_v20 }
 0x177   : > { %v3515_v40 = vpack.i.bf16 %v910_v27, %v944_v28 }
 0x179   : > { %3456 = vrot.lane.b32.xlu1 %v3455_v45, %s4003_s30  ;;  %v4535_v45 = vpop.f32.mrf.mxu0 }
 0x17a   : > { %3451 = vrot.lane.b32.xlu0 %v3440_v36, %s4009_s27  ;;  %v677_v36 = vmul.f32 %v4421_v13, %v4236_v56 }
 0x17b   : > { %v4553_v52 = vpop.f32.mrf.mxu0 }
 0x17c   : > { %v716_v13 = vadd.f32 %v4242_v59, %v677_v36 }
 0x17d   : > { %3461 = vrot.lane.b32.xlu1 %v3460_v49, %s4004_s23  ;;  %v4565_v63 = vpop.f32.mrf.mxu0 }
 0x17e   : > { %3466 = vrot.lane.b32.xlu0 %v3460_v49, %s4005_s22  ;;  %v746_v49 = vmax.f32 %v714_v34, 0.0  ;;  %v4557_v55 = vmax.f32 %v716_v13, 0.0 }
 0x180   : > { %v3535_v60 = vpack.i.bf16 %v746_v49, %v4456_v44  ;;  %v3540_v3 = vpack.i.bf16 %v4559_v57, %v4557_v55  ;;  %v4577_v44 = vpop.f32.mrf.mxu0 }
 0x181   : > { %3471 = vrot.lane.b32.xlu1 %v3470_v53, %s4008_s21 }
 0x182   : > { %3481 = vrot.lane.b32.xlu0 %v3470_v53, %s4010_s18  ;;  %v879_v53 = vrot.slane %v746_v49, 1  ;;  %v4587_v23 = vpop.f32.mrf.mxu0 }
 0x184   : > { %v909_v0 = vsel %vm894_vm0, %v878_v20, %v879_v53  ;;  %v3105_v36 = vpop.f32.mrf.mxu0 }
 0x185   : > { %3476 = vrot.lane.b32.xlu1 %v3475_v61, %s4005_s22  ;;  %v690_v13 = vmul.f32 %v3105_v36, %v4236_v56 }
 0x186   : > { %3491 = vrot.lane.b32.xlu0 %v3475_v61, %s4004_s23  ;;  %v715_v61 = vadd.f32 %v4242_v59, %v676_v43 }
 0x189   : > { %3486 = vrot.lane.b32.xlu1 %v3485_v5, %s4003_s30  ;;  %v747_v5 = vmax.f32 %v715_v61, 0.0  ;;  %v679_v61 = vmul.f32 %v4236_v56, %v4477_v54 }
 0x18a   : > { %3501 = vrot.lane.b32.xlu0 %v3500_v6, %s4006_s12  ;;  %v946_v6 = vsel %vm926_vm1, %v909_v0, 0.0 }
 0x18b   : > { %v3550_v20 = vpack.i.bf16 %v946_v6, %v910_v27  ;;  %v880_v24 = vrot.slane %v747_v5, 1  ;;  %v3555_v35 = vpack.i.bf16 %v747_v5, %v746_v49 }
 0x18d   : > { %3496 = vrot.lane.b32.xlu1 %v3495_v25, %s4009_s27  ;;  %v908_v37 = vsel %vm894_vm0, %v879_v53, %v880_v24 }
 0x18e   : > { %3506 = vrot.lane.b32.xlu0 %v3495_v25, %s4007_s20  ;;  %v781_v25 = vrot.slane %v746_v49, 7  ;;  %v3565_v49 = vpack.i.bf16 %v4557_v55, %v747_v5  ;;  %v3580_v43 = vpack.i.bf16 %v908_v37, %v946_v6 }
 0x190   : > { %v810_v27 = vsel %vm796_vm2, %v780_v33, %v781_v25  ;;  %v882_v33 = vrot.slane %v4559_v57, 1 }
 0x191   : > { %3516 = vrot.lane.b32.xlu1 %v3515_v40, %s4006_s12  ;;  %v782_v40 = vrot.slane %v747_v5, 7  ;;  %v729_v5 = vadd.f32 %v4242_v59, %v690_v13 }
 0x192   : > { %3511 = vrot.lane.b32.xlu0 %v3510_v41, %s4010_s18 }
 0x193   : > { %v4610_v53 = vsel %vm796_vm2, %v781_v25, %v782_v40  ;;  %v4647_v13 = vmax.f32 %v729_v5, 0.0 }
 0x194   : > { %5970 = vst [vmem:[#allocation14_spill] sm:$0xff] %v4610_v53 }
 0x195   : > { %3521 = vrot.lane.b32.xlu1 %v3520_v51, %s4007_s20 }
 0x196   : > { %3526 = vrot.lane.b32.xlu0 %v3510_v41, %s4008_s21  ;;  %v881_v41 = vrot.slane %v4557_v55, 1 }
 0x198   : > { %v4561_v58 = vpop.permute.xlu0 %3246  ;;  %v907_v0 = vsel %vm894_vm0, %v880_v24, %v881_v41  ;;  %v4633_v54 = vsel %vm894_vm0, %v881_v41, %v882_v33  ;;  %v5932_v24 = vrot.slane %v4559_v57, 7  ;;  %v682_v41 = vmul.f32 %v4487_v62, %v4236_v56 }
 0x199   : > { %3536 = vrot.lane.b32.xlu1 %v3535_v60, %s4003_s30  ;;  %v4614_v60 = vsel %vm827_vm3, %v810_v27, 0.0  ;;  %v681_v27 = vmul.f32 %v4468_v50, %v4236_v56 }
 0x19a   : > { %v4568_v47 = vpop.permute.xlu1 %3251  ;;  %3531 = vrot.lane.b32.xlu0 %v3520_v51, %s4009_s27  ;;  %5971 = vst [vmem:[#allocation15_spill] sm:$0xff] %v4614_v60  ;;  %v3575_v25 = vpack.i.bf16 %v4610_v53, %v4614_v60 }
 0x19b   : > { %v720_v5 = vadd.f32 %v4242_v59, %v681_v27  ;;  %v5978_v27 = vrot.slane %v4647_v13, 7  ;;  %v3254_v60 = vunpack.i.h.bf16 %v4568_v47 }
 0x19c   : > { %v4573_v1 = vpop.permute.xlu0 %3256 }
 0x19d   : > { %3541 = vrot.lane.b32.xlu1 %v3540_v3, %s4004_s23 }
 0x19e   : > { %3546 = vrot.lane.b32.xlu0 %v3540_v3, %s4005_s22  ;;  %v783_v3 = vrot.slane %v4557_v55, 7  ;;  %v718_v55 = vadd.f32 %v4242_v59, %v679_v61 }
 0x19f   : > { %v4583_v8 = vpop.permute.xlu1 %3271 }
 0x1a0   : > { %v4585_v22 = vpop.permute.xlu0 %3261  ;;  %v808_v36 = vsel %vm796_vm2, %v782_v40, %v783_v3  ;;  %v4658_v40 = vsel %vm796_vm2, %v783_v3, %v5932_v24  ;;  %v4664_v62 = vmax.f32 %v718_v55, 0.0  ;;  %v3249_v24 = vunpack.i.h.bf16 %v4561_v58 }
 0x1a1   : > { %3551 = vrot.lane.b32.xlu1 %v3550_v20, %s4008_s21  ;;  %5974 = vst [vmem:[#allocation18_spill] sm:$0xff] %v4658_v40  ;;  %v4662_v50 = vsel %vm827_vm3, %v808_v36, 0.0  ;;  %v3263_v21 = vunpack.i.l.bf16 %v4585_v22 }
 0x1a2   : > { %3561 = vrot.lane.b32.xlu0 %v3550_v20, %s4010_s18  ;;  %5975 = vst [vmem:[#allocation19_spill] sm:$0xff] %v4662_v50  ;;  %v3600_v36 = vpack.i.bf16 %v4658_v40, %v4662_v50  ;;  %v3615_v18 = vpack.i.bf16 %v4664_v62, %v4559_v57 }
 0x1a3   : > { %v4591_v28 = vpop.permute.xlu1 %3276 }
 0x1a4   : > { %v4593_v34 = vpop.permute.xlu0 %3266 }
 0x1a5   : > { %5968 = vst [vmem:[#allocation12_spill] sm:$0xff] %v4593_v34  ;;  %3556 = vrot.lane.b32.xlu1 %v3555_v35, %s4005_s22 }
 0x1a6   : > { %3571 = vrot.lane.b32.xlu0 %v3555_v35, %s4004_s23  ;;  %v948_v35 = vsel %vm926_vm1, %v907_v0, 0.0 }
 0x1a7   : > { %v4603_v38 = vpop.permute.xlu1 %3281  ;;  %v3595_v61 = vpack.i.bf16 %v4633_v54, %v948_v35  ;;  %v3590_v0 = vpack.i.bf16 %v948_v35, %v908_v37  ;;  %v721_v37 = vadd.f32 %v4242_v59, %v682_v41  ;;  %v765_v41 = vrot.slane %v4248_v4, 7 }
 0x1a8   : > { %v4605_v51 = vpop.permute.xlu0 %3286  ;;  %v3284_v40 = vunpack.i.h.bf16 %v4603_v38  ;;  %v3283_v50 = vunpack.i.l.bf16 %v4603_v38 }
 0x1a9   : > { %5969 = vst [vmem:[#allocation13_spill] sm:$0xff] %v4605_v51  ;;  %3566 = vrot.lane.b32.xlu1 %v3565_v49, %s4003_s30 }
 0x1aa   : > { %3581 = vrot.lane.b32.xlu0 %v3580_v43, %s4006_s12 }
 0x1ab   : > { %v4625_v6 = vpop.permute.xlu1 %3296 }
 0x1ac   : > { %v4627_v20 = vpop.permute.xlu0 %3291 }
 0x1ad   : > { %5972 = vst [vmem:[#allocation16_spill] sm:$0xff] %v4627_v20  ;;  %3576 = vrot.lane.b32.xlu1 %v3575_v25, %s4009_s27 }
 0x1ae   : > { %3586 = vrot.lane.b32.xlu0 %v3575_v25, %s4007_s20  ;;  %v680_v25 = vmul.f32 %v4236_v56, %v4500_v11  ;;  %v4685_v11 = vmax.f32 %v721_v37, 0.0  ;;  %v3274_v37 = vunpack.i.h.bf16 %v4583_v8 }
 0x1af   : > { %v4649_v49 = vpop.permute.xlu1 %3301 }
 0x1b0   : > { %v4651_v43 = vpop.permute.xlu0 %3306  ;;  %v719_v12 = vadd.f32 %v4242_v59, %v680_v25  ;;  %v3278_v25 = vunpack.i.l.bf16 %v4591_v28 }
 0x1b1   : > { %5973 = vst [vmem:[#allocation17_spill] sm:$0xff] %v4651_v43  ;;  %3596 = vrot.lane.b32.xlu1 %v3595_v61, %s4006_s12  ;;  %v4683_v61 = vmax.f32 %v720_v5, 0.0  ;;  %v826_v5 = vsel %vm796_vm2, %v5978_v27, %v765_v41  ;;  %v5980_v43 = vrot.slane %v4259_v14, 7 }
 0x1b2   : > { %3591 = vrot.lane.b32.xlu0 %v3590_v0, %s4010_s18  ;;  %v4710_v27 = vmax.f32 %v719_v12, 0.0  ;;  %v4720_v38 = vsel %vm827_vm3, %v826_v5, 0.0 }
 0x1b3   : > { %v4672_v35 = vpop.permute.xlu1 %3311  ;;  %v4716_v42 = vsel %vm796_vm2, %v765_v41, %v5980_v43  ;;  %v1823_v14 = vsel %vm1821_vm5, %v4720_v38, %v3249_v24 }
 0x1b4   : > { %v4674_v3 = vpop.permute.xlu0 %3321  ;;  %v1824_v12 = vsel %vm1821_vm5, %v4716_v42, %v3263_v21  ;;  %v3314_v5 = vunpack.i.h.bf16 %v4672_v35  ;;  %v3313_v53 = vunpack.i.l.bf16 %v4672_v35  ;;  %v884_v35 = vrot.slane %v4710_v27, 1 }
 0x1b5   : > { %5976 = vst [vmem:[#allocation20_spill] sm:$0xff] %v4674_v3  ;;  %3601 = vrot.lane.b32.xlu1 %v3600_v36, %s4007_s20  ;;  %v1856_v41 = vsel %vm1853_vm6, %v1824_v12, %v3278_v25 }
 0x1b6   : > { %3606 = vrot.lane.b32.xlu0 %v3590_v0, %s4008_s21  ;;  %v1889_v21 = vsel %vm1885_vm7, %v1856_v41, %v3284_v40 }
 0x1b7   : > { %v4692_v55 = vpop.permute.xlu1 %3316 }
 0x1b8   : > { %v4694_v0 = vpop.permute.xlu0 %3331 }
 0x1b9   : > { %5977 = vst [vmem:[#allocation21_spill] sm:$0xff] %v4694_v0  ;;  %3616 = vrot.lane.b32.xlu1 %v3615_v18, %s4003_s30  ;;  %v5979_v0 = vrot.slane %v4664_v62, 1 }
 0x1ba   : > { %3611 = vrot.lane.b32.xlu0 %v3600_v36, %s4009_s27 }
 0x1bb   : > { %v905_v3 = vsel %vm894_vm0, %v882_v33, %v5979_v0  ;;  %v4722_v18 = vpop.permute.xlu1 %3326  ;;  %v3620_v33 = vpack.i.bf16 %v4685_v11, %v4683_v61  ;;  %v1855_v0 = vsel %vm1853_vm6, %v1823_v14, %v3274_v37 }
 0x1bc   : > { %v4724_v36 = vpop.permute.xlu0 %3341  ;;  %v950_v43 = vsel %vm926_vm1, %v905_v3, 0.0  ;;  %v1888_v24 = vsel %vm1885_vm7, %v1855_v0, %v3283_v50  ;;  %v3253_v3 = vunpack.i.l.bf16 %v4568_v47  ;;  %v683_v50 = vmul.f32 %v4236_v56, %v4535_v45 }
 0x1bd   : > { %5981 = vst [vmem:[#allocation22_spill] sm:$0xff] %v4724_v36  ;;  %3621 = vrot.lane.b32.xlu1 %v3620_v33, %s4004_s23  ;;  %v3630_v37 = vpack.i.bf16 %v950_v43, %v4633_v54  ;;  %v785_v47 = vrot.slane %v4664_v62, 7  ;;  %v3635_v0 = vpack.i.bf16 %v4710_v27, %v4664_v62  ;;  %v3319_v45 = vunpack.i.h.bf16 %v4692_v55 }
 0x1be   : > { %3626 = vrot.lane.b32.xlu0 %v3620_v33, %s4005_s22  ;;  %v1922_v33 = vsel %vm1918_vm8, %v1889_v21, %v3254_v60  ;;  %v1921_v40 = vsel %vm1918_vm8, %v1888_v24, %v3253_v3  ;;  %v3318_v24 = vunpack.i.l.bf16 %v4692_v55 }
 0x1bf   : > { %v3337_v25 = vpop.permute.xlu1 %3336  ;;  %v1955_v54 = vsel %vm1951_vm9, %v1922_v33, %v3314_v5  ;;  %v1954_v41 = vsel %vm1951_vm9, %v1921_v40, %v3313_v53  ;;  %v5983_v53 = vrot.slane %v4664_v62, 1  ;;  %v786_v40 = vrot.slane %v4710_v27, 7 }
 0x1c0   : > { %v4744_v12 = vpop.permute.xlu0 %3346  ;;  %v3339_v14 = vunpack.i.h.bf16 %v3337_v25  ;;  %v3338_v20 = vunpack.i.l.bf16 %v3337_v25 }
 0x1c1   : > { %5982 = vst [vmem:[#allocation23_spill] sm:$0xff] %v4744_v12  ;;  %3631 = vrot.lane.b32.xlu1 %v3630_v37, %s4008_s21  ;;  %v904_v33 = vsel %vm894_vm0, %v5983_v53, %v884_v35 }
 0x1c2   : > { %3641 = vrot.lane.b32.xlu0 %v3630_v37, %s4010_s18  ;;  %v1988_v60 = vsel %vm1984_vm10, %v1955_v54, %v3339_v14  ;;  %v1987_v21 = vsel %vm1984_vm10, %v1954_v41, %v3338_v20  ;;  %v5984_v20 = vrot.slane %v4559_v57, 7  ;;  %v885_v14 = vrot.slane %v4683_v61, 1 }
 0x1c3   : > { %v4763_v3 = vpop.permute.xlu1 %3356  ;;  %v2020_v54 = vsel %vm2017_vm11, %v1987_v21, %v3318_v24  ;;  %v2021_v62 = vsel %vm2017_vm11, %v1988_v60, %v3319_v45  ;;  %v3645_v57 = vpack.i.bf16 %v4683_v61, %v4710_v27  ;;  %v4795_v60 = vsel %vm796_vm2, %v785_v47, %v786_v40 }
 0x1c4   : > { %v3352_v25 = vpop.permute.xlu0 %3351  ;;  %v806_v55 = vsel %vm796_vm2, %v5984_v20, %v785_v47  ;;  %v3660_v20 = vpack.i.bf16 %v904_v33, %v950_v43  ;;  %5988 = vst [vmem:[#allocation27_spill] sm:$0xff] %v4795_v60  ;;  %v886_v45 = vrot.slane %v4685_v11, 1  ;;  %v722_v24 = vadd.f32 %v4242_v59, %v683_v50 }
 0x1c5   : > { %v3354_v37 = vunpack.i.h.bf16 %v3352_v25  ;;  %v3353_v5 = vunpack.i.l.bf16 %v3352_v25  ;;  %3636 = vrot.lane.b32.xlu1 %v3635_v0, %s4005_s22  ;;  %v4799_v21 = vsel %vm827_vm3, %v806_v55, 0.0  ;;  %v903_v27 = vsel %vm894_vm0, %v884_v35, %v885_v14 }
 0x1c6   : > { %3651 = vrot.lane.b32.xlu0 %v3635_v0, %s4004_s23  ;;  %5989 = vst [vmem:[#allocation28_spill] sm:$0xff] %v4799_v21  ;;  %v787_v43 = vrot.slane %v4683_v61, 7  ;;  %v685_v55 = vmul.f32 %v4519_v26, %v4236_v56  ;;  %v902_v50 = vsel %vm894_vm0, %v885_v14, %v886_v45  ;;  %v788_v35 = vrot.slane %v4685_v11, 7 }
 0x1c7   : > { %v4780_v41 = vsel %vm2050_vm12, %v2020_v54, %v3353_v5  ;;  %v4783_v25 = vsel %vm2050_vm12, %v2021_v62, %v3354_v37  ;;  %v4785_v53 = vpop.permute.xlu1 %3361  ;;  %v3655_v5 = vpack.i.bf16 %v4795_v60, %v4799_v21  ;;  %v952_v54 = vsel %vm926_vm1, %v903_v27, 0.0 }
 0x1c8   : > { %5985 = vst [vmem:[#allocation24_spill] sm:$0xff] %v4780_v41  ;;  %5986 = vst [vmem:[#allocation25_spill] sm:$0xff] %v4783_v25  ;;  %v4787_v0 = vpop.permute.xlu0 %3366  ;;  %v4821_v62 = vmax.f32 %v722_v24, 0.0  ;;  %v804_v61 = vsel %vm796_vm2, %v786_v40, %v787_v43  ;;  %v684_v26 = vmul.f32 %v4236_v56, %v4565_v63  ;;  %v3670_v27 = vpack.i.bf16 %v952_v54, %v904_v33 }
 0x1c9   : > { %5987 = vst [vmem:[#allocation26_spill] sm:$0xff] %v4787_v0  ;;  %3646 = vrot.lane.b32.xlu1 %v3645_v57, %s4003_s30  ;;  %v724_v12 = vadd.f32 %v4242_v59, %v685_v55  ;;  %v4836_v24 = vsel %vm796_vm2, %v787_v43, %v788_v35  ;;  %v686_v40 = vmul.f32 %v4553_v52, %v4236_v56  ;;  %v4863_v56 = vld [vmem:[%s5916_s3] ss:$0 sm:$0xff]  ;;  %v3363_v25 = vunpack.i.l.bf16 %v4785_v53 }
 0x1ca   : > { %3661 = vrot.lane.b32.xlu0 %v3660_v20, %s4006_s12  ;;  %v3675_v20 = vpack.i.bf16 %v902_v50, %v952_v54  ;;  %5991 = vst [vmem:[#allocation30_spill] sm:$0xff] %v4836_v24  ;;  %v5946_v63 = vrot.slane %v4821_v62, 1  ;;  %v723_v33 = vadd.f32 %v4242_v59, %v684_v26  ;;  %v3299_v26 = vunpack.i.h.bf16 %v4625_v6 }
 0x1cb   : > { %v4808_v37 = vpop.permute.xlu1 %3376  ;;  %v4852_v41 = vmax.f32 %v724_v12, 0.0  ;;  %v725_v59 = vadd.f32 %v4863_v56, %v686_v40  ;;  %v3695_v12 = vpack.i.bf16 %v4821_v62, %v4685_v11  ;;  %v3364_v11 = vunpack.i.h.bf16 %v4785_v53 }
 0x1cc   : > { %v4810_v47 = vpop.permute.xlu0 %3371  ;;  %v4866_v52 = vmax.f32 %v723_v33, 0.0 }
 0x1cd   : > { %5990 = vst [vmem:[#allocation29_spill] sm:$0xff] %v4810_v47  ;;  %3656 = vrot.lane.b32.xlu1 %v3655_v5, %s4009_s27  ;;  %v5994_v60 = vrot.slane %v4852_v41, 1 }
 0x1ce   : > { %3666 = vrot.lane.b32.xlu0 %v3655_v5, %s4007_s20  ;;  %v4840_v5 = vsel %vm827_vm3, %v804_v61, 0.0  ;;  %v901_v61 = vsel %vm894_vm0, %v886_v45, %v5946_v63  ;;  %v789_v45 = vrot.slane %v4821_v62, 7  ;;  %v3344_v63 = vunpack.i.h.bf16 %v4724_v36 }
 0x1cf   : > { %v4829_v57 = vpop.permute.xlu1 %3381  ;;  %5992 = vst [vmem:[#allocation31_spill] sm:$0xff] %v4840_v5  ;;  %v3680_v43 = vpack.i.bf16 %v4836_v24, %v4840_v5  ;;  %v3358_v5 = vunpack.i.l.bf16 %v4763_v3  ;;  %v4879_v40 = vsel %vm926_vm1, %v901_v61, 0.0  ;;  %v888_v21 = vrot.slane %v4866_v52, 1 }
 0x1d0   : > { %v4831_v14 = vpop.permute.xlu0 %3386  ;;  %v1827_v61 = vsel %vm1821_vm5, %v4351_v17, %v3299_v26  ;;  %v3700_v53 = vpack.i.bf16 %v4879_v40, %v902_v50  ;;  %v4914_v50 = vld [vmem:[%s5915_s2] ss:$0 sm:$0xff] }
 0x1d1   : > { %3676 = vrot.lane.b32.xlu1 %v3675_v20, %s4006_s12  ;;  %v3328_v20 = vunpack.i.l.bf16 %v4722_v18  ;;  %v899_v17 = vsel %vm894_vm0, %v888_v21, %v5994_v60  ;;  %v3304_v60 = vunpack.i.h.bf16 %v4649_v49 }
 0x1d2   : > { %3671 = vrot.lane.b32.xlu0 %v3670_v27, %s4010_s18 }
 0x1d3   : > { %v3392_v55 = vpop.permute.xlu1 %3391  ;;  %v1828_v33 = vsel %vm1821_vm5, %v4341_v9, %v3328_v20 }
 0x1d4   : > { %v4848_v54 = vpop.permute.xlu0 %3401  ;;  %v3394_v20 = vunpack.i.h.bf16 %v3392_v55  ;;  %v3393_v36 = vunpack.i.l.bf16 %v3392_v55 }
 0x1d5   : > { %5993 = vst [vmem:[#allocation32_spill] sm:$0xff] %v4848_v54  ;;  %3681 = vrot.lane.b32.xlu1 %v3680_v43, %s4007_s20  ;;  %v4886_v54 = vmax.f32 %v725_v59, 0.0  ;;  %v1860_v59 = vsel %vm1853_vm6, %v1828_v33, %v3358_v5  ;;  %v3303_v5 = vunpack.i.l.bf16 %v4649_v49  ;;  %v3720_v33 = vpack.i.bf16 %v4716_v42, %v4720_v38 }
 0x1d6   : > { %3686 = vrot.lane.b32.xlu0 %v3670_v27, %s4008_s21  ;;  %v1893_v9 = vsel %vm1885_vm7, %v1860_v59, %v3364_v11  ;;  %v5995_v11 = vrot.slane %v4866_v52, 7  ;;  %v956_v49 = vsel %vm926_vm1, %v899_v17, 0.0 }
 0x1d7   : > { %v3397_v27 = vpop.permute.xlu1 %3396 }
 0x1d8   : > { %v4872_v24 = vpop.permute.xlu0 %3411  ;;  %v3399_v34 = vunpack.i.h.bf16 %v3397_v27 }
 0x1d9   : > { %3696 = vrot.lane.b32.xlu1 %v3695_v12, %s4003_s30  ;;  %v802_v12 = vsel %vm796_vm2, %v788_v35, %v789_v45  ;;  %v687_v35 = vmul.f32 %v4914_v50, %v4587_v23 }
 0x1da   : > { %3691 = vrot.lane.b32.xlu0 %v3680_v43, %s4009_s27  ;;  %v1859_v43 = vsel %vm1853_vm6, %v1827_v61, %v3344_v63  ;;  %v4932_v61 = vsel %vm796_vm2, %v789_v45, %v5995_v11  ;;  %v4936_v23 = vsel %vm827_vm3, %v802_v12, 0.0  ;;  %v3398_v45 = vunpack.i.l.bf16 %v3397_v27 }
 0x1db   : > { %v4894_v47 = vpop.permute.xlu1 %3406  ;;  %v1892_v26 = vsel %vm1885_vm7, %v1859_v43, %v3363_v25  ;;  %v4922_v25 = vpack.i.bf16 %v4866_v52, %v4821_v62  ;;  %5996 = vst [vmem:[#allocation33_spill] sm:$0xff] %v4932_v61  ;;  %v1926_v43 = vsel %vm1918_vm8, %v1893_v9, %v3304_v60 }
 0x1dc   : > { %v4896_v0 = vpop.permute.xlu0 %3421  ;;  %v1959_v42 = vsel %vm1951_vm9, %v1926_v43, %v3394_v20 }
 0x1dd   : > { %3701 = vrot.lane.b32.xlu1 %v3700_v53, %s4008_s21 }
 0x1de   : > { %3711 = vrot.lane.b32.xlu0 %v3700_v53, %s4010_s18  ;;  %v1925_v53 = vsel %vm1918_vm8, %v1892_v26, %v3303_v5  ;;  %v5997_v26 = vrot.slane %v4821_v62, 1  ;;  %v3715_v5 = vpack.i.bf16 %v4932_v61, %v4936_v23  ;;  %v890_v62 = vrot.slane %v4886_v54, 1 }
 0x1df   : > { %v3417_v63 = vpop.permute.xlu1 %3416  ;;  %v1958_v38 = vsel %vm1951_vm9, %v1925_v53, %v3393_v36 }
 0x1e0   : > { %v4924_v55 = vpop.permute.xlu0 %3426  ;;  %v3419_v59 = vunpack.i.h.bf16 %v3417_v63  ;;  %v3418_v51 = vunpack.i.l.bf16 %v3417_v63  ;;  %v900_v9 = vsel %vm894_vm0, %v5997_v26, %v888_v21  ;;  %v791_v21 = vrot.slane %v4852_v41, 7 }
 0x1e1   : > { %3706 = vrot.lane.b32.xlu1 %v4922_v25, %s4005_s22  ;;  %v4959_v63 = vpack.i.bf16 %v956_v49, %v900_v9  ;;  %v3735_v43 = vpack.i.bf16 %v900_v9, %v4879_v40  ;;  %v5998_v40 = vrot.slane %v4852_v41, 1  ;;  %v3429_v9 = vunpack.i.h.bf16 %v4924_v55 }
 0x1e2   : > { %3721 = vrot.lane.b32.xlu0 %v3720_v33, %s4007_s20  ;;  %v1992_v12 = vsel %vm1984_vm10, %v1959_v42, %v3419_v59  ;;  %v1991_v17 = vsel %vm1984_vm10, %v1958_v38, %v3418_v51  ;;  %v726_v33 = vadd.f32 %v4863_v56, %v687_v35  ;;  %v3730_v35 = vpack.i.bf16 %v4852_v41, %v4866_v52 }
 0x1e3   : > { %v4953_v60 = vpop.permute.xlu1 %3436  ;;  %v2024_v36 = vsel %vm2017_vm11, %v1991_v17, %v3398_v45  ;;  %v2025_v27 = vsel %vm2017_vm11, %v1992_v12, %v3399_v34  ;;  %v3329_v59 = vunpack.i.h.bf16 %v4722_v18  ;;  %v3378_v42 = vunpack.i.l.bf16 %v4808_v37 }
 0x1e4   : > { %v3432_v20 = vpop.permute.xlu0 %3431  ;;  %v4983_v26 = vmax.f32 %v726_v33, 0.0  ;;  %v898_v18 = vsel %vm894_vm0, %v5998_v40, %v890_v62  ;;  %v5999_v33 = vrot.slane %v4866_v52, 7 }
 0x1e5   : > { %v3434_v51 = vunpack.i.h.bf16 %v3432_v20  ;;  %v3433_v11 = vunpack.i.l.bf16 %v3432_v20  ;;  %3716 = vrot.lane.b32.xlu1 %v3715_v5, %s4009_s27  ;;  %v3359_v20 = vunpack.i.h.bf16 %v4763_v3  ;;  %v3740_v17 = vpack.i.bf16 %v898_v18, %v956_v49 }
 0x1e6   : > { %3726 = vrot.lane.b32.xlu0 %v4959_v63, %s4010_s18  ;;  %v800_v3 = vsel %vm796_vm2, %v5999_v33, %v791_v21 }
 0x1e7   : > { %v4968_v34 = vsel %vm2050_vm12, %v2024_v36, %v3433_v11  ;;  %v4971_v53 = vsel %vm2050_vm12, %v2025_v27, %v3434_v51  ;;  %v4980_v45 = vpop.permute.xlu1 %3441  ;;  %v3423_v36 = vunpack.i.l.bf16 %v4896_v0  ;;  %v3428_v27 = vunpack.i.l.bf16 %v4924_v55 }
 0x1e8   : > { %v3447_v12 = vpop.permute.xlu0 %3446  ;;  %v1829_v51 = vsel %vm1821_vm5, %v4373_v32, %v3329_v59  ;;  %v1830_v11 = vsel %vm1821_vm5, %v4369_v31, %v3378_v42  ;;  %v6000_v55 = vrot.slane %v4886_v54, 7  ;;  %v5015_v32 = vsel %vm827_vm3, %v800_v3, 0.0  ;;  %v640_v59 = vpop.f32.mrf.mxu0 }
 0x1e9   : > { %3731 = vrot.lane.b32.xlu1 %v3730_v35, %s4003_s30  ;;  %v1861_v52 = vsel %vm1853_vm6, %v1829_v51, %v3359_v20  ;;  %v891_v31 = vrot.slane %v4983_v26, 1  ;;  %v3449_v33 = vunpack.i.h.bf16 %v3447_v12  ;;  %v3448_v61 = vunpack.i.l.bf16 %v3447_v12 }
 0x1ea   : > { %3736 = vrot.lane.b32.xlu0 %v3735_v43, %s4006_s12  ;;  %v5009_v35 = vsel %vm796_vm2, %v791_v21, %v6000_v55  ;;  %v1862_v43 = vsel %vm1853_vm6, %v1830_v11, %v3423_v36  ;;  %v1894_v49 = vsel %vm1885_vm7, %v1861_v52, %v3428_v27  ;;  %v3414_v21 = vunpack.i.h.bf16 %v4872_v24 }
 0x1eb   : > { %v5003_v40 = vpop.permute.xlu1 %3456  ;;  %v1895_v42 = vsel %vm1885_vm7, %v1862_v43, %v3429_v9  ;;  %v3413_v20 = vunpack.i.l.bf16 %v4872_v24  ;;  %v3750_v9 = vpack.i.bf16 %v5009_v35, %v5015_v32  ;;  %v688_v27 = vmul.f32 %v4914_v50, %v640_v59 }
 0x1ec   : > { %v3452_v38 = vpop.permute.xlu0 %3451  ;;  %v897_v24 = vsel %vm894_vm0, %v890_v62, %v891_v31  ;;  %v3389_v43 = vunpack.i.h.bf16 %v4831_v14 }
 0x1ed   : > { %3741 = vrot.lane.b32.xlu1 %v3740_v17, %s4006_s12  ;;  %v3454_v36 = vunpack.i.h.bf16 %v3452_v38  ;;  %v3453_v3 = vunpack.i.l.bf16 %v3452_v38  ;;  %v1927_v12 = vsel %vm1918_vm8, %v1894_v49, %v3413_v20  ;;  %v1928_v17 = vsel %vm1918_vm8, %v1895_v42, %v3414_v21 }
 0x1ee   : > { %3746 = vrot.lane.b32.xlu0 %v3715_v5, %s4007_s20  ;;  %v1960_v5 = vsel %vm1951_vm9, %v1927_v12, %v3448_v61  ;;  %v1961_v55 = vsel %vm1951_vm9, %v1928_v17, %v3449_v33  ;;  %v3388_v61 = vunpack.i.l.bf16 %v4831_v14  ;;  %v3760_v49 = vpack.i.bf16 %v4886_v54, %v4852_v41 }
 0x1ef   : > { %v5024_v51 = vpop.permute.xlu1 %3461  ;;  %v1994_v38 = vsel %vm1984_vm10, %v1961_v55, %v3454_v36  ;;  %v1993_v52 = vsel %vm1984_vm10, %v1960_v5, %v3453_v3  ;;  %v5050_v21 = vsel %vm926_vm1, %v897_v24, 0.0  ;;  %v727_v62 = vadd.f32 %v4863_v56, %v688_v27 }
 0x1f0   : > { %v5026_v11 = vpop.permute.xlu0 %3466  ;;  %v2026_v14 = vsel %vm2017_vm11, %v1993_v52, %v3388_v61  ;;  %v2027_v20 = vsel %vm2017_vm11, %v1994_v38, %v3389_v43  ;;  %v3379_v3 = vunpack.i.h.bf16 %v4808_v37  ;;  %v3408_v12 = vunpack.i.l.bf16 %v4894_v47 }
 0x1f1   : > { %3751 = vrot.lane.b32.xlu1 %v3750_v9, %s4007_s20  ;;  %v3770_v5 = vpack.i.bf16 %v5050_v21, %v898_v18  ;;  %v3424_v24 = vunpack.i.h.bf16 %v4896_v0  ;;  %v3438_v38 = vunpack.i.l.bf16 %v4953_v60  ;;  %v5069_v52 = vmax.f32 %v727_v62, 0.0 }
 0x1f2   : > { %3756 = vrot.lane.b32.xlu0 %v4922_v25, %s4004_s23  ;;  %v3444_v43 = vunpack.i.h.bf16 %v4980_v45  ;;  %v3443_v37 = vunpack.i.l.bf16 %v4980_v45  ;;  %v1831_v18 = vsel %vm1821_vm5, %v4417_v10, %v3379_v3 }
 0x1f3   : > { %v3472_v59 = vpop.permute.xlu1 %3471  ;;  %v3785_v61 = vpack.i.bf16 %v5069_v52, %v4983_v26 }
 0x1f4   : > { %v3482_v42 = vpop.permute.xlu0 %3481  ;;  %v3473_v62 = vunpack.i.l.bf16 %v3472_v59 }
 0x1f5   : > { %v3484_v33 = vunpack.i.h.bf16 %v3482_v42  ;;  %v3483_v25 = vunpack.i.l.bf16 %v3482_v42  ;;  %3761 = vrot.lane.b32.xlu1 %v3760_v49, %s4004_s23  ;;  %v1863_v42 = vsel %vm1853_vm6, %v1831_v18, %v3424_v24 }
 0x1f6   : > { %3766 = vrot.lane.b32.xlu0 %v4959_v63, %s4008_s21  ;;  %v689_v63 = vmul.f32 %v4914_v50, %v4577_v44  ;;  %v1832_v44 = vsel %vm1821_vm5, %v4407_v2, %v3408_v12  ;;  %v1896_v10 = vsel %vm1885_vm7, %v1863_v42, %v3443_v37  ;;  %v3384_v2 = vunpack.i.h.bf16 %v4829_v57 }
 0x1f7   : > { %v2059_v36 = vsel %vm2050_vm12, %v2026_v14, %v3483_v25  ;;  %v2060_v41 = vsel %vm2050_vm12, %v2027_v20, %v3484_v33  ;;  %v3477_v17 = vpop.permute.xlu1 %3476  ;;  %v1864_v33 = vsel %vm1853_vm6, %v1832_v44, %v3438_v38  ;;  %v3474_v25 = vunpack.i.h.bf16 %v3472_v59 }
 0x1f8   : > { %v5062_v27 = vpop.permute.xlu0 %3491  ;;  %v2087_v55 = vpack.c.bf16 %v2060_v41, %v2059_v36  ;;  %v728_v45 = vadd.f32 %v4863_v56, %v689_v63  ;;  %v3383_v14 = vunpack.i.l.bf16 %v4829_v57  ;;  %v3795_v36 = vpack.i.bf16 %v4983_v26, %v4886_v54 }
 0x1f9   : > { %3771 = vrot.lane.b32.xlu1 %v3770_v5, %s4008_s21  ;;  %v966_v57 = vrot.slane %v4647_v13, 1  ;;  %v3478_v37 = vunpack.i.l.bf16 %v3477_v17 }
 0x1fa   : > { %3120 = vmatprep.mubr.msk.bf16.mxu1 %vm2119_vm13, %v2087_v55  ;;  %3776 = vrot.lane.b32.xlu0 %v3750_v9, %s4009_s27  ;;  %v1897_v9 = vsel %vm1885_vm7, %v1864_v33, %v3444_v43  ;;  %v1929_v41 = vsel %vm1918_vm8, %v1896_v10, %v3383_v14  ;;  %v5099_v59 = vmax.f32 %v728_v45, 0.0  ;;  %v3479_v43 = vunpack.i.h.bf16 %v3477_v17 }
 0x1fb   : > { %v5080_v0 = vpop.permute.xlu1 %3486  ;;  %v1930_v3 = vsel %vm1918_vm8, %v1897_v9, %v3384_v2  ;;  %v1962_v24 = vsel %vm1951_vm9, %v1929_v41, %v3473_v62  ;;  %v892_v33 = vrot.slane %v5069_v52, 1  ;;  %v6001_v14 = vrot.slane %v4248_v4, 1 }
 0x1fc   : > { %v5082_v50 = vpop.permute.xlu0 %3501  ;;  %v1963_v63 = vsel %vm1951_vm9, %v1930_v3, %v3474_v25  ;;  %v893_v9 = vrot.slane %v5099_v59, 1  ;;  %v3805_v2 = vpack.i.bf16 %v4647_v13, %v5099_v59  ;;  %v3458_v41 = vunpack.i.l.bf16 %v5003_v40 }
 0x1fd   : > { %3786 = vrot.lane.b32.xlu1 %v3785_v61, %s4005_s22  ;;  %v896_v4 = vsel %vm894_vm0, %v891_v31, %v892_v33 }
 0x1fe   : > { %3781 = vrot.lane.b32.xlu0 %v3760_v49, %s4005_s22 }
 0x1ff   : > { %v3497_v20 = vpop.permute.xlu1 %3496 }
 0x200   : > { %v3507_v56 = vpop.permute.xlu0 %3506  ;;  %v3499_v12 = vunpack.i.h.bf16 %v3497_v20  ;;  %v3498_v55 = vunpack.i.l.bf16 %v3497_v20  ;;  %v968_v20 = vsel %vm894_vm0, %v966_v57, %v6001_v14 }
 0x201   : > { %3796 = vrot.lane.b32.xlu1 %v3795_v36, %s4003_s30  ;;  %v3409_v36 = vunpack.i.h.bf16 %v4894_v47  ;;  %v6002_v47 = vrot.slane %v4886_v54, 7 }
 0x202   : > { %v1996_v49 = vsel %vm1984_vm10, %v1963_v63, %v3499_v12  ;;  %v1995_v38 = vsel %vm1984_vm10, %v1962_v24, %v3498_v55  ;;  %3791 = vrot.lane.b32.xlu0 %v3770_v5, %s4010_s18  ;;  %v793_v5 = vrot.slane %v4983_v26, 7  ;;  %v794_v63 = vrot.slane %v5069_v52, 7 }
 0x203   : > { %v5108_v18 = vpop.permute.xlu1 %3516  ;;  %v2028_v10 = vsel %vm2017_vm11, %v1995_v38, %v3478_v37  ;;  %v2029_v25 = vsel %vm2017_vm11, %v1996_v49, %v3479_v43  ;;  %v3503_v24 = vunpack.i.l.bf16 %v5082_v50  ;;  %v3509_v49 = vunpack.i.h.bf16 %v3507_v56 }
 0x204   : > { %v3512_v44 = vpop.permute.xlu0 %3511  ;;  %v3508_v38 = vunpack.i.l.bf16 %v3507_v56  ;;  %v970_v26 = vsel %vm926_vm1, %v968_v20, 0.0  ;;  %v1833_v31 = vsel %vm1821_vm5, %v4441_v30, %v3409_v36  ;;  %v1834_v56 = vsel %vm1821_vm5, %v4437_v29, %v3458_v41 }
 0x205   : > { %v3514_v45 = vunpack.i.h.bf16 %v3512_v44  ;;  %v3513_v42 = vunpack.i.l.bf16 %v3512_v44  ;;  %1062 = vrot.lane.b32.xlu1 %v5069_v52, %s4003_s30  ;;  %v798_v52 = vsel %vm796_vm2, %v6002_v47, %v793_v5  ;;  %v3825_v37 = vpack.i.bf16 %v896_v4, %v5050_v21  ;;  %s5741_s30 = scalar_lea.vmem [#allocation5], %s2940_s29  ;;  %s2997_s29 = sshll.u32 %s4089_s17, 12 }
 0x206   : > { %3801 = vrot.lane.b32.xlu0 %v3785_v61, %s4004_s23  ;;  %v3439_v61 = vunpack.i.h.bf16 %v4953_v60  ;;  %v967_v60 = vsel %vm894_vm0, %v893_v9, %v966_v57  ;;  %v5157_v44 = vsel %vm796_vm2, %v793_v5, %v794_v63  ;;  %v895_v29 = vsel %vm894_vm0, %v892_v33, %v893_v9 }
 0x207   : > { %v2061_v17 = vsel %vm2050_vm12, %v2028_v10, %v3513_v42  ;;  %v2062_v62 = vsel %vm2050_vm12, %v2029_v25, %v3514_v45  ;;  %v5128_v12 = vpop.permute.xlu1 %3521  ;;  %v1866_v45 = vsel %vm1853_vm6, %v1834_v56, %v3503_v24  ;;  %v5163_v42 = vsel %vm827_vm3, %v798_v52, 0.0 }
 0x208   : > { %v2088_v3 = vpack.c.bf16 %v2062_v62, %v2061_v17  ;;  %v3527_v55 = vpop.permute.xlu0 %3526  ;;  %v1865_v57 = vsel %vm1853_vm6, %v1833_v31, %v3439_v61  ;;  %v1899_v30 = vsel %vm1885_vm7, %v1866_v45, %v3509_v49  ;;  %v6003_v5 = vmov 0.0  }
 0x209   : > { %3806 = vrot.lane.b32.xlu1 %v3805_v2, %s4004_s23  ;;  %v1898_v10 = vsel %vm1885_vm7, %v1865_v57, %v3508_v38  ;;  %v3529_v21 = vunpack.i.h.bf16 %v3527_v55  ;;  %v3528_v25 = vunpack.i.l.bf16 %v3527_v55  ;;  %v3494_v17 = vunpack.i.h.bf16 %v5062_v27  ;;  %s2860_s23 = sshll.u32 %s5741_s30, 4  ;;  %s5868_s23 = int_to_ptr.vmem [resolvable:$true] %s2860_s23 }
 0x20a   : > { %3121 = vmatmul.mubr.msk.bf16.vlgmr.msra.gmra.mxu1 %vm2119_vm13, %v2088_v3  ;;  %3811 = vrot.lane.b32.xlu0 %v3805_v2, %s4005_s22  ;;  %v3493_v62 = vunpack.i.l.bf16 %v5062_v27  ;;  %v5178_v9 = vpack.i.bf16 %v970_v26, %v967_v60  ;;  %v3830_v3 = vpack.i.bf16 %v5157_v44, %v5163_v42  ;;  %v961_v55 = vrot.slane %v5099_v59, 7  ;;  %s3933_s17 = scalar_lea.vmem %s5868_s23, 4096 }
 0x20b   : > { %v5152_v43 = vpop.permute.xlu1 %3536  ;;  %v1932_v41 = vsel %vm1918_vm8, %v1899_v30, %v3494_v17  ;;  %v960_v24 = vsel %vm926_vm1, %v895_v29, 0.0  ;;  %v3469_v47 = vunpack.i.h.bf16 %v5026_v11  ;;  %v3468_v59 = vunpack.i.l.bf16 %v5026_v11  ;;  %p3934_p11 = scmp.ne.s32.totalorder %s5868_s23, %s3933_s17 }
 0x20c   : > { %v3532_v54 = vpop.permute.xlu0 %3531  ;;  %v1931_v36 = vsel %vm1918_vm8, %v1898_v10, %v3493_v62  ;;  %v1965_v61 = vsel %vm1951_vm9, %v1932_v41, %v3529_v21  ;;  %v3835_v56 = vpack.i.bf16 %v960_v24, %v896_v4  ;;  %v3459_v11 = vunpack.i.h.bf16 %v5003_v40 }
 0x20d   : > { %1602 = vrot.lane.b32.xlu1 %v6003_v5, %s4009_s27  ;;  %v3534_v2 = vunpack.i.h.bf16 %v3532_v54  ;;  %v3533_v14 = vunpack.i.l.bf16 %v3532_v54  ;;  %v1964_v27 = vsel %vm1951_vm9, %v1931_v36, %v3528_v25  ;;  %v3488_v29 = vunpack.i.l.bf16 %v5080_v0  ;;  %p3935_p13 = pnand %p3934_p11, %p6030_p12 }
 0x20e   : > { %3826 = vrot.lane.b32.xlu0 %v3825_v37, %s4006_s12  ;;  %v963_v37 = vsel %vm796_vm2, %v794_v63, %v961_v55  ;;  %v3504_v21 = vunpack.i.h.bf16 %v5082_v50  ;;  %v3518_v25 = vunpack.i.l.bf16 %v5108_v18  ;;  %v6004_v63 = vrot.slane %v4647_v13, 7 }
 0x20f   : > { %v5174_v20 = vpop.permute.xlu1 %3541  ;;  %v1998_v49 = vsel %vm1984_vm10, %v1965_v61, %v3534_v2  ;;  %v1997_v38 = vsel %vm1984_vm10, %v1964_v27, %v3533_v14  ;;  %v964_v62 = vsel %vm827_vm3, %v963_v37, 0.0  ;;  %v3524_v40 = vunpack.i.h.bf16 %v5128_v12  ;;  %p3936_p4 = pneg %p3935_p13 }
 0x210   : > { %v5176_v33 = vpop.permute.xlu0 %3546  ;;  %v2030_v54 = vsel %vm2017_vm11, %v1997_v38, %v3468_v59  ;;  %v2031_v16 = vsel %vm2017_vm11, %v1998_v49, %v3469_v47  ;;  %v962_v17 = vsel %vm796_vm2, %v961_v55, %v6004_v63  ;;  %v3523_v2 = vunpack.i.l.bf16 %v5128_v12 }
 0x211   : > { %3816 = vrot.lane.b32.xlu1 %v5178_v9, %s4008_s21  ;;  %v1835_v50 = vsel %vm1821_vm5, %v4508_v19, %v3459_v11  ;;  %v1836_v13 = vsel %vm1821_vm5, %v4504_v15, %v3488_v29  ;;  %v3840_v36 = vpack.i.bf16 %v962_v17, %v964_v62  ;;  %v3464_v19 = vunpack.i.h.bf16 %v5024_v51 }
 0x212   : > { %3831 = vrot.lane.b32.xlu0 %v3830_v3, %s4007_s20  ;;  %v1867_v41 = vsel %vm1853_vm6, %v1835_v50, %v3504_v21  ;;  %v1868_v12 = vsel %vm1853_vm6, %v1836_v13, %v3518_v25  ;;  %v3463_v15 = vunpack.i.l.bf16 %v5024_v51  ;;  %v3519_v62 = vunpack.i.h.bf16 %v5108_v18 }
 0x213   : > { %v3552_v52 = vpop.permute.xlu1 %3551  ;;  %v1900_v55 = vsel %vm1885_vm7, %v1867_v41, %v3523_v2 }
 0x214   : > { %v3562_v60 = vpop.permute.xlu0 %3561  ;;  %v3554_v27 = vunpack.i.h.bf16 %v3552_v52  ;;  %v3553_v61 = vunpack.i.l.bf16 %v3552_v52  ;;  %v1933_v38 = vsel %vm1918_vm8, %v1900_v55, %v3463_v15 }
 0x215   : > { %v3564_v26 = vunpack.i.h.bf16 %v3562_v60  ;;  %v3563_v31 = vunpack.i.l.bf16 %v3562_v60  ;;  %3821 = vrot.lane.b32.xlu1 %v3830_v3, %s4009_s27  ;;  %v1901_v3 = vsel %vm1885_vm7, %v1868_v12, %v3524_v40 }
 0x216   : > { %3836 = vrot.lane.b32.xlu0 %v3835_v56, %s4010_s18  ;;  %v1934_v47 = vsel %vm1918_vm8, %v1901_v3, %v3464_v19  ;;  %v1966_v52 = vsel %vm1951_vm9, %v1933_v38, %v3553_v61 }
 0x217   : > { %v2064_v57 = vsel %vm2050_vm12, %v2031_v16, %v3564_v26  ;;  %v2063_v45 = vsel %vm2050_vm12, %v2030_v54, %v3563_v31  ;;  %v3557_v30 = vpop.permute.xlu1 %3556  ;;  %v1967_v26 = vsel %vm1951_vm9, %v1934_v47, %v3554_v27  ;;  %v3248_v47 = vunpack.i.l.bf16 %v4561_v58 }
 0x218   : > { %v2089_v4 = vpack.c.bf16 %v2064_v57, %v2063_v45  ;;  %v5206_v10 = vpop.permute.xlu0 %3571  ;;  %v3558_v54 = vunpack.i.l.bf16 %v3557_v30 }
 0x219   : > { %1185 = vrot.lane.b32.xlu1 %v960_v24, %s4006_s12  ;;  %v3574_v61 = vunpack.i.h.bf16 %v5206_v10 }
 0x21a   : > { %3124 = vmatprep.mubr.msk.bf16.mxu1 %vm2119_vm13, %v2089_v4  ;;  %3846 = vrot.lane.b32.xlu0 %v3835_v56, %s4008_s21  ;;  %v3559_v56 = vunpack.i.h.bf16 %v3557_v30  ;;  %v3538_v30 = vunpack.i.l.bf16 %v5152_v43  ;;  %s5865_s21 = scalar_lea.hbm %s5923_s10, %s2997_s29 }
 0x21b   : > { %v5225_v14 = vpop.permute.xlu1 %3566 }
 0x21c   : > { %v5227_v7 = vpop.permute.xlu0 %3581 }
 0x21d   : > { %3841 = vrot.lane.b32.xlu1 %v3840_v36, %s4007_s20  ;;  %v3583_v40 = vunpack.i.l.bf16 %v5227_v7 }
 0x21e   : > { %3851 = vrot.lane.b32.xlu0 %v3840_v36, %s4009_s27  ;;  %s2847_s27 = scalar_lea.sflag [#allocation4], %s4165_s19 }
 0x21f   : > { %v3577_v24 = vpop.permute.xlu1 %3576 }
 0x220   : > { %v3587_v49 = vpop.permute.xlu0 %3586  ;;  %v3579_v59 = vunpack.i.h.bf16 %v3577_v24  ;;  %v3578_v60 = vunpack.i.l.bf16 %v3577_v24 }
 0x221   : > { %1695 = vrot.lane.b32.xlu1 %v6003_v5, %s4005_s22  ;;  %v3589_v2 = vunpack.i.h.bf16 %v3587_v49  ;;  %v3588_v50 = vunpack.i.l.bf16 %v3587_v49 }
 0x222   : > { %v2000_v31 = vsel %vm1984_vm10, %v1967_v26, %v3579_v59  ;;  %v1999_v51 = vsel %vm1984_vm10, %v1966_v52, %v3578_v60  ;;  %3856 = vrot.lane.b32.xlu0 %v5178_v9, %s4010_s18  ;;  %v3489_v9 = vunpack.i.h.bf16 %v5080_v0  ;;  %v1838_v0 = vsel %vm1821_vm5, %v4539_v46, %v3538_v30 }
 0x223   : > { %v5247_v16 = vpop.permute.xlu1 %3596  ;;  %v2032_v11 = vsel %vm2017_vm11, %v1999_v51, %v3558_v54  ;;  %v2033_v29 = vsel %vm2017_vm11, %v2000_v31, %v3559_v56  ;;  %v1870_v12 = vsel %vm1853_vm6, %v1838_v0, %v3583_v40  ;;  %v3273_v52 = vunpack.i.l.bf16 %v4583_v8  ;;  %v6005_v0 = vld [vmem:[#allocation12_spill] sm:$0xff] }
 0x224   : > { %v3592_v37 = vpop.permute.xlu0 %3591  ;;  %v1903_v18 = vsel %vm1885_vm7, %v1870_v12, %v3589_v2  ;;  %v3549_v31 = vunpack.i.h.bf16 %v5176_v33  ;;  %v3548_v51 = vunpack.i.l.bf16 %v5176_v33  ;;  %v3258_v8 = vunpack.i.l.bf16 %v4573_v1 }
 0x225   : > { %v3594_v57 = vunpack.i.h.bf16 %v3592_v37  ;;  %v3593_v45 = vunpack.i.l.bf16 %v3592_v37  ;;  %1788 = vrot.lane.b32.xlu1 %v6003_v5, %s4010_s18  ;;  %v1837_v5 = vsel %vm1821_vm5, %v4543_v48, %v3489_v9  ;;  %v3573_v48 = vunpack.i.l.bf16 %v5206_v10 }
 0x226   : > { %v1869_v41 = vsel %vm1853_vm6, %v1837_v5, %v3519_v62  ;;  %v1936_v38 = vsel %vm1918_vm8, %v1903_v18, %v3574_v61  ;;  %v3264_v37 = vunpack.i.h.bf16 %v4585_v22  ;;  %v3539_v30 = vunpack.i.h.bf16 %v5152_v43  ;;  %v6008_v61 = vld [vmem:[#allocation22_spill] sm:$0xff] }
 0x227   : > { %v2065_v4 = vsel %vm2050_vm12, %v2032_v11, %v3593_v45  ;;  %v2066_v21 = vsel %vm2050_vm12, %v2033_v29, %v3594_v57  ;;  %v5257_v63 = vpop.permute.xlu1 %3601  ;;  %v1902_v3 = vsel %vm1885_vm7, %v1869_v41, %v3588_v50  ;;  %v1822_v45 = vsel %vm1821_vm5, 0.0, %v3248_v47 }
 0x228   : > { %v2090_v25 = vpack.c.bf16 %v2066_v21, %v2065_v4  ;;  %v3607_v17 = vpop.permute.xlu0 %3606  ;;  %v1935_v49 = vsel %vm1918_vm8, %v1902_v3, %v3573_v48  ;;  %v3259_v11 = vunpack.i.h.bf16 %v4573_v1  ;;  %v3279_v21 = vunpack.i.h.bf16 %v4591_v28  ;;  %v6006_v3 = vld [vmem:[#allocation13_spill] sm:$0xff] }
 0x229   : > { %v3609_v55 = vunpack.i.h.bf16 %v3607_v17  ;;  %v3608_v27 = vunpack.i.l.bf16 %v3607_v17  ;;  %v5300_v22 = vsel %vm1853_vm6, %v1822_v45, %v3273_v52  ;;  %v1825_v2 = vsel %vm1821_vm5, %v4303_v39, %v3264_v37 }
 0x22a   : > { %3125 = vmatmul.mubr.msk.bf16.gmra.mxu1 %vm2119_vm13, %v2090_v25  ;;  %v3568_v25 = vunpack.i.l.bf16 %v5225_v14  ;;  %v3298_v28 = vunpack.i.l.bf16 %v4625_v6  ;;  %v3584_v50 = vunpack.i.h.bf16 %v5227_v7  ;;  %v3598_v5 = vunpack.i.l.bf16 %v5247_v16 }
 0x22b   : > { %v5266_v13 = vpop.permute.xlu1 %3616  ;;  %v1968_v59 = vsel %vm1951_vm9, %v1935_v49, %v3608_v27  ;;  %v1969_v60 = vsel %vm1951_vm9, %v1936_v38, %v3609_v55  ;;  %v3268_v43 = vunpack.i.l.bf16 %v6005_v0  ;;  %v3604_v41 = vunpack.i.h.bf16 %v5257_v63  ;;  %v6007_v55 = vld [vmem:[#allocation16_spill] sm:$0xff]  ;;  %v6010_v49 = vld [vmem:[#allocation14_spill] sm:$0xff] }
 0x22c   : > { %v3612_v36 = vpop.permute.xlu0 %3611  ;;  %v3603_v12 = vunpack.i.l.bf16 %v5257_v63  ;;  %v1857_v18 = vsel %vm1853_vm6, %v1825_v2, %v3279_v21  ;;  %v3289_v39 = vunpack.i.h.bf16 %v6006_v3  ;;  %v3288_v6 = vunpack.i.l.bf16 %v6006_v3 }
 0x22d   : > { %v3614_v19 = vunpack.i.h.bf16 %v3612_v36  ;;  %v3613_v15 = vunpack.i.l.bf16 %v3612_v36  ;;  %v3269_v36 = vunpack.i.h.bf16 %v6005_v0  ;;  %v3294_v7 = vunpack.i.h.bf16 %v6007_v55 }
 0x22e   : > { %v3293_v27 = vunpack.i.l.bf16 %v6007_v55  ;;  %v3343_v48 = vunpack.i.l.bf16 %v6008_v61  ;;  %v1840_v63 = vsel %vm1821_vm5, %v6010_v49, %v3568_v25  ;;  %v3543_v21 = vunpack.i.l.bf16 %v5174_v20  ;;  %v6016_v49 = vld [vmem:[#allocation26_spill] sm:$0xff] }
 0x22f   : > { %v5274_v46 = vpop.permute.xlu1 %3621  ;;  %v2002_v26 = vsel %vm1984_vm10, %v1969_v60, %v3614_v19  ;;  %v2001_v10 = vsel %vm1984_vm10, %v1968_v59, %v3613_v15  ;;  %v6009_v19 = vld [vmem:[#allocation15_spill] sm:$0xff] }
 0x230   : > { %v5276_v24 = vpop.permute.xlu0 %3626  ;;  %v2034_v29 = vsel %vm2017_vm11, %v2001_v10, %v3548_v51  ;;  %v2035_v4 = vsel %vm2017_vm11, %v2002_v26, %v3549_v31  ;;  %v1839_v15 = vsel %vm1821_vm5, %v6009_v19, %v3539_v30  ;;  %v6011_v59 = vld [vmem:[#allocation11_spill] sm:$0xff]  ;;  %v1872_v31 = vsel %vm1853_vm6, %v1840_v63, %v3598_v5  ;;  %v6015_v30 = vld [vmem:[#allocation21_spill] sm:$0xff] }
 0x231   : > { %v1826_v60 = vsel %vm1821_vm5, %v6011_v59, %v3298_v28  ;;  %v6012_v26 = vld [vmem:[#allocation23_spill] sm:$0xff]  ;;  %v1871_v52 = vsel %vm1853_vm6, %v1839_v15, %v3584_v50  ;;  %v1905_v51 = vsel %vm1885_vm7, %v1872_v31, %v3604_v41  ;;  %v3334_v25 = vunpack.i.h.bf16 %v6015_v30 }
 0x232   : > { %v3348_v10 = vunpack.i.l.bf16 %v6012_v26  ;;  %v1858_v2 = vsel %vm1853_vm6, %v1826_v60, %v3343_v48  ;;  %v3349_v61 = vunpack.i.h.bf16 %v6012_v26  ;;  %v3368_v63 = vunpack.i.l.bf16 %v6016_v49 }
 0x233   : > { %v5288_v56 = vpop.permute.xlu1 %3631  ;;  %v3569_v48 = vunpack.i.h.bf16 %v5225_v14  ;;  %v3618_v31 = vunpack.i.l.bf16 %v5266_v13 }
 0x234   : > { %v3642_v54 = vpop.permute.xlu0 %3641  ;;  %v3634_v37 = vunpack.i.h.bf16 %v5288_v56 }
 0x235   : > { %v3644_v58 = vunpack.i.h.bf16 %v3642_v54  ;;  %v3643_v57 = vunpack.i.l.bf16 %v3642_v54  ;;  %v1904_v54 = vsel %vm1885_vm7, %v1871_v52, %v3603_v12  ;;  %v3599_v52 = vunpack.i.h.bf16 %v5247_v16 }
 0x237   : > { %v2068_v33 = vsel %vm2050_vm12, %v2035_v4, %v3644_v58  ;;  %v2067_v9 = vsel %vm2050_vm12, %v2034_v29, %v3643_v57  ;;  %v5304_v62 = vpop.permute.xlu1 %3636  ;;  %v3633_v58 = vunpack.i.l.bf16 %v5288_v56  ;;  %v6013_v57 = vld [vmem:[#allocation17_spill] sm:$0xff]  ;;  %v3544_v4 = vunpack.i.h.bf16 %v5174_v20 }
 0x238   : > { %v2091_v17 = vpack.c.bf16 %v2068_v33, %v2067_v9  ;;  %v5306_v40 = vpop.permute.xlu0 %3651  ;;  %v3309_v45 = vunpack.i.h.bf16 %v6013_v57  ;;  %v3308_v29 = vunpack.i.l.bf16 %v6013_v57  ;;  %v6014_v33 = vld [vmem:[#allocation20_spill] sm:$0xff]  ;;  %v1937_v56 = vsel %vm1918_vm8, %v1904_v54, %v3543_v21 }
 0x239   : > { %v3324_v9 = vunpack.i.h.bf16 %v6014_v33  ;;  %v1938_v5 = vsel %vm1918_vm8, %v1905_v51, %v3544_v4  ;;  %v1890_v20 = vsel %vm1885_vm7, %v1857_v18, %v3348_v10  ;;  %v1970_v15 = vsel %vm1951_vm9, %v1937_v56, %v3633_v58  ;;  %v6017_v56 = vld [vmem:[#allocation19_spill] sm:$0xff] }
 0x23a   : > { %3128 = vmatprep.mubr.msk.bf16.mxu1 %vm2119_vm13, %v2091_v17  ;;  %v3333_v17 = vunpack.i.l.bf16 %v6015_v30  ;;  %v1971_v19 = vsel %vm1951_vm9, %v1938_v5, %v3634_v37  ;;  %v3639_v26 = vunpack.i.h.bf16 %v5304_v62  ;;  %v3638_v18 = vunpack.i.l.bf16 %v5304_v62 }
 0x23b   : > { %v5328_v38 = vpop.permute.xlu1 %3646  ;;  %v1891_v4 = vsel %vm1885_vm7, %v1858_v2, %v3349_v61  ;;  %v1841_v62 = vsel %vm1821_vm5, %v6017_v56, %v3569_v48 }
 0x23c   : > { %v5330_v47 = vpop.permute.xlu0 %3661 }
 0x23d   : > { %v3663_v54 = vunpack.i.l.bf16 %v5330_v47 }
 0x23f   : > { %v3657_v28 = vpop.permute.xlu1 %3656 }
 0x240   : > { %v3667_v50 = vpop.permute.xlu0 %3666  ;;  %v3659_v41 = vunpack.i.h.bf16 %v3657_v28  ;;  %v3658_v12 = vunpack.i.l.bf16 %v3657_v28  ;;  %v3369_v28 = vunpack.i.h.bf16 %v6016_v49 }
 0x241   : > { %v3668_v37 = vunpack.i.l.bf16 %v3667_v50  ;;  %v3669_v21 = vunpack.i.h.bf16 %v3667_v50 }
 0x242   : > { %v2004_v59 = vsel %vm1984_vm10, %v1971_v19, %v3659_v41  ;;  %v2003_v60 = vsel %vm1984_vm10, %v1970_v15, %v3658_v12  ;;  %v1923_v12 = vsel %vm1918_vm8, %v1890_v20, %v3333_v17  ;;  %v1873_v19 = vsel %vm1853_vm6, %v1841_v62, %v3599_v52  ;;  %v6018_v15 = vld [vmem:[#allocation18_spill] sm:$0xff] }
 0x243   : > { %v5363_v10 = vpop.permute.xlu1 %3676  ;;  %v2036_v30 = vsel %vm2017_vm11, %v2003_v60, %v3638_v18  ;;  %v2037_v16 = vsel %vm2017_vm11, %v2004_v59, %v3639_v26  ;;  %v1842_v2 = vsel %vm1821_vm5, %v6018_v15, %v3618_v31  ;;  %v1924_v59 = vsel %vm1918_vm8, %v1891_v4, %v3334_v25 }
 0x244   : > { %v3672_v51 = vpop.permute.xlu0 %3671  ;;  %v1956_v49 = vsel %vm1951_vm9, %v1923_v12, %v3368_v63  ;;  %v1874_v48 = vsel %vm1853_vm6, %v1842_v2, %v3663_v54  ;;  %v1906_v26 = vsel %vm1885_vm7, %v1873_v19, %v3668_v37  ;;  %v3653_v18 = vunpack.i.l.bf16 %v5306_v40  ;;  %v6020_v2 = vld [vmem:[#allocation28_spill] sm:$0xff] }
 0x245   : > { %v3674_v58 = vunpack.i.h.bf16 %v3672_v51  ;;  %v3673_v14 = vunpack.i.l.bf16 %v3672_v51  ;;  %v1907_v17 = vsel %vm1885_vm7, %v1874_v48, %v3669_v21  ;;  %v1957_v31 = vsel %vm1951_vm9, %v1924_v59, %v3369_v28  ;;  %v6019_v51 = vld [vmem:[#allocation29_spill] sm:$0xff] }
 0x246   : > { %v3373_v25 = vunpack.i.l.bf16 %v6019_v51  ;;  %v3654_v63 = vunpack.i.h.bf16 %v5306_v40  ;;  %v3619_v54 = vunpack.i.h.bf16 %v5266_v13  ;;  %v3648_v37 = vunpack.i.l.bf16 %v5328_v38 }
 0x247   : > { %v2069_v5 = vsel %vm2050_vm12, %v2036_v30, %v3673_v14  ;;  %v2070_v41 = vsel %vm2050_vm12, %v2037_v16, %v3674_v58  ;;  %v3682_v61 = vpop.permute.xlu1 %3681  ;;  %v3374_v58 = vunpack.i.h.bf16 %v6019_v51  ;;  %v3664_v14 = vunpack.i.h.bf16 %v5330_v47 }
 0x248   : > { %v2092_v50 = vpack.c.bf16 %v2070_v41, %v2069_v5  ;;  %v3687_v60 = vpop.permute.xlu0 %3686  ;;  %v1939_v4 = vsel %vm1918_vm8, %v1906_v26, %v3653_v18  ;;  %v3678_v16 = vunpack.i.l.bf16 %v5363_v10  ;;  %v1940_v28 = vsel %vm1918_vm8, %v1907_v17, %v3654_v63 }
 0x249   : > { %v3689_v20 = vunpack.i.h.bf16 %v3687_v60  ;;  %v3688_v52 = vunpack.i.l.bf16 %v3687_v60  ;;  %v3684_v5 = vunpack.i.h.bf16 %v3682_v61  ;;  %v3683_v41 = vunpack.i.l.bf16 %v3682_v61  ;;  %v6021_v61 = vld [vmem:[#allocation27_spill] sm:$0xff] }
 0x24a   : > { %3129 = vmatmul.mubr.msk.bf16.gmra.mxu1 %vm2119_vm13, %v2092_v50  ;;  %v1990_v12 = vsel %vm1984_vm10, %v1957_v31, %v3374_v58  ;;  %v1989_v47 = vsel %vm1984_vm10, %v1956_v49, %v3373_v25  ;;  %v1843_v50 = vsel %vm1821_vm5, %v6020_v2, %v3619_v54  ;;  %v3629_v60 = vunpack.i.h.bf16 %v5276_v24 }
 0x24b   : > { %v5393_v21 = vpop.permute.xlu1 %3696  ;;  %v1972_v40 = vsel %vm1951_vm9, %v1939_v4, %v3688_v52  ;;  %v1973_v13 = vsel %vm1951_vm9, %v1940_v28, %v3689_v20  ;;  %v3628_v59 = vunpack.i.l.bf16 %v5276_v24  ;;  %v1844_v48 = vsel %vm1821_vm5, %v6021_v61, %v3648_v37 }
 0x24c   : > { %v3692_v30 = vpop.permute.xlu0 %3691  ;;  %v1875_v17 = vsel %vm1853_vm6, %v1843_v50, %v3664_v14  ;;  %v1876_v49 = vsel %vm1853_vm6, %v1844_v48, %v3678_v16  ;;  %v3323_v14 = vunpack.i.l.bf16 %v6014_v33  ;;  %v3624_v4 = vunpack.i.h.bf16 %v5274_v46 }
 0x24d   : > { %v3694_v56 = vunpack.i.h.bf16 %v3692_v30  ;;  %v3693_v62 = vunpack.i.l.bf16 %v3692_v30  ;;  %v1909_v31 = vsel %vm1885_vm7, %v1876_v49, %v3684_v5  ;;  %v1908_v51 = vsel %vm1885_vm7, %v1875_v17, %v3683_v41 }
 0x24e   : > { %v3623_v30 = vunpack.i.l.bf16 %v5274_v46  ;;  %v2023_v5 = vsel %vm2017_vm11, %v1990_v12, %v3309_v45  ;;  %v1942_v46 = vsel %vm1918_vm8, %v1909_v31, %v3624_v4 }
 0x24f   : > { %v2006_v19 = vsel %vm1984_vm10, %v1973_v13, %v3694_v56  ;;  %v2005_v15 = vsel %vm1984_vm10, %v1972_v40, %v3693_v62  ;;  %v3702_v26 = vpop.permute.xlu1 %3701  ;;  %v2022_v62 = vsel %vm2017_vm11, %v1989_v47, %v3308_v29  ;;  %v6022_v13 = vld [vmem:[#allocation32_spill] sm:$0xff] }
 0x250   : > { %v3712_v18 = vpop.permute.xlu0 %3711  ;;  %v2038_v58 = vsel %vm2017_vm11, %v2005_v15, %v3628_v59  ;;  %v2039_v25 = vsel %vm2017_vm11, %v2006_v19, %v3629_v60  ;;  %v3704_v24 = vunpack.i.h.bf16 %v3702_v26  ;;  %v3703_v63 = vunpack.i.l.bf16 %v3702_v26 }
 0x251   : > { %v3714_v20 = vunpack.i.h.bf16 %v3712_v18  ;;  %v3713_v52 = vunpack.i.l.bf16 %v3712_v18  ;;  %v3404_v19 = vunpack.i.h.bf16 %v6022_v13  ;;  %v3403_v15 = vunpack.i.l.bf16 %v6022_v13 }
 0x252   : > { %v1941_v2 = vsel %vm1918_vm8, %v1908_v51, %v3623_v30  ;;  %v1975_v50 = vsel %vm1951_vm9, %v1942_v46, %v3704_v24  ;;  %v3679_v13 = vunpack.i.h.bf16 %v5363_v10 }
 0x253   : > { %v2072_v54 = vsel %vm2050_vm12, %v2039_v25, %v3714_v20  ;;  %v2071_v37 = vsel %vm2050_vm12, %v2038_v58, %v3713_v52  ;;  %v3707_v28 = vpop.permute.xlu1 %3706  ;;  %v1974_v29 = vsel %vm1951_vm9, %v1941_v2, %v3703_v63  ;;  %v2055_v1 = vsel %vm2050_vm12, %v2022_v62, %v3403_v15 }
 0x254   : > { %v2093_v16 = vpack.c.bf16 %v2072_v54, %v2071_v37  ;;  %v3722_v56 = vpop.permute.xlu0 %3721  ;;  %v3709_v12 = vunpack.i.h.bf16 %v3707_v28  ;;  %v3708_v47 = vunpack.i.l.bf16 %v3707_v28  ;;  %v6023_v37 = vld [vmem:[#allocation25_spill] sm:$0xff] }
 0x255   : > { %v3724_v41 = vunpack.i.h.bf16 %v3722_v56  ;;  %v3723_v40 = vunpack.i.l.bf16 %v3722_v56  ;;  %v6026_v56 = vpack.c.bf16 %v4971_v53, %v4968_v34  ;;  %v6027_v34 = vld [vmem:[#allocation31_spill] sm:$0xff] }
 0x256   : > { %3132 = vmatprep.mubr.msk.bf16.mxu1 %vm2119_vm13, %v2093_v16 }
 0x257   : > { %v1887_v57 = vsel %vm1885_vm7, %v5300_v22, %v3724_v41  ;;  %v1886_v45 = vsel %vm1885_vm7, %v5300_v22, %v3723_v40  ;;  %v3717_v61 = vpop.permute.xlu1 %3716  ;;  %v3698_v41 = vunpack.i.l.bf16 %v5393_v21 }
 0x258   : > { %v1920_v60 = vsel %vm1918_vm8, %v1887_v57, %v3269_v36  ;;  %v1919_v59 = vsel %vm1918_vm8, %v1886_v45, %v3268_v43  ;;  %v3727_v48 = vpop.permute.xlu0 %3726  ;;  %v3719_v18 = vunpack.i.h.bf16 %v3717_v61  ;;  %v3718_v17 = vunpack.i.l.bf16 %v3717_v61  ;;  %v6028_v57 = vld [vmem:[#allocation30_spill] sm:$0xff] }
 0x259   : > { %v1953_v26 = vsel %vm1951_vm9, %v1920_v60, %v3289_v39  ;;  %v1952_v22 = vsel %vm1951_vm9, %v1919_v59, %v3288_v6  ;;  %v3729_v49 = vunpack.i.h.bf16 %v3727_v48  ;;  %v3728_v20 = vunpack.i.l.bf16 %v3727_v48 }
 0x25a   : > { %v1985_v0 = vsel %vm1984_vm10, %v1952_v22, %v3293_v27  ;;  %v1986_v36 = vsel %vm1984_vm10, %v1953_v26, %v3294_v7  ;;  %v2008_v43 = vsel %vm1984_vm10, %v1975_v50, %v3719_v18  ;;  %v2007_v39 = vsel %vm1984_vm10, %v1974_v29, %v3718_v17 }
 0x25b   : > { %v2018_v3 = vsel %vm2017_vm11, %v1985_v0, %v3258_v8  ;;  %v2019_v6 = vsel %vm2017_vm11, %v1986_v36, %v3259_v11  ;;  %v2040_v52 = vsel %vm2017_vm11, %v2007_v39, %v3708_v47  ;;  %v2041_v27 = vsel %vm2017_vm11, %v2008_v43, %v3709_v12  ;;  %v5465_v31 = vpop.permute.xlu1 %3731 }
 0x25c   : > { %v5467_v55 = vpop.permute.xlu0 %3736  ;;  %v2051_v7 = vsel %vm2050_vm12, %v2018_v3, %v3323_v14  ;;  %v2052_v51 = vsel %vm2050_vm12, %v2019_v6, %v3324_v9  ;;  %v2056_v8 = vsel %vm2050_vm12, %v2023_v5, %v3404_v19  ;;  %v2074_v11 = vsel %vm2050_vm12, %v2041_v27, %v3729_v49  ;;  %v6024_v9 = vld [vmem:[#allocation24_spill] sm:$0xff] }
 0x25d   : > { %v2073_v58 = vsel %vm2050_vm12, %v2040_v52, %v3728_v20  ;;  %v2083_v24 = vpack.c.bf16 %v2052_v51, %v2051_v7  ;;  %v2085_v63 = vpack.c.bf16 %v2056_v8, %v2055_v1  ;;  %v6025_v14 = vpack.c.bf16 %v6023_v37, %v6024_v9  ;;  %v2459_v51 = vld [vmem:[%s5920_s7] sm:$0x3] }
 0x25e   : > { %v2094_v25 = vpack.c.bf16 %v2074_v11, %v2073_v58  ;;  %v3649_v5 = vunpack.i.h.bf16 %v5328_v38  ;;  %v3738_v19 = vunpack.i.l.bf16 %v5467_v55  ;;  %v1846_v45 = vsel %vm1821_vm5, %v6028_v57, %v3698_v41  ;;  %3186 = vmatprep.subr.msk.bf16.mxu1 %vm2168_vm4, %v2459_v51 }
 0x25f   : > { %v5477_v54 = vpop.permute.xlu1 %3741  ;;  %3112 = vmatprep.mubr.msk.bf16.mxu0 %vm2119_vm13, %v2083_v24  ;;  %v2509_v58 = vsel %vm2168_vm4, %v2459_v51, 0  ;;  %v3699_v37 = vunpack.i.h.bf16 %v5393_v21  ;;  %v3733_v9 = vunpack.i.l.bf16 %v5465_v31 }
 0x260   : > { %3133 = vmatmul.mubr.msk.bf16.gmra.mxu1 %vm2119_vm13, %v2094_v25  ;;  %v3747_v33 = vpop.permute.xlu0 %3746  ;;  %3113 = vmatmul.mubr.msk.bf16.vlgmr.msra.gmra.mxu0 %vm2119_vm13, %v6025_v14  ;;  %v1845_v53 = vsel %vm1821_vm5, %v6027_v34, %v3649_v5  ;;  %v1878_v10 = vsel %vm1853_vm6, %v1846_v45, %v3738_v19  ;;  %v3744_v57 = vunpack.i.h.bf16 %v5477_v54 }
 0x261   : > { %3116 = vmatprep.mubr.msk.bf16.mxu0 %vm2119_vm13, %v2085_v63  ;;  %v3749_v15 = vunpack.i.h.bf16 %v3747_v33  ;;  %v3748_v2 = vunpack.i.l.bf16 %v3747_v33  ;;  %v1877_v60 = vsel %vm1853_vm6, %v1845_v53, %v3679_v13  ;;  %3145 = vmatpush3.bf16.msra.mxu1 %v2509_v58  ;;  %v1847_v21 = vsel %vm1821_vm5, %v4936_v23, %v3699_v37 }
 0x263   : > { %v5486_v4 = vpop.permute.xlu1 %3751  ;;  %v1910_v48 = vsel %vm1885_vm7, %v1877_v60, %v3748_v2  ;;  %v1911_v26 = vsel %vm1885_vm7, %v1878_v10, %v3749_v15  ;;  %v6029_v15 = vld [vmem:[#allocation33_spill] sm:$0xff] }
 0x264   : > { %v3757_v30 = vpop.permute.xlu0 %3756  ;;  %v3754_v5 = vunpack.i.h.bf16 %v5486_v4  ;;  %v3753_v41 = vunpack.i.l.bf16 %v5486_v4  ;;  %v1848_v2 = vsel %vm1821_vm5, %v6029_v15, %v3733_v9 }
 0x265   : > { %v3759_v46 = vunpack.i.h.bf16 %v3757_v30  ;;  %v3758_v50 = vunpack.i.l.bf16 %v3757_v30  ;;  %v3739_v30 = vunpack.i.h.bf16 %v5467_v55 }
 0x267   : > { %v5488_v16 = vpop.permute.xlu1 %3761  ;;  %v1943_v17 = vsel %vm1918_vm8, %v1910_v48, %v3758_v50  ;;  %v1944_v49 = vsel %vm1918_vm8, %v1911_v26, %v3759_v46  ;;  %v1879_v4 = vsel %vm1853_vm6, %v1847_v21, %v3739_v30 }
 0x268   : > { %v3767_v28 = vpop.permute.xlu0 %3766  ;;  %3117 = vmatmul.mubr.msk.bf16.gmra.mxu0 %vm2119_vm13, %v6026_v56  ;;  %v3764_v13 = vunpack.i.h.bf16 %v5488_v16  ;;  %v3763_v19 = vunpack.i.l.bf16 %v5488_v16  ;;  %v1912_v16 = vsel %vm1885_vm7, %v1879_v4, %v3753_v41 }
 0x269   : > { %v3769_v38 = vunpack.i.h.bf16 %v3767_v28  ;;  %v3768_v12 = vunpack.i.l.bf16 %v3767_v28  ;;  %v3743_v28 = vunpack.i.l.bf16 %v5477_v54 }
 0x26a   : > { %v1945_v45 = vsel %vm1918_vm8, %v1912_v16, %v3763_v19 }
 0x26b   : > { %v5494_v62 = vpop.permute.xlu1 %3771  ;;  %v1976_v0 = vsel %vm1951_vm9, %v1943_v17, %v3768_v12  ;;  %v1977_v36 = vsel %vm1951_vm9, %v1944_v49, %v3769_v38 }
 0x26c   : > { %v3777_v40 = vpop.permute.xlu0 %3776  ;;  %v3774_v55 = vunpack.i.h.bf16 %v5494_v62  ;;  %v3773_v46 = vunpack.i.l.bf16 %v5494_v62 }
 0x26d   : > { %v3779_v59 = vunpack.i.h.bf16 %v3777_v40  ;;  %v3778_v61 = vunpack.i.l.bf16 %v3777_v40  ;;  %v3734_v40 = vunpack.i.h.bf16 %v5465_v31  ;;  %v1880_v31 = vsel %vm1853_vm6, %v1848_v2, %v3743_v28 }
 0x26e   : > { %v1913_v53 = vsel %vm1885_vm7, %v1880_v31, %v3754_v5  ;;  %v1978_v12 = vsel %vm1951_vm9, %v1945_v45, %v3773_v46 }
 0x26f   : > { %v5500_v29 = vpop.permute.xlu1 %3786  ;;  %v2009_v39 = vsel %vm1984_vm10, %v1976_v0, %v3778_v61  ;;  %v2010_v3 = vsel %vm1984_vm10, %v1977_v36, %v3779_v59  ;;  %v1849_v23 = vsel %vm1821_vm5, %v5015_v32, %v3734_v40  ;;  %v1946_v62 = vsel %vm1918_vm8, %v1913_v53, %v3764_v13 }
 0x270   : > { %v3782_v47 = vpop.permute.xlu0 %3781  ;;  %v1979_v38 = vsel %vm1951_vm9, %v1946_v62, %v3774_v55  ;;  %v3788_v59 = vunpack.i.l.bf16 %v5500_v29  ;;  %v1881_v49 = vsel %vm1853_vm6, %v1849_v23, %v3744_v57 }
 0x271   : > { %v3784_v22 = vunpack.i.h.bf16 %v3782_v47  ;;  %v3783_v18 = vunpack.i.l.bf16 %v3782_v47  ;;  %v3789_v47 = vunpack.i.h.bf16 %v5500_v29 }
 0x273   : > { %v5512_v20 = vpop.permute.xlu1 %3796  ;;  %v2042_v27 = vsel %vm2017_vm11, %v2009_v39, %v3783_v18  ;;  %v2043_v7 = vsel %vm2017_vm11, %v2010_v3, %v3784_v22 }
 0x274   : > { %v3792_v43 = vpop.permute.xlu0 %3791  ;;  %v3799_v60 = vunpack.i.h.bf16 %v5512_v20  ;;  %v3798_v61 = vunpack.i.l.bf16 %v5512_v20 }
 0x275   : > { %v3794_v6 = vunpack.i.h.bf16 %v3792_v43  ;;  %v3793_v52 = vunpack.i.l.bf16 %v3792_v43 }
 0x276   : > { %v1851_v39 = vsel %vm1821_vm5, %v5163_v42, %v3799_v60 }
 0x277   : > { %v2075_v8 = vsel %vm2050_vm12, %v2042_v27, %v3793_v52  ;;  %v2076_v1 = vsel %vm2050_vm12, %v2043_v7, %v3794_v6  ;;  %v1063_v11 = vpop.permute.xlu1 %1062  ;;  %v1850_v52 = vsel %vm1821_vm5, %v5009_v35, %v3798_v61 }
 0x278   : > { %v2095_v25 = vpack.c.bf16 %v2076_v1, %v2075_v8  ;;  %v5527_v24 = vpop.permute.xlu0 %3801  ;;  %v1852_v27 = vsel %vm1821_vm5, %v5157_v44, %v1063_v11 }
 0x279   : > { %v3804_v1 = vunpack.i.h.bf16 %v5527_v24  ;;  %v3803_v37 = vunpack.i.l.bf16 %v5527_v24 }
 0x27a   : > { %3136 = vmatprep.mubr.msk.bf16.mxu1 %vm2119_vm13, %v2095_v25 }
 0x27b   : > { %v5530_v63 = vpop.permute.xlu1 %3806 }
 0x27c   : > { %v5532_v33 = vpop.permute.xlu0 %3811  ;;  %v3809_v44 = vunpack.i.h.bf16 %v5530_v63  ;;  %v3808_v11 = vunpack.i.l.bf16 %v5530_v63 }
 0x27d   : > { %v3814_v57 = vunpack.i.h.bf16 %v5532_v33  ;;  %v3813_v45 = vunpack.i.l.bf16 %v5532_v33 }
 0x27f   : > { %v5536_v14 = vpop.permute.xlu1 %1602 }
 0x280   : > { %v3827_v56 = vpop.permute.xlu0 %3826 }
 0x281   : > { %v3828_v26 = vunpack.i.l.bf16 %v3827_v56  ;;  %v3829_v29 = vunpack.i.h.bf16 %v3827_v56 }
 0x283   : > { %v5551_v50 = vpop.permute.xlu1 %3816  ;;  %v1882_v42 = vsel %vm1853_vm6, %v1850_v52, %v3828_v26  ;;  %v1883_v28 = vsel %vm1853_vm6, %v1851_v39, %v3829_v29  ;;  %v5628_v52 = vld [vmem:[%s5918_s5] ss:$0 sm:$0xff] }
 0x284   : > { %v3832_v34 = vpop.permute.xlu0 %3831  ;;  %v3819_v56 = vunpack.i.h.bf16 %v5551_v50  ;;  %v3818_v41 = vunpack.i.l.bf16 %v5551_v50 }
 0x285   : > { %v3833_v22 = vunpack.i.l.bf16 %v3832_v34  ;;  %v3834_v0 = vunpack.i.h.bf16 %v3832_v34 }
 0x287   : > { %v3822_v10 = vpop.permute.xlu1 %3821  ;;  %v1914_v58 = vsel %vm1885_vm7, %v1881_v49, %v3833_v22  ;;  %v1915_v9 = vsel %vm1885_vm7, %v1882_v42, %v3834_v0 }
 0x288   : > { %v3824_v32 = vunpack.i.h.bf16 %v3822_v10  ;;  %v3823_v48 = vunpack.i.l.bf16 %v3822_v10  ;;  %v3837_v54 = vpop.permute.xlu0 %3836  ;;  %v1947_v40 = vsel %vm1918_vm8, %v1914_v58, %v3803_v37  ;;  %v1948_v15 = vsel %vm1918_vm8, %v1915_v9, %v3804_v1  ;;  %v5636_v58 = vld [vmem:[%s5919_s6] ss:$0 sm:$0xff] }
 0x289   : > { %v3839_v18 = vunpack.i.h.bf16 %v3837_v54  ;;  %v3838_v17 = vunpack.i.l.bf16 %v3837_v54 }
 0x28a   : > { %v2012_v36 = vsel %vm1984_vm10, %v1979_v38, %v3824_v32  ;;  %v2011_v43 = vsel %vm1984_vm10, %v1978_v12, %v3823_v48 }
 0x28b   : > { %v2044_v20 = vsel %vm2017_vm11, %v2011_v43, %v3788_v59  ;;  %v2045_v3 = vsel %vm2017_vm11, %v2012_v36, %v3789_v47  ;;  %v1186_v6 = vpop.permute.xlu1 %1185 }
 0x28c   : > { %v2077_v7 = vsel %vm2050_vm12, %v2044_v20, %v3838_v17  ;;  %v2078_v51 = vsel %vm2050_vm12, %v2045_v3, %v3839_v18  ;;  %v3847_v8 = vpop.permute.xlu0 %3846  ;;  %v1884_v21 = vsel %vm1853_vm6, %v1852_v27, %v1186_v6 }
 0x28d   : > { %v2096_v25 = vpack.c.bf16 %v2078_v51, %v2077_v7  ;;  %v3849_v35 = vunpack.i.h.bf16 %v3847_v8  ;;  %v3848_v30 = vunpack.i.l.bf16 %v3847_v8 }
 0x28f   : > { %v3842_v5 = vpop.permute.xlu1 %3841  ;;  %3137 = vmatmul.mubr.msk.bf16.gmra.mxu1 %vm2119_vm13, %v2096_v25  ;;  %v1980_v55 = vsel %vm1951_vm9, %v1947_v40, %v3848_v30  ;;  %v1981_v46 = vsel %vm1951_vm9, %v1948_v15, %v3849_v35 }
 0x290   : > { %v3844_v24 = vunpack.i.h.bf16 %v3842_v5  ;;  %v3843_v13 = vunpack.i.l.bf16 %v3842_v5  ;;  %v3852_v19 = vpop.permute.xlu0 %3851 }
 0x291   : > { %v3854_v2 = vunpack.i.h.bf16 %v3852_v19  ;;  %v3853_v63 = vunpack.i.l.bf16 %v3852_v19 }
 0x292   : > { %v1916_v4 = vsel %vm1885_vm7, %v1883_v28, %v3843_v13  ;;  %v1917_v31 = vsel %vm1885_vm7, %v1884_v21, %v3844_v24 }
 0x293   : > { %v2013_v50 = vsel %vm1984_vm10, %v1980_v55, %v3853_v63  ;;  %v2014_v34 = vsel %vm1984_vm10, %v1981_v46, %v3854_v2  ;;  %v1696_v53 = vpop.permute.xlu1 %1695  ;;  %v1949_v16 = vsel %vm1918_vm8, %v1916_v4, %v3808_v11  ;;  %v1950_v23 = vsel %vm1918_vm8, %v1917_v31, %v3809_v44 }
 0x294   : > { %v1982_v62 = vsel %vm1951_vm9, %v1949_v16, %v3818_v41  ;;  %v1983_v38 = vsel %vm1951_vm9, %v1950_v23, %v3819_v56  ;;  %v3857_v12 = vpop.permute.xlu0 %3856  ;;  %v2046_v48 = vsel %vm2017_vm11, %v2013_v50, %v3813_v45  ;;  %v2047_v33 = vsel %vm2017_vm11, %v2014_v34, %v3814_v57 }
 0x295   : > { %v2015_v47 = vsel %vm1984_vm10, %v1982_v62, %v5536_v14  ;;  %v2016_v60 = vsel %vm1984_vm10, %v1983_v38, %v5536_v14  ;;  %v3859_v10 = vunpack.i.h.bf16 %v3857_v12  ;;  %v3858_v59 = vunpack.i.l.bf16 %v3857_v12 }
 0x296   : > { %v2048_v61 = vsel %vm2017_vm11, %v2015_v47, %v1696_v53  ;;  %v2049_v32 = vsel %vm2017_vm11, %v2016_v60, %v1696_v53 }
 0x297   : > { %v2079_v54 = vsel %vm2050_vm12, %v2046_v48, %v3858_v59  ;;  %v2080_v26 = vsel %vm2050_vm12, %v2047_v33, %v3859_v10  ;;  %v1789_v22 = vpop.permute.xlu1 %1788 }
 0x298   : > { %v2097_v18 = vpack.c.bf16 %v2080_v26, %v2079_v54  ;;  %v2081_v17 = vsel %vm2050_vm12, %v2048_v61, %v1789_v22  ;;  %v2082_v14 = vsel %vm2050_vm12, %v2049_v32, %v1789_v22 }
 0x299   : > { %v2098_v49 = vpack.c.bf16 %v2082_v14, %v2081_v17 }
 0x29a   : > { %3140 = vmatprep.mubr.msk.bf16.mxu1 %vm2119_vm13, %v2097_v18 }
 0x29b   : > { %3141 = vmatmul.mubr.msk.bf16.gmra.mxu1 %vm2119_vm13, %v2098_v49 }
 0x2ca   : > { %v3122_v0 = vpop.f32.mrf.mxu1 }
 0x2cb   : > { %v2350_v32 = vmul.f32 %v3122_v0, %v5628_v52 }
 0x2cc   : > { %v2238_v36 = vpop.f32.mrf.mxu1 }
 0x2cd   : > { %v2348_v63 = vmul.f32 %v5628_v52, %v2238_v36  ;;  %v2389_v36 = vadd.f32 %v5636_v58, %v2350_v32 }
 0x2ce   : > { %v3123_v43 = vpop.f32.mrf.mxu1 }
 0x2cf   : > { %v2387_v45 = vadd.f32 %v5636_v58, %v2348_v63  ;;  %v2351_v38 = vmul.f32 %v3123_v43, %v5628_v52 }
 0x2d0   : > { %v2241_v39 = vpop.f32.mrf.mxu1 }
 0x2d1   : > { %v2349_v40 = vmul.f32 %v5628_v52, %v2241_v39  ;;  %v2419_v54 = vmax.f32 %v2387_v45, 0.0  ;;  %v2390_v18 = vadd.f32 %v5636_v58, %v2351_v38 }
 0x2d3   : > { %v2388_v34 = vadd.f32 %v5636_v58, %v2349_v40  ;;  %v2422_v39 = vmax.f32 %v2390_v18, 0.0 }
 0x2d5   : > { %v2420_v60 = vmax.f32 %v2388_v34, 0.0 }
 0x2d7   : > { %v2447_v14 = vpack.c.bf16 %v2420_v60, %v2419_v54 }
 0x2ea   : > { %v5621_v29 = vpop.f32.mrf.mxu1 }
 0x2ec   : > { %v2254_v20 = vpop.f32.mrf.mxu1 }
 0x2ed   : > { %v2352_v26 = vmul.f32 %v5628_v52, %v2254_v20 }
 0x2ee   : > { %v5623_v3 = vpop.f32.mrf.mxu1 }
 0x2ef   : > { %v2391_v0 = vadd.f32 %v5636_v58, %v2352_v26  ;;  %v2355_v20 = vmul.f32 %v5623_v3, %v5628_v52 }
 0x2f0   : > { %v2257_v51 = vpop.f32.mrf.mxu1 }
 0x2f1   : > { %v2353_v10 = vmul.f32 %v5628_v52, %v2257_v51  ;;  %v2354_v51 = vmul.f32 %v5621_v29, %v5628_v52 }
 0x2f3   : > { %v2392_v49 = vadd.f32 %v5636_v58, %v2353_v10 }
 0x30a   : > { %v5638_v25 = vpop.f32.mrf.mxu1 }
 0x30b   : > { %v2358_v40 = vmul.f32 %v5638_v25, %v5628_v52 }
 0x30c   : > { %v2270_v56 = vpop.f32.mrf.mxu1 }
 0x30d   : > { %v2397_v63 = vadd.f32 %v5636_v58, %v2358_v40 }
 0x30e   : > { %v3131_v4 = vpop.f32.mrf.mxu1 }
 0x310   : > { %v2273_v12 = vpop.f32.mrf.mxu1 }
 0x320   : > { %v3114_v6 = vpop.f32.mrf.mxu0  ;;  %v3134_v48 = vpop.f32.mrf.mxu1 }
 0x321   : > { %v2342_v8 = vmul.f32 %v3114_v6, %v5628_v52  ;;  %v2424_v6 = vmax.f32 %v2392_v49, 0.0 }
 0x322   : > { %v2206_v27 = vpop.f32.mrf.mxu0  ;;  %v2286_v43 = vpop.f32.mrf.mxu1 }
 0x323   : > { %v2340_v7 = vmul.f32 %v5628_v52, %v2206_v27  ;;  %v2381_v44 = vadd.f32 %v5636_v58, %v2342_v8  ;;  %v2357_v27 = vmul.f32 %v5628_v52, %v2273_v12 }
 0x324   : > { %v3115_v1 = vpop.f32.mrf.mxu0  ;;  %v3135_v8 = vpop.f32.mrf.mxu1 }
 0x325   : > { %v2343_v42 = vmul.f32 %v3115_v1, %v5628_v52  ;;  %v2379_v9 = vadd.f32 %v5636_v58, %v2340_v7  ;;  %v2413_v21 = vmax.f32 %v2381_v44, 0.0  ;;  %v2421_v7 = vmax.f32 %v2389_v36, 0.0 }
 0x326   : > { %v2209_v37 = vpop.f32.mrf.mxu0  ;;  %v2423_v1 = vmax.f32 %v2391_v0, 0.0  ;;  %v2393_v44 = vadd.f32 %v5636_v58, %v2354_v51  ;;  %v2289_v3 = vpop.f32.mrf.mxu1  ;;  %v2363_v25 = vmul.f32 %v3135_v8, %v5628_v52 }
 0x327   : > { %v2382_v35 = vadd.f32 %v5636_v58, %v2343_v42  ;;  %v2341_v30 = vmul.f32 %v5628_v52, %v2209_v37  ;;  %v2411_v24 = vmax.f32 %v2379_v9, 0.0  ;;  %v2356_v42 = vmul.f32 %v5628_v52, %v2270_v56 }
 0x328   : > { %v3118_v11 = vpop.f32.mrf.mxu0  ;;  %v2448_v37 = vpack.c.bf16 %v2422_v39, %v2421_v7  ;;  %v2394_v9 = vadd.f32 %v5636_v58, %v2355_v20  ;;  %v2361_v56 = vmul.f32 %v5628_v52, %v2289_v3 }
 0x329   : > { %v2380_v28 = vadd.f32 %v5636_v58, %v2341_v30  ;;  %v2414_v5 = vmax.f32 %v2382_v35, 0.0  ;;  %v2346_v15 = vmul.f32 %v3118_v11, %v5628_v52  ;;  %v2449_v35 = vpack.c.bf16 %v2424_v6, %v2423_v1 }
 0x32a   : > { %v2222_v41 = vpop.f32.mrf.mxu0  ;;  %v2396_v30 = vadd.f32 %v5636_v58, %v2357_v27  ;;  %v2395_v11 = vadd.f32 %v5636_v58, %v2356_v42  ;;  %v2426_v29 = vmax.f32 %v2394_v9, 0.0 }
 0x32b   : > { %v2412_v13 = vmax.f32 %v2380_v28, 0.0  ;;  %v2344_v19 = vmul.f32 %v5628_v52, %v2222_v41  ;;  %v2444_v31 = vpack.c.bf16 %v2414_v5, %v2413_v21  ;;  %v2385_v57 = vadd.f32 %v5636_v58, %v2346_v15 }
 0x32c   : > { %v3119_v2 = vpop.f32.mrf.mxu0  ;;  %v2359_v28 = vmul.f32 %v3131_v4, %v5628_v52  ;;  %v2428_v5 = vmax.f32 %v2396_v30, 0.0  ;;  %v2425_v41 = vmax.f32 %v2393_v44, 0.0 }
 0x32d   : > { %v2443_v55 = vpack.c.bf16 %v2412_v13, %v2411_v24  ;;  %v2347_v46 = vmul.f32 %v3119_v2, %v5628_v52  ;;  %v2383_v53 = vadd.f32 %v5636_v58, %v2344_v19  ;;  %v2417_v33 = vmax.f32 %v2385_v57, 0.0 }
 0x32e   : > { %v2225_v50 = vpop.f32.mrf.mxu0  ;;  %v2427_v24 = vmax.f32 %v2395_v11, 0.0  ;;  %v2360_v13 = vmul.f32 %v5628_v52, %v2286_v43  ;;  %v2450_v19 = vpack.c.bf16 %v2426_v29, %v2425_v41  ;;  %v2398_v21 = vadd.f32 %v5636_v58, %v2359_v28 }
 0x32f   : > { %v2386_v16 = vadd.f32 %v5636_v58, %v2347_v46  ;;  %v2345_v23 = vmul.f32 %v5628_v52, %v2225_v50  ;;  %3146 = vmatprep.mubr.msk.bf16.mxu1 %vm1821_vm5, %v2443_v55  ;;  %v2415_v59 = vmax.f32 %v2383_v53, 0.0  ;;  %v2400_v2 = vadd.f32 %v5636_v58, %v2361_v56 }
 0x330   : > { %3147 = vmatmul.mubr.msk.bf16.vlgmr.msra.gmra.mxu1 %vm1821_vm5, %v2444_v31  ;;  %v2451_v15 = vpack.c.bf16 %v2428_v5, %v2427_v24  ;;  %v2399_v55 = vadd.f32 %v5636_v58, %v2360_v13  ;;  %v2430_v46 = vmax.f32 %v2398_v21, 0.0  ;;  %v2429_v31 = vmax.f32 %v2397_v63, 0.0  ;;  %v3873_v13 = vld [vmem:[%s4171_s11 + $0x10] sm:$0xff] }
 0x331   : > { %v2384_v62 = vadd.f32 %v5636_v58, %v2345_v23  ;;  %v2418_v47 = vmax.f32 %v2386_v16, 0.0  ;;  %v2432_v4 = vmax.f32 %v2400_v2, 0.0  ;;  %v2362_v50 = vmul.f32 %v3134_v48, %v5628_v52 }
 0x332   : > { %v2431_v34 = vmax.f32 %v2399_v55, 0.0  ;;  %v2452_v53 = vpack.c.bf16 %v2430_v46, %v2429_v31  ;;  %v2402_v16 = vadd.f32 %v5636_v58, %v2363_v25  ;;  %v3874_v55 = vld [vmem:[%s4171_s11] sm:$0xff] }
 0x333   : > { %v2416_v61 = vmax.f32 %v2384_v62, 0.0  ;;  %v2446_v17 = vpack.c.bf16 %v2418_v47, %v2417_v33  ;;  %v2401_v45 = vadd.f32 %v5636_v58, %v2362_v50 }
 0x334   : > { %v2453_v23 = vpack.c.bf16 %v2432_v4, %v2431_v34  ;;  %v2434_v38 = vmax.f32 %v2402_v16, 0.0  ;;  %v3875_v34 = vld [vmem:[%s4171_s11 + $0x18] sm:$0xff] }
 0x335   : > { %v2445_v22 = vpack.c.bf16 %v2416_v61, %v2415_v59  ;;  %v2433_v60 = vmax.f32 %v2401_v45, 0.0 }
 0x337   : > { %3150 = vmatprep.mubr.msk.bf16.mxu1 %vm1821_vm5, %v2445_v22  ;;  %v2454_v32 = vpack.c.bf16 %v2434_v38, %v2433_v60 }
 0x338   : > { %3151 = vmatmul.mubr.msk.bf16.gmra.mxu1 %vm1821_vm5, %v2446_v17 }
 0x339   : > { %3154 = vmatprep.mubr.msk.bf16.mxu1 %vm1821_vm5, %v2447_v14 }
 0x340   : > { %3155 = vmatmul.mubr.msk.bf16.gmra.mxu1 %vm1821_vm5, %v2448_v37 }
 0x341   : > { %3158 = vmatprep.mubr.msk.bf16.mxu1 %vm1821_vm5, %v2449_v35 }
 0x348   : > { %3159 = vmatmul.mubr.msk.bf16.gmra.mxu1 %vm1821_vm5, %v2450_v19 }
 0x349   : > { %3162 = vmatprep.mubr.msk.bf16.mxu1 %vm1821_vm5, %v2451_v15 }
 0x34f   : > { %v3138_v57 = vpop.f32.mrf.mxu1 }
 0x350   : > { %3163 = vmatmul.mubr.msk.bf16.gmra.mxu1 %vm1821_vm5, %v2452_v53  ;;  %v2366_v10 = vmul.f32 %v3138_v57, %v5628_v52 }
 0x351   : > { %v2302_v62 = vpop.f32.mrf.mxu1  ;;  %3166 = vmatprep.mubr.msk.bf16.mxu1 %vm1821_vm5, %v2453_v23 }
 0x352   : > { %v2364_v12 = vmul.f32 %v5628_v52, %v2302_v62  ;;  %v2405_v26 = vadd.f32 %v5636_v58, %v2366_v10  ;;  %v3876_v62 = vld [vmem:[%s4171_s11 + $0x8] sm:$0xff] }
 0x353   : > { %v3139_v47 = vpop.f32.mrf.mxu1 }
 0x354   : > { %v2367_v59 = vmul.f32 %v3139_v47, %v5628_v52  ;;  %v2403_v48 = vadd.f32 %v5636_v58, %v2364_v12  ;;  %v2437_v36 = vmax.f32 %v2405_v26, 0.0  ;;  %v3878_v26 = vld [vmem:[%s4171_s11 + $0x20] sm:$0xff] }
 0x355   : > { %v2305_v61 = vpop.f32.mrf.mxu1 }
 0x356   : > { %v2406_v33 = vadd.f32 %v5636_v58, %v2367_v59  ;;  %v2365_v54 = vmul.f32 %v5628_v52, %v2305_v61  ;;  %v2435_v18 = vmax.f32 %v2403_v48, 0.0  ;;  %v3877_v59 = vld [vmem:[%s4171_s11 + $0x30] sm:$0xff] }
 0x358   : > { %v2404_v22 = vadd.f32 %v5636_v58, %v2365_v54  ;;  %3167 = vmatmul.mubr.msk.bf16.gmra.mxu1 %vm1821_vm5, %v2454_v32  ;;  %v2438_v17 = vmax.f32 %v2406_v33, 0.0 }
 0x35a   : > { %v2436_v14 = vmax.f32 %v2404_v22, 0.0  ;;  %v2456_v39 = vpack.c.bf16 %v2438_v17, %v2437_v36  ;;  %v3879_v36 = vld [vmem:[%s4171_s11 + $0x38] sm:$0xff] }
 0x35b   : > { %v3142_v49 = vpop.f32.mrf.mxu1 }
 0x35c   : > { %v2455_v43 = vpack.c.bf16 %v2436_v14, %v2435_v18  ;;  %v2370_v6 = vmul.f32 %v3142_v49, %v5628_v52 }
 0x35d   : > { %v2318_v0 = vpop.f32.mrf.mxu1 }
 0x35e   : > { %v2368_v20 = vmul.f32 %v5628_v52, %v2318_v0  ;;  %3170 = vmatprep.mubr.msk.bf16.mxu1 %vm1821_vm5, %v2455_v43  ;;  %v2409_v37 = vadd.f32 %v5636_v58, %v2370_v6 }
 0x35f   : > { %v3143_v27 = vpop.f32.mrf.mxu1 }
 0x360   : > { %v2371_v7 = vmul.f32 %v3143_v27, %v5628_v52  ;;  %3171 = vmatmul.mubr.msk.bf16.gmra.mxu1 %vm1821_vm5, %v2456_v39  ;;  %v2407_v8 = vadd.f32 %v5636_v58, %v2368_v20  ;;  %v2441_v3 = vmax.f32 %v2409_v37, 0.0  ;;  %v3880_v27 = vld [vmem:[%s4171_s11 + $0x28] sm:$0xff]  ;;  %v3881_v37 = vld [vmem:[%s4171_s11 + $0x50] sm:$0xff] }
 0x361   : > { %v2321_v51 = vpop.f32.mrf.mxu1 }
 0x362   : > { %v2410_v1 = vadd.f32 %v5636_v58, %v2371_v7  ;;  %v2369_v42 = vmul.f32 %v5628_v52, %v2321_v51  ;;  %v2439_v30 = vmax.f32 %v2407_v8, 0.0  ;;  %v5723_v52 = vld [vmem:[%s5921_s8] ss:$0 sm:$0xff] }
 0x364   : > { %v2408_v9 = vadd.f32 %v5636_v58, %v2369_v42  ;;  %v2442_v35 = vmax.f32 %v2410_v1, 0.0  ;;  %v5728_v58 = vld [vmem:[%s5922_s9] ss:$0 sm:$0xff] }
 0x366   : > { %v2440_v44 = vmax.f32 %v2408_v9, 0.0  ;;  %v2458_v29 = vpack.c.bf16 %v2442_v35, %v2441_v3 }
 0x368   : > { %v2457_v11 = vpack.c.bf16 %v2440_v44, %v2439_v30 }
 0x36a   : > { %3174 = vmatprep.mubr.msk.bf16.mxu1 %vm1821_vm5, %v2457_v11  ;;  %v3882_v11 = vld [vmem:[%s4171_s11 + $0x40] sm:$0xff] }
 0x36b   : > { %3175 = vmatmul.mubr.msk.bf16.gmra.mxu1 %vm1821_vm5, %v2458_v29 }
 0x3f0   : > { %v3148_v28 = vpop.f32.mrf.mxu1 }
 0x3f1   : > { %v2681_v5 = vmul.f32 %v3148_v28, %v5723_v52 }
 0x3f2   : > { %v2545_v56 = vpop.f32.mrf.mxu1 }
 0x3f3   : > { %v2720_v41 = vadd.f32 %v5728_v58, %v2681_v5  ;;  %v2679_v40 = vmul.f32 %v5723_v52, %v2545_v56 }
 0x3f4   : > { %v3149_v24 = vpop.f32.mrf.mxu1 }
 0x3f5   : > { %v2752_v19 = vadd.f32 %v3873_v13, %v2720_v41  ;;  %v2718_v21 = vadd.f32 %v5728_v58, %v2679_v40  ;;  %v2682_v15 = vmul.f32 %v3149_v24, %v5723_v52  ;;  %v3883_v40 = vld [vmem:[%s4171_s11 + $0x58] sm:$0xff] }
 0x3f6   : > { %v2548_v2 = vpop.f32.mrf.mxu1 }
 0x3f7   : > { %v2784_v63 = vmax.f32 %v2752_v19, 0.0  ;;  %v2750_v46 = vadd.f32 %v3874_v55, %v2718_v21  ;;  %v2721_v25 = vadd.f32 %v5728_v58, %v2682_v15  ;;  %v2680_v4 = vmul.f32 %v5723_v52, %v2548_v2  ;;  %v3884_v2 = vld [vmem:[%s4171_s11 + $0x48] sm:$0xff] }
 0x3f8   : > { %v3152_v31 = vpop.f32.mrf.mxu1 }
 0x3f9   : > { %2816 = vst [vmem:[%s5741_s30 + $0x10] sm:$0xff] %v2784_v63  ;;  %v2782_v50 = vmax.f32 %v2750_v46, 0.0  ;;  %v2753_v53 = vadd.f32 %v3875_v34, %v2721_v25  ;;  %v2719_v16 = vadd.f32 %v5728_v58, %v2680_v4  ;;  %v2685_v23 = vmul.f32 %v3152_v31, %v5723_v52  ;;  %v3885_v31 = vld [vmem:[%s4171_s11 + $0x70] sm:$0xff] }
 0x3fa   : > { %v2561_v57 = vpop.f32.mrf.mxu1 }
 0x3fb   : > { %2814 = vst [vmem:[%s5741_s30] sm:$0xff] %v2782_v50  ;;  %v2785_v45 = vmax.f32 %v2753_v53, 0.0  ;;  %v2751_v38 = vadd.f32 %v3876_v62, %v2719_v16  ;;  %v2724_v12 = vadd.f32 %v5728_v58, %v2685_v23  ;;  %v2683_v47 = vmul.f32 %v5723_v52, %v2561_v57  ;;  %v3886_v57 = vld [vmem:[%s4171_s11 + $0x60] sm:$0xff] }
 0x3fc   : > { %v3153_v60 = vpop.f32.mrf.mxu1 }
 0x3fd   : > { %2817 = vst [vmem:[%s5741_s30 + $0x18] sm:$0xff] %v2785_v45  ;;  %v2783_v10 = vmax.f32 %v2751_v38, 0.0  ;;  %v2756_v61 = vadd.f32 %v3877_v59, %v2724_v12  ;;  %v2722_v32 = vadd.f32 %v5728_v58, %v2683_v47  ;;  %v2686_v48 = vmul.f32 %v3153_v60, %v5723_v52  ;;  %v3887_v60 = vld [vmem:[%s4171_s11 + $0x78] sm:$0xff] }
 0x3fe   : > { %v2564_v33 = vpop.f32.mrf.mxu1 }
 0x3ff   : > { %2815 = vst [vmem:[%s5741_s30 + $0x8] sm:$0xff] %v2783_v10  ;;  %v2788_v54 = vmax.f32 %v2756_v61, 0.0  ;;  %v2754_v22 = vadd.f32 %v3878_v26, %v2722_v32  ;;  %v2725_v18 = vadd.f32 %v5728_v58, %v2686_v48  ;;  %v2684_v17 = vmul.f32 %v5723_v52, %v2564_v33  ;;  %v3888_v33 = vld [vmem:[%s4171_s11 + $0x68] sm:$0xff] }
 0x400   : > { %v3156_v14 = vpop.f32.mrf.mxu1 }
 0x401   : > { %2820 = vst [vmem:[%s5741_s30 + $0x30] sm:$0xff] %v2788_v54  ;;  %v2786_v49 = vmax.f32 %v2754_v22, 0.0  ;;  %v2757_v43 = vadd.f32 %v3879_v36, %v2725_v18  ;;  %v2723_v0 = vadd.f32 %v5728_v58, %v2684_v17  ;;  %v2689_v39 = vmul.f32 %v3156_v14, %v5723_v52  ;;  %v3889_v14 = vld [vmem:[%s4171_s11 + $0x90] sm:$0xff] }
 0x402   : > { %v2577_v20 = vpop.f32.mrf.mxu1 }
 0x403   : > { %2818 = vst [vmem:[%s5741_s30 + $0x20] sm:$0xff] %v2786_v49  ;;  %v2789_v6 = vmax.f32 %v2757_v43, 0.0  ;;  %v2755_v7 = vadd.f32 %v3880_v27, %v2723_v0  ;;  %v2728_v51 = vadd.f32 %v5728_v58, %v2689_v39  ;;  %v2687_v8 = vmul.f32 %v5723_v52, %v2577_v20  ;;  %v3890_v20 = vld [vmem:[%s4171_s11 + $0x80] sm:$0xff] }
 0x404   : > { %v3157_v1 = vpop.f32.mrf.mxu1 }
 0x405   : > { %2821 = vst [vmem:[%s5741_s30 + $0x38] sm:$0xff] %v2789_v6  ;;  %v2787_v42 = vmax.f32 %v2755_v7, 0.0  ;;  %v2760_v9 = vadd.f32 %v3881_v37, %v2728_v51  ;;  %v2726_v35 = vadd.f32 %v5728_v58, %v2687_v8  ;;  %v2690_v30 = vmul.f32 %v3157_v1, %v5723_v52  ;;  %v3891_v1 = vld [vmem:[%s4171_s11 + $0x98] sm:$0xff] }
 0x406   : > { %v2580_v44 = vpop.f32.mrf.mxu1 }
 0x407   : > { %2819 = vst [vmem:[%s5741_s30 + $0x28] sm:$0xff] %v2787_v42  ;;  %v2792_v3 = vmax.f32 %v2760_v9, 0.0  ;;  %v2758_v29 = vadd.f32 %v3882_v11, %v2726_v35  ;;  %v2729_v28 = vadd.f32 %v5728_v58, %v2690_v30  ;;  %v2688_v5 = vmul.f32 %v5723_v52, %v2580_v44  ;;  %v3892_v44 = vld [vmem:[%s4171_s11 + $0x88] sm:$0xff] }
 0x408   : > { %v3160_v56 = vpop.f32.mrf.mxu1 }
 0x409   : > { %2824 = vst [vmem:[%s5741_s30 + $0x50] sm:$0xff] %v2792_v3  ;;  %v2790_v41 = vmax.f32 %v2758_v29, 0.0  ;;  %v2761_v24 = vadd.f32 %v3883_v40, %v2729_v28  ;;  %v2727_v13 = vadd.f32 %v5728_v58, %v2688_v5  ;;  %v2693_v19 = vmul.f32 %v3160_v56, %v5723_v52  ;;  %v3893_v56 = vld [vmem:[%s4171_s11 + $0xb0] sm:$0xff] }
 0x40a   : > { %v2593_v21 = vpop.f32.mrf.mxu1 }
 0x40b   : > { %2822 = vst [vmem:[%s5741_s30 + $0x40] sm:$0xff] %v2790_v41  ;;  %v2793_v15 = vmax.f32 %v2761_v24, 0.0  ;;  %v2759_v63 = vadd.f32 %v3884_v2, %v2727_v13  ;;  %v2732_v55 = vadd.f32 %v5728_v58, %v2693_v19  ;;  %v2691_v46 = vmul.f32 %v5723_v52, %v2593_v21  ;;  %v3894_v21 = vld [vmem:[%s4171_s11 + $0xa0] sm:$0xff] }
 0x40c   : > { %v3161_v25 = vpop.f32.mrf.mxu1 }
 0x40d   : > { %2825 = vst [vmem:[%s5741_s30 + $0x58] sm:$0xff] %v2793_v15  ;;  %v2791_v4 = vmax.f32 %v2759_v63, 0.0  ;;  %v2764_v50 = vadd.f32 %v3885_v31, %v2732_v55  ;;  %v2730_v34 = vadd.f32 %v5728_v58, %v2691_v46  ;;  %v2694_v53 = vmul.f32 %v3161_v25, %v5723_v52  ;;  %v3895_v25 = vld [vmem:[%s4171_s11 + $0xb8] sm:$0xff] }
 0x40e   : > { %v2596_v16 = vpop.f32.mrf.mxu1 }
 0x40f   : > { %2823 = vst [vmem:[%s5741_s30 + $0x48] sm:$0xff] %v2791_v4  ;;  %v2796_v23 = vmax.f32 %v2764_v50, 0.0  ;;  %v2762_v45 = vadd.f32 %v3886_v57, %v2730_v34  ;;  %v2733_v62 = vadd.f32 %v5728_v58, %v2694_v53  ;;  %v2692_v38 = vmul.f32 %v5723_v52, %v2596_v16  ;;  %v3896_v16 = vld [vmem:[%s4171_s11 + $0xa8] sm:$0xff] }
 0x410   : > { %v3164_v12 = vpop.f32.mrf.mxu1 }
 0x411   : > { %2828 = vst [vmem:[%s5741_s30 + $0x70] sm:$0xff] %v2796_v23  ;;  %v2794_v47 = vmax.f32 %v2762_v45, 0.0  ;;  %v2765_v10 = vadd.f32 %v3887_v60, %v2733_v62  ;;  %v2731_v59 = vadd.f32 %v5728_v58, %v2692_v38  ;;  %v2697_v61 = vmul.f32 %v3164_v12, %v5723_v52  ;;  %v3897_v12 = vld [vmem:[%s4171_s11 + $0xd0] sm:$0xff] }
 0x412   : > { %v2609_v32 = vpop.f32.mrf.mxu1 }
 0x413   : > { %2826 = vst [vmem:[%s5741_s30 + $0x60] sm:$0xff] %v2794_v47  ;;  %v2797_v48 = vmax.f32 %v2765_v10, 0.0  ;;  %v2763_v54 = vadd.f32 %v3888_v33, %v2731_v59  ;;  %v2736_v26 = vadd.f32 %v5728_v58, %v2697_v61  ;;  %v2695_v22 = vmul.f32 %v5723_v52, %v2609_v32  ;;  %v3898_v32 = vld [vmem:[%s4171_s11 + $0xc0] sm:$0xff] }
 0x414   : > { %v3165_v18 = vpop.f32.mrf.mxu1 }
 0x415   : > { %2829 = vst [vmem:[%s5741_s30 + $0x78] sm:$0xff] %v2797_v48  ;;  %v2795_v17 = vmax.f32 %v2763_v54, 0.0  ;;  %v2768_v49 = vadd.f32 %v3889_v14, %v2736_v26  ;;  %v2734_v36 = vadd.f32 %v5728_v58, %v2695_v22  ;;  %v2698_v43 = vmul.f32 %v3165_v18, %v5723_v52  ;;  %v3899_v22 = vld [vmem:[%s4171_s11 + $0xd8] sm:$0xff] }
 0x416   : > { %v2612_v0 = vpop.f32.mrf.mxu1 }
 0x417   : > { %2827 = vst [vmem:[%s5741_s30 + $0x68] sm:$0xff] %v2795_v17  ;;  %v2800_v39 = vmax.f32 %v2768_v49, 0.0  ;;  %v2766_v6 = vadd.f32 %v3890_v20, %v2734_v36  ;;  %v2737_v27 = vadd.f32 %v5728_v58, %v2698_v43  ;;  %v2696_v7 = vmul.f32 %v5723_v52, %v2612_v0  ;;  %v3900_v49 = vld [vmem:[%s4171_s11 + $0xc8] sm:$0xff] }
 0x418   : > { %v3168_v51 = vpop.f32.mrf.mxu1 }
 0x419   : > { %2832 = vst [vmem:[%s5741_s30 + $0x90] sm:$0xff] %v2800_v39  ;;  %v2798_v8 = vmax.f32 %v2766_v6, 0.0  ;;  %v2769_v42 = vadd.f32 %v3891_v1, %v2737_v27  ;;  %v2735_v37 = vadd.f32 %v5728_v58, %v2696_v7  ;;  %v2701_v9 = vmul.f32 %v3168_v51, %v5723_v52  ;;  %v3901_v51 = vld [vmem:[%s4171_s11 + $0xf0] sm:$0xff] }
 0x41a   : > { %v2625_v35 = vpop.f32.mrf.mxu1 }
 0x41b   : > { %2830 = vst [vmem:[%s5741_s30 + $0x80] sm:$0xff] %v2798_v8  ;;  %v2801_v30 = vmax.f32 %v2769_v42, 0.0  ;;  %v2767_v3 = vadd.f32 %v3892_v44, %v2735_v37  ;;  %v2740_v11 = vadd.f32 %v5728_v58, %v2701_v9  ;;  %v2699_v29 = vmul.f32 %v5723_v52, %v2625_v35  ;;  %v3902_v35 = vld [vmem:[%s4171_s11 + $0xe0] sm:$0xff] }
 0x41c   : > { %v3169_v28 = vpop.f32.mrf.mxu1 }
 0x41d   : > { %2833 = vst [vmem:[%s5741_s30 + $0x98] sm:$0xff] %v2801_v30  ;;  %v2799_v5 = vmax.f32 %v2767_v3, 0.0  ;;  %v2772_v41 = vadd.f32 %v3893_v56, %v2740_v11  ;;  %v2738_v40 = vadd.f32 %v5728_v58, %v2699_v29  ;;  %v2702_v24 = vmul.f32 %v3169_v28, %v5723_v52  ;;  %v3903_v29 = vld [vmem:[%s4171_s11 + $0xf8] sm:$0xff] }
 0x41e   : > { %v2628_v13 = vpop.f32.mrf.mxu1 }
 0x41f   : > { %2831 = vst [vmem:[%s5741_s30 + $0x88] sm:$0xff] %v2799_v5  ;;  %v2804_v19 = vmax.f32 %v2772_v41, 0.0  ;;  %v2770_v15 = vadd.f32 %v3894_v21, %v2738_v40  ;;  %v2741_v2 = vadd.f32 %v5728_v58, %v2702_v24  ;;  %v2700_v63 = vmul.f32 %v5723_v52, %v2628_v13  ;;  %v3904_v41 = vld [vmem:[%s4171_s11 + $0xe8] sm:$0xff]  ;;  %s4011_s11 = smov [#allocation5]  }
 0x420   : > { %v3172_v55 = vpop.f32.mrf.mxu1  ;;  %s3937_s18 = sshll.u32 %s4011_s11, 4  ;;  %s3938_s18 = int_to_ptr.vmem [resolvable:$false] %s3937_s18 }
 0x421   : > { %2836 = vst [vmem:[%s5741_s30 + $0xb0] sm:$0xff] %v2804_v19  ;;  %v2802_v46 = vmax.f32 %v2770_v15, 0.0  ;;  %v2773_v4 = vadd.f32 %v3895_v25, %v2741_v2  ;;  %v2739_v31 = vadd.f32 %v5728_v58, %v2700_v63  ;;  %v2705_v50 = vmul.f32 %v3172_v55, %v5723_v52  ;;  %s3939_s28 = scalar_lea.vmem %s3938_s18, 8192  ;;  %p3940_p5 = scmp.lt.s32.totalorder %s5868_s23, %s3938_s18 }
 0x422   : > { %v2641_v34 = vpop.f32.mrf.mxu1  ;;  %p3941_p7 = scmp.lt.s32.totalorder %s3939_s28, %s3933_s17 }
 0x423   : > { %2834 = vst [vmem:[%s5741_s30 + $0xa0] sm:$0xff] %v2802_v46  ;;  %v2805_v53 = vmax.f32 %v2773_v4, 0.0  ;;  %v2771_v23 = vadd.f32 %v3896_v16, %v2739_v31  ;;  %v2744_v57 = vadd.f32 %v5728_v58, %v2705_v50  ;;  %v2703_v45 = vmul.f32 %v5723_v52, %v2641_v34 }
 0x424   : > { %v3173_v62 = vpop.f32.mrf.mxu1  ;;  %p3942_p8 = por %p3941_p7, %p3940_p5 }
 0x425   : > { %2837 = vst [vmem:[%s5741_s30 + $0xb8] sm:$0xff] %v2805_v53  ;;  %v2803_v38 = vmax.f32 %v2771_v23, 0.0  ;;  %v2776_v47 = vadd.f32 %v3897_v12, %v2744_v57  ;;  %v2742_v60 = vadd.f32 %v5728_v58, %v2703_v45  ;;  %v2706_v10 = vmul.f32 %v3173_v62, %v5723_v52 }
 0x426   : > { %v2644_v59 = vpop.f32.mrf.mxu1  ;;  %p3943_p10 = pnand %p3942_p8, %p3936_p4 }
 0x427   : > { %2835 = vst [vmem:[%s5741_s30 + $0xa8] sm:$0xff] %v2803_v38  ;;  %v2808_v61 = vmax.f32 %v2776_v47, 0.0  ;;  %v2774_v48 = vadd.f32 %v3898_v32, %v2742_v60  ;;  %v2745_v33 = vadd.f32 %v5728_v58, %v2706_v10  ;;  %v2704_v54 = vmul.f32 %v5723_v52, %v2644_v59 }
 0x429   : > { %2840 = vst [vmem:[%s5741_s30 + $0xd0] sm:$0xff] %v2808_v61  ;;  %v2806_v26 = vmax.f32 %v2774_v48, 0.0  ;;  %v2777_v18 = vadd.f32 %v3899_v22, %v2745_v33  ;;  %v2743_v17 = vadd.f32 %v5728_v58, %v2704_v54 }
 0x42b   : > { %2838 = vst [vmem:[%s5741_s30 + $0xc0] sm:$0xff] %v2806_v26  ;;  %v2809_v14 = vmax.f32 %v2777_v18, 0.0  ;;  %v2775_v36 = vadd.f32 %v3900_v49, %v2743_v17  ;;  %v3176_v43 = vpop.f32.mrf.mxu1 }
 0x42c   : > { %v2709_v0 = vmul.f32 %v3176_v43, %v5723_v52 }
 0x42d   : > { %2841 = vst [vmem:[%s5741_s30 + $0xd8] sm:$0xff] %v2809_v14  ;;  %v2807_v39 = vmax.f32 %v2775_v36, 0.0  ;;  %v2657_v20 = vpop.f32.mrf.mxu1 }
 0x42e   : > { %v2748_v6 = vadd.f32 %v5728_v58, %v2709_v0  ;;  %v2707_v27 = vmul.f32 %v5723_v52, %v2657_v20 }
 0x42f   : > { %2839 = vst [vmem:[%s5741_s30 + $0xc8] sm:$0xff] %v2807_v39  ;;  %v3177_v7 = vpop.f32.mrf.mxu1 }
 0x430   : > { %v2780_v8 = vadd.f32 %v3901_v51, %v2748_v6  ;;  %v2746_v1 = vadd.f32 %v5728_v58, %v2707_v27  ;;  %v2710_v42 = vmul.f32 %v3177_v7, %v5723_v52 }
 0x431   : > { %v2660_v37 = vpop.f32.mrf.mxu1 }
 0x432   : > { %v2812_v9 = vmax.f32 %v2780_v8, 0.0  ;;  %v2778_v30 = vadd.f32 %v3902_v35, %v2746_v1  ;;  %v2749_v44 = vadd.f32 %v5728_v58, %v2710_v42  ;;  %v2708_v3 = vmul.f32 %v5723_v52, %v2660_v37 }
 0x434   : > { %2844 = vst [vmem:[%s5741_s30 + $0xf0] sm:$0xff] %v2812_v9  ;;  %v2810_v11 = vmax.f32 %v2778_v30, 0.0  ;;  %v2781_v28 = vadd.f32 %v3903_v29, %v2749_v44  ;;  %v2747_v5 = vadd.f32 %v5728_v58, %v2708_v3 }
 0x436   : > { %2842 = vst [vmem:[%s5741_s30 + $0xe0] sm:$0xff] %v2810_v11  ;;  %v2813_v56 = vmax.f32 %v2781_v28, 0.0  ;;  %v2779_v40 = vadd.f32 %v3904_v41, %v2747_v5 }
 0x438   : > { %2845 = vst [vmem:[%s5741_s30 + $0xf8] sm:$0xff] %v2813_v56  ;;  %v2811_v52 = vmax.f32 %v2779_v40, 0.0 }
 0x43a   : > { %2843 = vst [vmem:[%s5741_s30 + $0xe8] sm:$0xff] %v2811_v52 }
 0x43b   : > { %3946 = shalt.err (!%p3943_p10)
}
 0x43c   : > { %s3947_s15 = scalar_lea.hbm %s5865_s21, 4096  ;;  %s3951_s29 = scalar_lea.hbm %s5923_s10, 8192 }
 0x43d   : > { %p3948_p0 = scmp.ne.s32.totalorder %s5865_s21, %s3947_s15  ;;  %p3952_p1 = scmp.lt.s32.totalorder %s5865_s21, %s5923_s10 }
 0x43e   : > { %p3953_p3 = scmp.lt.s32.totalorder %s3951_s29, %s3947_s15 }
 0x43f   : > { %p3949_p2 = pnand %p3948_p0, %p6030_p12 }
 0x440   : > { %p3954_p6 = por %p3953_p3, %p3952_p1 }
 0x441   : > { %p3950_p9 = pneg %p3949_p2 }
 0x443   : > { %p3955_p11 = pnand %p3954_p6, %p3950_p9 }
 0x445   : > { %3958 = shalt.err (!%p3955_p11)
}
 0x446   : > { %s4012_s17 = smov 128  }
 0x447   : > { %3189 = dma.vmem_to_hbm [thread:$0]  (%p6030_p12), %s5868_s23, 4096, %s5865_s21, %s2847_s27, %s4012_s17, %s4012_s17, %s4006_s12  }
 0x448 PF: > { %s2875_s11 = sand.u32 1, %s3985_s13   ;;  %p6031_p13 = scmp.ne.s32.totalorder %s5964_s26, 0 }
 0x449   : > { %p6032_p4 = scmp.ge.s32.totalorder %s3997_s16, 2  ;;  %s2876_s18 = scalar_lea.sflag [#allocation4], %s2875_s11 }
 0x44b   : > { %p3196_p5 = pnand %p6032_p4, %p6031_p13 }
 0x44d   : > { %p3197_p7 = pneg %p3196_p5 }
 0x44f   : > { %3980 = dma.done.wait (%p3197_p7), %s2876_s18, 4096  }
 0x450   : > { %3982 = vsyncadd (%p3197_p7), %s2876_s18, 4294963200  ;;  %s6033_s16 = sld [smem:[#allocation9_spill]]  ;;  %s6036_s13 = smov %s3989_s14 }
 0x451   : > { %s6034_s25 = sld [smem:[#allocation8_spill]] }
 0x452   : > { %s6035_s15 = sld [smem:[#allocation10_spill]] }
 0x456   : > { %p23_p8 = scmp.ge.s32.totalorder %s6033_s16, 4  }
 0x457   : > { %s6037_s14 = smov %s6034_s25 }
 0x458   :  { %25 = sbr.rel (!%p23_p8) target bundleno = 5 (0x5), region = 105 }
 0x45d   :  { %2881 = vsyncpa [#allocation3], 1 }
 0x45e   :  { %2883 = vsyncpa [#allocation3 + $0x1], 1 }
 0x45f   :  { %2884 = vsyncpa [#allocation4], 1 }
 0x460   :  { %2886 = vsyncpa [#allocation4 + $0x1], 1 }

</bundles_post_ra>
